<compile_context>
chip_gen: v7x
topology: tpu7x:2x2x1
jax: 0.10.0
libtpu: 0.0.40
codegen_flags: <defaults>
</compile_context>

<pallas_src>
import functools

import jax
import jax.numpy as jnp
import numpy as np
from jax import lax
from jax.experimental import pallas as pl
from jax.experimental.pallas import tpu as pltpu

KSZ = 7            # spatial attention kernel size
PAD = KSZ // 2     # padding = kernel_size // 2


def _tree_sum(xs):
    """Balanced-tree sum of a list of arrays (breaks serial add chains)."""
    xs = list(xs)
    while len(xs) > 1:
        nxt = [xs[i] + xs[i + 1] for i in range(0, len(xs) - 1, 2)]
        if len(xs) % 2:
            nxt.append(xs[-1])
        xs = nxt
    return xs[0]


def cbam_kernel(x_ref, w1_ref, w2_ref, wsa_ref, o_ref, *, W):
    # x_ref / o_ref: (Bblk, C, H*W) lane-dense blocks; w1_ref: (Cr, C);
    # w2_ref: (C, Cr); wsa_ref: (2*KSZ*KSZ,) f32 scalars in SMEM.
    Bblk, C, HW = x_ref.shape
    inv_hw = 1.0 / HW
    inv_c = 1.0 / C

    # ---------------- Channel attention (batched over Bblk) ----------------
    # pooled: (C, 2*Bblk), columns [0,Bblk) = per-batch spatial mean,
    # columns [Bblk, 2*Bblk) = per-batch spatial max.  Assembled with the
    # iota+where trick (no narrow lane concatenates).
    col_io = lax.broadcasted_iota(jnp.int32, (C, 2 * Bblk), 1)
    pooled = jnp.zeros((C, 2 * Bblk), jnp.float32)
    for b in range(Bblk):
        x_b = x_ref[b]                                            # (C, HW)
        a_col = jnp.sum(x_b, axis=-1, keepdims=True) * inv_hw     # (C, 1)
        m_col = jnp.max(x_b, axis=-1, keepdims=True)              # (C, 1)
        pooled = jnp.where(col_io == b, a_col, pooled)
        pooled = jnp.where(col_io == Bblk + b, m_col, pooled)

    # Shared MLP: two matmuls for the whole batch block.
    h = jnp.maximum(
        jnp.dot(w1_ref[...], pooled, preferred_element_type=jnp.float32), 0.0)  # (Cr, 2*Bblk)
    z = jnp.dot(w2_ref[...], h, preferred_element_type=jnp.float32)             # (C, 2*Bblk)
    ca = jax.nn.sigmoid(z[:, :Bblk] + z[:, Bblk:])                # (C, Bblk)

    # ---------------- Spatial attention ----------------
    # Channel-attended maps and their channel-reduced stats, stacked along
    # sublanes as (Bblk, HW) so the conv uses all 8 f32 sublanes.
    row_io = lax.broadcasted_iota(jnp.int32, (Bblk, HW), 0)
    avg_map = jnp.zeros((Bblk, HW), jnp.float32)
    max_map = jnp.zeros((Bblk, HW), jnp.float32)
    x_ca = []
    for b in range(Bblk):
        xc = x_ref[b] * ca[:, b:b + 1]                            # (C, HW)
        x_ca.append(xc)
        a_row = jnp.sum(xc, axis=0, keepdims=True) * inv_c        # (1, HW)
        m_row = jnp.max(xc, axis=0, keepdims=True)                # (1, HW)
        is_b = row_io == b
        avg_map = jnp.where(is_b, a_row, avg_map)
        max_map = jnp.where(is_b, m_row, max_map)

    # Masks for zero padding, generated in-kernel from a lane iota.
    p_idx = lax.broadcasted_iota(jnp.int32, (Bblk, HW), 1)
    if (W & (W - 1)) == 0:
        j_idx = jnp.bitwise_and(p_idx, W - 1)                     # column index
    else:
        j_idx = jnp.remainder(p_idx, W)

    # Factored 7x7 conv in the flattened domain:
    #   column pass: 7 shifted+masked (avg, max) map pairs feeding 7 per-row
    #   accumulators; row pass: one row shift + mask per ki, then a tree sum.
    acc = [None] * KSZ
    for kj in range(KSZ):
        d = kj - PAD
        if d == 0:
            s_a, s_m = avg_map, max_map
        else:
            s_a = pltpu.roll(avg_map, (-d) % HW, axis=1)          # s[p] = map[p+d]
            s_m = pltpu.roll(max_map, (-d) % HW, axis=1)
            cm = (j_idx >= -d) if d < 0 else (j_idx < W - d)      # column validity
            s_a = jnp.where(cm, s_a, 0.0)
            s_m = jnp.where(cm, s_m, 0.0)
        for ki in range(KSZ):
            w_a = wsa_ref[ki * KSZ + kj]                          # SMEM scalars
            w_m = wsa_ref[KSZ * KSZ + ki * KSZ + kj]
            t = w_a * s_a + w_m * s_m
            acc[ki] = t if acc[ki] is None else acc[ki] + t

    rows = []
    for ki in range(KSZ):
        e = ki - PAD
        t = acc[ki]
        if e != 0:
            t = pltpu.roll(t, (-e * W) % HW, axis=1)              # t[p] = acc[p+e*W]
            rm = (p_idx >= -e * W) if e < 0 else (p_idx < HW - e * W)
            t = jnp.where(rm, t, 0.0)                             # row validity
        rows.append(t)
    conv = _tree_sum(rows)                                        # (Bblk, HW)
    sa = jax.nn.sigmoid(conv)

    for b in range(Bblk):
        o_ref[b] = (x_ca[b] * sa[b:b + 1, :]).astype(o_ref.dtype)


def _pick_bblk(B):
    for bb in (8, 4, 2, 1):
        if B % bb == 0 and B // bb >= 2:
            return bb
    return B


def cbam_pallas(x, w1, w2, wsa, *, bblk=None):
    B, C, H, W = x.shape
    Cr = w1.shape[0]
    HW = H * W
    if bblk is None:
        bblk = _pick_bblk(B)
    assert B % bblk == 0

    # Lane-dense layout: last dim H*W maps onto the 128-lane axis.
    x_flat = x.reshape(B, C, HW)
    wsa_flat = wsa.reshape(-1)                                    # (2*KSZ*KSZ,) -> SMEM

    kernel = functools.partial(cbam_kernel, W=W)

    out_flat = pl.pallas_call(
        kernel,
        out_shape=jax.ShapeDtypeStruct((B, C, HW), x.dtype),
        grid=(B // bblk,),
        in_specs=[
            pl.BlockSpec((bblk, C, HW), lambda i: (i, 0, 0)),
            # constant block index -> weights stay resident, no per-step re-DMA
            pl.BlockSpec((Cr, C), lambda i: (0, 0)),
            pl.BlockSpec((C, Cr), lambda i: (0, 0)),
            pl.BlockSpec(memory_space=pltpu.SMEM),
        ],
        out_specs=pl.BlockSpec((bblk, C, HW), lambda i: (i, 0, 0)),
        compiler_params=pltpu.CompilerParams(
            dimension_semantics=("parallel",),                    # both v7x TCs get a step
        ),
    )(x_flat, w1, w2, wsa_flat)
    return out_flat.reshape(B, C, H, W)


def cbam_ref(x, w1, w2, wsa):
    """Pure-JAX reference matching the PyTorch forward semantics."""
    avg = x.mean(axis=(2, 3))                                     # (B, C)
    mx = x.max(axis=(2, 3))                                       # (B, C)

    def fc(v):
        h = jnp.maximum(v @ w1.T, 0.0)
        return h @ w2.T

    ca = jax.nn.sigmoid(fc(avg) + fc(mx))                         # (B, C)
    x = x * ca[:, :, None, None]

    avg_map = x.mean(axis=1, keepdims=True)                       # (B, 1, H, W)
    max_map = x.max(axis=1, keepdims=True)                        # (B, 1, H, W)
    stacked = jnp.concatenate([avg_map, max_map], axis=1)         # (B, 2, H, W)
    conv = jax.lax.conv_general_dilated(
        stacked, wsa[None],                                       # (1, 2, 7, 7)
        window_strides=(1, 1),
        padding=((PAD, PAD), (PAD, PAD)),
        dimension_numbers=("NCHW", "OIHW", "NCHW"),
    )
    sa = jax.nn.sigmoid(conv)                                     # (B, 1, H, W)
    return x * sa


if __name__ == "__main__":
    B, C, H, W = 16, 32, 16, 16
    reduction = 16
    Cr = C // reduction

    key = jax.random.PRNGKey(0)
    k1, k2, k3, kx = jax.random.split(key, 4)
    w1 = jax.random.normal(k1, (Cr, C), jnp.float32) * 0.1        # Conv2d(C, C//r, 1, bias=False)
    w2 = jax.random.normal(k2, (C, Cr), jnp.float32) * 0.1        # Conv2d(C//r, C, 1, bias=False)
    wsa = jax.random.normal(k3, (2, KSZ, KSZ), jnp.float32) * 0.1  # Conv2d(2, 1, 7, bias=False)
    x = jax.random.normal(kx, (B, C, H, W), jnp.float32)

    out = jax.block_until_ready(cbam_pallas(x, w1, w2, wsa))
    ref = jax.block_until_ready(cbam_ref(x, w1, w2, wsa))
    np.testing.assert_allclose(np.asarray(out), np.asarray(ref), rtol=1e-5, atol=1e-5)

    print("KERNEL_OK")
</pallas_src>

<mosaic_0001>
module attributes {stable_mosaic.version = 11 : i64} {
  func.func @cbam_kernel(%arg0: i32, %arg1: memref<8x32x256xf32, #tpu.memory_space<vmem>>, %arg2: memref<2x32xf32, #tpu.memory_space<vmem>>, %arg3: memref<32x2xf32, #tpu.memory_space<vmem>>, %arg4: memref<98xf32, #tpu.memory_space<smem>>, %arg5: memref<8x32x256xf32, #tpu.memory_space<vmem>>) attributes {dimension_semantics = [#tpu.dimension_semantics<parallel>], iteration_bounds = array<i64: 2>, scalar_prefetch = 0 : i64, scratch_operands = 0 : i64, tpu.core_type = #tpu.core_type<tc>, window_params = [{transform_indices = @transform_0, window_bounds = array<i64: 8, 32, 256>}, {pipeline_mode = #tpu.pipeline_mode<synchronous>, transform_indices = @transform_1, window_bounds = array<i64: 2, 32>}, {pipeline_mode = #tpu.pipeline_mode<synchronous>, transform_indices = @transform_2, window_bounds = array<i64: 32, 2>}, {transform_indices = @transform_3, window_bounds = array<i64: 98>}, {transform_indices = @transform_4, window_bounds = array<i64: 8, 32, 256>}]} {
    %0 = tpu.iota {dimensions = array<i32: 1>} : vector<32x16xi32>
    %cst = arith.constant 0.000000e+00 : f32
    %1 = vector.broadcast %cst : f32 to vector<32x16xf32>
    %c0 = arith.constant 0 : index
    %c0_0 = arith.constant 0 : index
    %c0_1 = arith.constant 0 : index
    %2 = vector.load %arg1[%c0, %c0_0, %c0_1] : memref<8x32x256xf32, #tpu.memory_space<vmem>>, vector<1x32x256xf32>
    %3 = vector.shape_cast %2 : vector<1x32x256xf32> to vector<32x256xf32>
    %cst_2 = arith.constant dense<0.000000e+00> : vector<32xf32>
    %4 = vector.multi_reduction <add>, %3, %cst_2 [1] : vector<32x256xf32> to vector<32xf32>
    %5 = vector.shape_cast %4 : vector<32xf32> to vector<32x1xf32>
    %cst_3 = arith.constant 3.906250e-03 : f32
    %6 = vector.broadcast %cst_3 : f32 to vector<32x1xf32>
    %7 = arith.mulf %5, %6 : vector<32x1xf32>
    %cst_4 = arith.constant dense<0xFF800000> : vector<32xf32>
    %8 = vector.multi_reduction <maximumf>, %3, %cst_4 [1] : vector<32x256xf32> to vector<32xf32>
    %9 = vector.shape_cast %8 : vector<32xf32> to vector<32x1xf32>
    %c0_i32 = arith.constant 0 : i32
    %10 = vector.broadcast %c0_i32 : i32 to vector<32x16xi32>
    %11 = arith.cmpi eq, %0, %10 : vector<32x16xi32>
    %12 = vector.shape_cast %7 : vector<32x1xf32> to vector<32x1xf32>
    %13 = vector.broadcast %12 : vector<32x1xf32> to vector<32x16xf32>
    %14 = arith.select %11, %13, %1 : vector<32x16xi1>, vector<32x16xf32>
    %c8_i32 = arith.constant 8 : i32
    %15 = vector.broadcast %c8_i32 : i32 to vector<32x16xi32>
    %16 = arith.cmpi eq, %0, %15 : vector<32x16xi32>
    %17 = vector.shape_cast %9 : vector<32x1xf32> to vector<32x1xf32>
    %18 = vector.broadcast %17 : vector<32x1xf32> to vector<32x16xf32>
    %19 = arith.select %16, %18, %14 : vector<32x16xi1>, vector<32x16xf32>
    %c1 = arith.constant 1 : index
    %c0_5 = arith.constant 0 : index
    %c0_6 = arith.constant 0 : index
    %20 = vector.load %arg1[%c1, %c0_5, %c0_6] : memref<8x32x256xf32, #tpu.memory_space<vmem>>, vector<1x32x256xf32>
    %21 = vector.shape_cast %20 : vector<1x32x256xf32> to vector<32x256xf32>
    %cst_7 = arith.constant dense<0.000000e+00> : vector<32xf32>
    %22 = vector.multi_reduction <add>, %21, %cst_7 [1] : vector<32x256xf32> to vector<32xf32>
    %23 = vector.shape_cast %22 : vector<32xf32> to vector<32x1xf32>
    %cst_8 = arith.constant 3.906250e-03 : f32
    %24 = vector.broadcast %cst_8 : f32 to vector<32x1xf32>
    %25 = arith.mulf %23, %24 : vector<32x1xf32>
    %cst_9 = arith.constant dense<0xFF800000> : vector<32xf32>
    %26 = vector.multi_reduction <maximumf>, %21, %cst_9 [1] : vector<32x256xf32> to vector<32xf32>
    %27 = vector.shape_cast %26 : vector<32xf32> to vector<32x1xf32>
    %c1_i32 = arith.constant 1 : i32
    %28 = vector.broadcast %c1_i32 : i32 to vector<32x16xi32>
    %29 = arith.cmpi eq, %0, %28 : vector<32x16xi32>
    %30 = vector.shape_cast %25 : vector<32x1xf32> to vector<32x1xf32>
    %31 = vector.broadcast %30 : vector<32x1xf32> to vector<32x16xf32>
    %32 = arith.select %29, %31, %19 : vector<32x16xi1>, vector<32x16xf32>
    %c9_i32 = arith.constant 9 : i32
    %33 = vector.broadcast %c9_i32 : i32 to vector<32x16xi32>
    %34 = arith.cmpi eq, %0, %33 : vector<32x16xi32>
    %35 = vector.shape_cast %27 : vector<32x1xf32> to vector<32x1xf32>
    %36 = vector.broadcast %35 : vector<32x1xf32> to vector<32x16xf32>
    %37 = arith.select %34, %36, %32 : vector<32x16xi1>, vector<32x16xf32>
    %c2 = arith.constant 2 : index
    %c0_10 = arith.constant 0 : index
    %c0_11 = arith.constant 0 : index
    %38 = vector.load %arg1[%c2, %c0_10, %c0_11] : memref<8x32x256xf32, #tpu.memory_space<vmem>>, vector<1x32x256xf32>
    %39 = vector.shape_cast %38 : vector<1x32x256xf32> to vector<32x256xf32>
    %cst_12 = arith.constant dense<0.000000e+00> : vector<32xf32>
    %40 = vector.multi_reduction <add>, %39, %cst_12 [1] : vector<32x256xf32> to vector<32xf32>
    %41 = vector.shape_cast %40 : vector<32xf32> to vector<32x1xf32>
    %cst_13 = arith.constant 3.906250e-03 : f32
    %42 = vector.broadcast %cst_13 : f32 to vector<32x1xf32>
    %43 = arith.mulf %41, %42 : vector<32x1xf32>
    %cst_14 = arith.constant dense<0xFF800000> : vector<32xf32>
    %44 = vector.multi_reduction <maximumf>, %39, %cst_14 [1] : vector<32x256xf32> to vector<32xf32>
    %45 = vector.shape_cast %44 : vector<32xf32> to vector<32x1xf32>
    %c2_i32 = arith.constant 2 : i32
    %46 = vector.broadcast %c2_i32 : i32 to vector<32x16xi32>
    %47 = arith.cmpi eq, %0, %46 : vector<32x16xi32>
    %48 = vector.shape_cast %43 : vector<32x1xf32> to vector<32x1xf32>
    %49 = vector.broadcast %48 : vector<32x1xf32> to vector<32x16xf32>
    %50 = arith.select %47, %49, %37 : vector<32x16xi1>, vector<32x16xf32>
    %c10_i32 = arith.constant 10 : i32
    %51 = vector.broadcast %c10_i32 : i32 to vector<32x16xi32>
    %52 = arith.cmpi eq, %0, %51 : vector<32x16xi32>
    %53 = vector.shape_cast %45 : vector<32x1xf32> to vector<32x1xf32>
    %54 = vector.broadcast %53 : vector<32x1xf32> to vector<32x16xf32>
    %55 = arith.select %52, %54, %50 : vector<32x16xi1>, vector<32x16xf32>
    %c3 = arith.constant 3 : index
    %c0_15 = arith.constant 0 : index
    %c0_16 = arith.constant 0 : index
    %56 = vector.load %arg1[%c3, %c0_15, %c0_16] : memref<8x32x256xf32, #tpu.memory_space<vmem>>, vector<1x32x256xf32>
    %57 = vector.shape_cast %56 : vector<1x32x256xf32> to vector<32x256xf32>
    %cst_17 = arith.constant dense<0.000000e+00> : vector<32xf32>
    %58 = vector.multi_reduction <add>, %57, %cst_17 [1] : vector<32x256xf32> to vector<32xf32>
    %59 = vector.shape_cast %58 : vector<32xf32> to vector<32x1xf32>
    %cst_18 = arith.constant 3.906250e-03 : f32
    %60 = vector.broadcast %cst_18 : f32 to vector<32x1xf32>
    %61 = arith.mulf %59, %60 : vector<32x1xf32>
    %cst_19 = arith.constant dense<0xFF800000> : vector<32xf32>
    %62 = vector.multi_reduction <maximumf>, %57, %cst_19 [1] : vector<32x256xf32> to vector<32xf32>
    %63 = vector.shape_cast %62 : vector<32xf32> to vector<32x1xf32>
    %c3_i32 = arith.constant 3 : i32
    %64 = vector.broadcast %c3_i32 : i32 to vector<32x16xi32>
    %65 = arith.cmpi eq, %0, %64 : vector<32x16xi32>
    %66 = vector.shape_cast %61 : vector<32x1xf32> to vector<32x1xf32>
    %67 = vector.broadcast %66 : vector<32x1xf32> to vector<32x16xf32>
    %68 = arith.select %65, %67, %55 : vector<32x16xi1>, vector<32x16xf32>
    %c11_i32 = arith.constant 11 : i32
    %69 = vector.broadcast %c11_i32 : i32 to vector<32x16xi32>
    %70 = arith.cmpi eq, %0, %69 : vector<32x16xi32>
    %71 = vector.shape_cast %63 : vector<32x1xf32> to vector<32x1xf32>
    %72 = vector.broadcast %71 : vector<32x1xf32> to vector<32x16xf32>
    %73 = arith.select %70, %72, %68 : vector<32x16xi1>, vector<32x16xf32>
    %c4 = arith.constant 4 : index
    %c0_20 = arith.constant 0 : index
    %c0_21 = arith.constant 0 : index
    %74 = vector.load %arg1[%c4, %c0_20, %c0_21] : memref<8x32x256xf32, #tpu.memory_space<vmem>>, vector<1x32x256xf32>
    %75 = vector.shape_cast %74 : vector<1x32x256xf32> to vector<32x256xf32>
    %cst_22 = arith.constant dense<0.000000e+00> : vector<32xf32>
    %76 = vector.multi_reduction <add>, %75, %cst_22 [1] : vector<32x256xf32> to vector<32xf32>
    %77 = vector.shape_cast %76 : vector<32xf32> to vector<32x1xf32>
    %cst_23 = arith.constant 3.906250e-03 : f32
    %78 = vector.broadcast %cst_23 : f32 to vector<32x1xf32>
    %79 = arith.mulf %77, %78 : vector<32x1xf32>
    %cst_24 = arith.constant dense<0xFF800000> : vector<32xf32>
    %80 = vector.multi_reduction <maximumf>, %75, %cst_24 [1] : vector<32x256xf32> to vector<32xf32>
    %81 = vector.shape_cast %80 : vector<32xf32> to vector<32x1xf32>
    %c4_i32 = arith.constant 4 : i32
    %82 = vector.broadcast %c4_i32 : i32 to vector<32x16xi32>
    %83 = arith.cmpi eq, %0, %82 : vector<32x16xi32>
    %84 = vector.shape_cast %79 : vector<32x1xf32> to vector<32x1xf32>
    %85 = vector.broadcast %84 : vector<32x1xf32> to vector<32x16xf32>
    %86 = arith.select %83, %85, %73 : vector<32x16xi1>, vector<32x16xf32>
    %c12_i32 = arith.constant 12 : i32
    %87 = vector.broadcast %c12_i32 : i32 to vector<32x16xi32>
    %88 = arith.cmpi eq, %0, %87 : vector<32x16xi32>
    %89 = vector.shape_cast %81 : vector<32x1xf32> to vector<32x1xf32>
    %90 = vector.broadcast %89 : vector<32x1xf32> to vector<32x16xf32>
    %91 = arith.select %88, %90, %86 : vector<32x16xi1>, vector<32x16xf32>
    %c5 = arith.constant 5 : index
    %c0_25 = arith.constant 0 : index
    %c0_26 = arith.constant 0 : index
    %92 = vector.load %arg1[%c5, %c0_25, %c0_26] : memref<8x32x256xf32, #tpu.memory_space<vmem>>, vector<1x32x256xf32>
    %93 = vector.shape_cast %92 : vector<1x32x256xf32> to vector<32x256xf32>
    %cst_27 = arith.constant dense<0.000000e+00> : vector<32xf32>
    %94 = vector.multi_reduction <add>, %93, %cst_27 [1] : vector<32x256xf32> to vector<32xf32>
    %95 = vector.shape_cast %94 : vector<32xf32> to vector<32x1xf32>
    %cst_28 = arith.constant 3.906250e-03 : f32
    %96 = vector.broadcast %cst_28 : f32 to vector<32x1xf32>
    %97 = arith.mulf %95, %96 : vector<32x1xf32>
    %cst_29 = arith.constant dense<0xFF800000> : vector<32xf32>
    %98 = vector.multi_reduction <maximumf>, %93, %cst_29 [1] : vector<32x256xf32> to vector<32xf32>
    %99 = vector.shape_cast %98 : vector<32xf32> to vector<32x1xf32>
    %c5_i32 = arith.constant 5 : i32
    %100 = vector.broadcast %c5_i32 : i32 to vector<32x16xi32>
    %101 = arith.cmpi eq, %0, %100 : vector<32x16xi32>
    %102 = vector.shape_cast %97 : vector<32x1xf32> to vector<32x1xf32>
    %103 = vector.broadcast %102 : vector<32x1xf32> to vector<32x16xf32>
    %104 = arith.select %101, %103, %91 : vector<32x16xi1>, vector<32x16xf32>
    %c13_i32 = arith.constant 13 : i32
    %105 = vector.broadcast %c13_i32 : i32 to vector<32x16xi32>
    %106 = arith.cmpi eq, %0, %105 : vector<32x16xi32>
    %107 = vector.shape_cast %99 : vector<32x1xf32> to vector<32x1xf32>
    %108 = vector.broadcast %107 : vector<32x1xf32> to vector<32x16xf32>
    %109 = arith.select %106, %108, %104 : vector<32x16xi1>, vector<32x16xf32>
    %c6 = arith.constant 6 : index
    %c0_30 = arith.constant 0 : index
    %c0_31 = arith.constant 0 : index
    %110 = vector.load %arg1[%c6, %c0_30, %c0_31] : memref<8x32x256xf32, #tpu.memory_space<vmem>>, vector<1x32x256xf32>
    %111 = vector.shape_cast %110 : vector<1x32x256xf32> to vector<32x256xf32>
    %cst_32 = arith.constant dense<0.000000e+00> : vector<32xf32>
    %112 = vector.multi_reduction <add>, %111, %cst_32 [1] : vector<32x256xf32> to vector<32xf32>
    %113 = vector.shape_cast %112 : vector<32xf32> to vector<32x1xf32>
    %cst_33 = arith.constant 3.906250e-03 : f32
    %114 = vector.broadcast %cst_33 : f32 to vector<32x1xf32>
    %115 = arith.mulf %113, %114 : vector<32x1xf32>
    %cst_34 = arith.constant dense<0xFF800000> : vector<32xf32>
    %116 = vector.multi_reduction <maximumf>, %111, %cst_34 [1] : vector<32x256xf32> to vector<32xf32>
    %117 = vector.shape_cast %116 : vector<32xf32> to vector<32x1xf32>
    %c6_i32 = arith.constant 6 : i32
    %118 = vector.broadcast %c6_i32 : i32 to vector<32x16xi32>
    %119 = arith.cmpi eq, %0, %118 : vector<32x16xi32>
    %120 = vector.shape_cast %115 : vector<32x1xf32> to vector<32x1xf32>
    %121 = vector.broadcast %120 : vector<32x1xf32> to vector<32x16xf32>
    %122 = arith.select %119, %121, %109 : vector<32x16xi1>, vector<32x16xf32>
    %c14_i32 = arith.constant 14 : i32
    %123 = vector.broadcast %c14_i32 : i32 to vector<32x16xi32>
    %124 = arith.cmpi eq, %0, %123 : vector<32x16xi32>
    %125 = vector.shape_cast %117 : vector<32x1xf32> to vector<32x1xf32>
    %126 = vector.broadcast %125 : vector<32x1xf32> to vector<32x16xf32>
    %127 = arith.select %124, %126, %122 : vector<32x16xi1>, vector<32x16xf32>
    %c7 = arith.constant 7 : index
    %c0_35 = arith.constant 0 : index
    %c0_36 = arith.constant 0 : index
    %128 = vector.load %arg1[%c7, %c0_35, %c0_36] : memref<8x32x256xf32, #tpu.memory_space<vmem>>, vector<1x32x256xf32>
    %129 = vector.shape_cast %128 : vector<1x32x256xf32> to vector<32x256xf32>
    %cst_37 = arith.constant dense<0.000000e+00> : vector<32xf32>
    %130 = vector.multi_reduction <add>, %129, %cst_37 [1] : vector<32x256xf32> to vector<32xf32>
    %131 = vector.shape_cast %130 : vector<32xf32> to vector<32x1xf32>
    %cst_38 = arith.constant 3.906250e-03 : f32
    %132 = vector.broadcast %cst_38 : f32 to vector<32x1xf32>
    %133 = arith.mulf %131, %132 : vector<32x1xf32>
    %cst_39 = arith.constant dense<0xFF800000> : vector<32xf32>
    %134 = vector.multi_reduction <maximumf>, %129, %cst_39 [1] : vector<32x256xf32> to vector<32xf32>
    %135 = vector.shape_cast %134 : vector<32xf32> to vector<32x1xf32>
    %c7_i32 = arith.constant 7 : i32
    %136 = vector.broadcast %c7_i32 : i32 to vector<32x16xi32>
    %137 = arith.cmpi eq, %0, %136 : vector<32x16xi32>
    %138 = vector.shape_cast %133 : vector<32x1xf32> to vector<32x1xf32>
    %139 = vector.broadcast %138 : vector<32x1xf32> to vector<32x16xf32>
    %140 = arith.select %137, %139, %127 : vector<32x16xi1>, vector<32x16xf32>
    %c15_i32 = arith.constant 15 : i32
    %141 = vector.broadcast %c15_i32 : i32 to vector<32x16xi32>
    %142 = arith.cmpi eq, %0, %141 : vector<32x16xi32>
    %143 = vector.shape_cast %135 : vector<32x1xf32> to vector<32x1xf32>
    %144 = vector.broadcast %143 : vector<32x1xf32> to vector<32x16xf32>
    %145 = arith.select %142, %144, %140 : vector<32x16xi1>, vector<32x16xf32>
    %c0_40 = arith.constant 0 : index
    %c0_41 = arith.constant 0 : index
    %146 = vector.load %arg2[%c0_40, %c0_41] : memref<2x32xf32, #tpu.memory_space<vmem>>, vector<2x32xf32>
    %cst_42 = arith.constant dense<0.000000e+00> : vector<2x16xf32>
    %147 = tpu.matmul %146, %145, %cst_42 {dimension_numbers = #tpu.dot_dimension_numbers<[1], [0], [0], [1], [0, 0, 1, 1], [], []>} : vector<2x32xf32>, vector<32x16xf32>, vector<2x16xf32> -> vector<2x16xf32>
    %cst_43 = arith.constant 0.000000e+00 : f32
    %148 = vector.broadcast %cst_43 : f32 to vector<2x16xf32>
    %149 = arith.maximumf %147, %148 : vector<2x16xf32>
    %c0_44 = arith.constant 0 : index
    %c0_45 = arith.constant 0 : index
    %150 = vector.load %arg3[%c0_44, %c0_45] : memref<32x2xf32, #tpu.memory_space<vmem>>, vector<32x2xf32>
    %cst_46 = arith.constant dense<0.000000e+00> : vector<32x16xf32>
    %151 = tpu.matmul %150, %149, %cst_46 {dimension_numbers = #tpu.dot_dimension_numbers<[1], [0], [0], [1], [0, 0, 1, 1], [], []>} : vector<32x2xf32>, vector<2x16xf32>, vector<32x16xf32> -> vector<32x16xf32>
    %152 = vector.extract_strided_slice %151 {offsets = [0, 0], sizes = [32, 8], strides = [1, 1]} : vector<32x16xf32> to vector<32x8xf32>
    %153 = vector.extract_strided_slice %151 {offsets = [0, 8], sizes = [32, 8], strides = [1, 1]} : vector<32x16xf32> to vector<32x8xf32>
    %154 = arith.addf %152, %153 : vector<32x8xf32>
    %155 = arith.negf %154 : vector<32x8xf32>
    %156 = math.exp %155 : vector<32x8xf32>
    %cst_47 = arith.constant 1.000000e+00 : f32
    %157 = vector.broadcast %cst_47 : f32 to vector<32x8xf32>
    %158 = arith.addf %157, %156 : vector<32x8xf32>
    %159 = arith.divf %157, %158 : vector<32x8xf32>
    %160 = tpu.iota {dimensions = array<i32: 0>} : vector<8x256xi32>
    %cst_48 = arith.constant 0.000000e+00 : f32
    %161 = vector.broadcast %cst_48 : f32 to vector<8x256xf32>
    %cst_49 = arith.constant 0.000000e+00 : f32
    %162 = vector.broadcast %cst_49 : f32 to vector<8x256xf32>
    %c0_50 = arith.constant 0 : index
    %c0_51 = arith.constant 0 : index
    %c0_52 = arith.constant 0 : index
    %163 = vector.load %arg1[%c0_50, %c0_51, %c0_52] : memref<8x32x256xf32, #tpu.memory_space<vmem>>, vector<1x32x256xf32>
    %164 = vector.shape_cast %163 : vector<1x32x256xf32> to vector<32x256xf32>
    %165 = vector.extract_strided_slice %159 {offsets = [0, 0], sizes = [32, 1], strides = [1, 1]} : vector<32x8xf32> to vector<32x1xf32>
    %166 = vector.broadcast %165 : vector<32x1xf32> to vector<32x256xf32>
    %167 = arith.mulf %164, %166 : vector<32x256xf32>
    %cst_53 = arith.constant dense<0.000000e+00> : vector<256xf32>
    %168 = vector.multi_reduction <add>, %167, %cst_53 [0] : vector<32x256xf32> to vector<256xf32>
    %169 = vector.shape_cast %168 : vector<256xf32> to vector<1x256xf32>
    %cst_54 = arith.constant 3.125000e-02 : f32
    %170 = vector.broadcast %cst_54 : f32 to vector<1x256xf32>
    %171 = arith.mulf %169, %170 : vector<1x256xf32>
    %cst_55 = arith.constant dense<0xFF800000> : vector<256xf32>
    %172 = vector.multi_reduction <maximumf>, %167, %cst_55 [0] : vector<32x256xf32> to vector<256xf32>
    %173 = vector.shape_cast %172 : vector<256xf32> to vector<1x256xf32>
    %c0_i32_56 = arith.constant 0 : i32
    %174 = vector.broadcast %c0_i32_56 : i32 to vector<8x256xi32>
    %175 = arith.cmpi eq, %160, %174 : vector<8x256xi32>
    %176 = vector.shape_cast %171 : vector<1x256xf32> to vector<1x256xf32>
    %177 = vector.broadcast %176 : vector<1x256xf32> to vector<8x256xf32>
    %178 = arith.select %175, %177, %161 : vector<8x256xi1>, vector<8x256xf32>
    %179 = vector.shape_cast %173 : vector<1x256xf32> to vector<1x256xf32>
    %180 = vector.broadcast %179 : vector<1x256xf32> to vector<8x256xf32>
    %181 = arith.select %175, %180, %162 : vector<8x256xi1>, vector<8x256xf32>
    %c1_57 = arith.constant 1 : index
    %c0_58 = arith.constant 0 : index
    %c0_59 = arith.constant 0 : index
    %182 = vector.load %arg1[%c1_57, %c0_58, %c0_59] : memref<8x32x256xf32, #tpu.memory_space<vmem>>, vector<1x32x256xf32>
    %183 = vector.shape_cast %182 : vector<1x32x256xf32> to vector<32x256xf32>
    %184 = vector.extract_strided_slice %159 {offsets = [0, 1], sizes = [32, 1], strides = [1, 1]} : vector<32x8xf32> to vector<32x1xf32>
    %185 = vector.broadcast %184 : vector<32x1xf32> to vector<32x256xf32>
    %186 = arith.mulf %183, %185 : vector<32x256xf32>
    %cst_60 = arith.constant dense<0.000000e+00> : vector<256xf32>
    %187 = vector.multi_reduction <add>, %186, %cst_60 [0] : vector<32x256xf32> to vector<256xf32>
    %188 = vector.shape_cast %187 : vector<256xf32> to vector<1x256xf32>
    %cst_61 = arith.constant 3.125000e-02 : f32
    %189 = vector.broadcast %cst_61 : f32 to vector<1x256xf32>
    %190 = arith.mulf %188, %189 : vector<1x256xf32>
    %cst_62 = arith.constant dense<0xFF800000> : vector<256xf32>
    %191 = vector.multi_reduction <maximumf>, %186, %cst_62 [0] : vector<32x256xf32> to vector<256xf32>
    %192 = vector.shape_cast %191 : vector<256xf32> to vector<1x256xf32>
    %c1_i32_63 = arith.constant 1 : i32
    %193 = vector.broadcast %c1_i32_63 : i32 to vector<8x256xi32>
    %194 = arith.cmpi eq, %160, %193 : vector<8x256xi32>
    %195 = vector.shape_cast %190 : vector<1x256xf32> to vector<1x256xf32>
    %196 = vector.broadcast %195 : vector<1x256xf32> to vector<8x256xf32>
    %197 = arith.select %194, %196, %178 : vector<8x256xi1>, vector<8x256xf32>
    %198 = vector.shape_cast %192 : vector<1x256xf32> to vector<1x256xf32>
    %199 = vector.broadcast %198 : vector<1x256xf32> to vector<8x256xf32>
    %200 = arith.select %194, %199, %181 : vector<8x256xi1>, vector<8x256xf32>
    %c2_64 = arith.constant 2 : index
    %c0_65 = arith.constant 0 : index
    %c0_66 = arith.constant 0 : index
    %201 = vector.load %arg1[%c2_64, %c0_65, %c0_66] : memref<8x32x256xf32, #tpu.memory_space<vmem>>, vector<1x32x256xf32>
    %202 = vector.shape_cast %201 : vector<1x32x256xf32> to vector<32x256xf32>
    %203 = vector.extract_strided_slice %159 {offsets = [0, 2], sizes = [32, 1], strides = [1, 1]} : vector<32x8xf32> to vector<32x1xf32>
    %204 = vector.broadcast %203 : vector<32x1xf32> to vector<32x256xf32>
    %205 = arith.mulf %202, %204 : vector<32x256xf32>
    %cst_67 = arith.constant dense<0.000000e+00> : vector<256xf32>
    %206 = vector.multi_reduction <add>, %205, %cst_67 [0] : vector<32x256xf32> to vector<256xf32>
    %207 = vector.shape_cast %206 : vector<256xf32> to vector<1x256xf32>
    %cst_68 = arith.constant 3.125000e-02 : f32
    %208 = vector.broadcast %cst_68 : f32 to vector<1x256xf32>
    %209 = arith.mulf %207, %208 : vector<1x256xf32>
    %cst_69 = arith.constant dense<0xFF800000> : vector<256xf32>
    %210 = vector.multi_reduction <maximumf>, %205, %cst_69 [0] : vector<32x256xf32> to vector<256xf32>
    %211 = vector.shape_cast %210 : vector<256xf32> to vector<1x256xf32>
    %c2_i32_70 = arith.constant 2 : i32
    %212 = vector.broadcast %c2_i32_70 : i32 to vector<8x256xi32>
    %213 = arith.cmpi eq, %160, %212 : vector<8x256xi32>
    %214 = vector.shape_cast %209 : vector<1x256xf32> to vector<1x256xf32>
    %215 = vector.broadcast %214 : vector<1x256xf32> to vector<8x256xf32>
    %216 = arith.select %213, %215, %197 : vector<8x256xi1>, vector<8x256xf32>
    %217 = vector.shape_cast %211 : vector<1x256xf32> to vector<1x256xf32>
    %218 = vector.broadcast %217 : vector<1x256xf32> to vector<8x256xf32>
    %219 = arith.select %213, %218, %200 : vector<8x256xi1>, vector<8x256xf32>
    %c3_71 = arith.constant 3 : index
    %c0_72 = arith.constant 0 : index
    %c0_73 = arith.constant 0 : index
    %220 = vector.load %arg1[%c3_71, %c0_72, %c0_73] : memref<8x32x256xf32, #tpu.memory_space<vmem>>, vector<1x32x256xf32>
    %221 = vector.shape_cast %220 : vector<1x32x256xf32> to vector<32x256xf32>
    %222 = vector.extract_strided_slice %159 {offsets = [0, 3], sizes = [32, 1], strides = [1, 1]} : vector<32x8xf32> to vector<32x1xf32>
    %223 = vector.broadcast %222 : vector<32x1xf32> to vector<32x256xf32>
    %224 = arith.mulf %221, %223 : vector<32x256xf32>
    %cst_74 = arith.constant dense<0.000000e+00> : vector<256xf32>
    %225 = vector.multi_reduction <add>, %224, %cst_74 [0] : vector<32x256xf32> to vector<256xf32>
    %226 = vector.shape_cast %225 : vector<256xf32> to vector<1x256xf32>
    %cst_75 = arith.constant 3.125000e-02 : f32
    %227 = vector.broadcast %cst_75 : f32 to vector<1x256xf32>
    %228 = arith.mulf %226, %227 : vector<1x256xf32>
    %cst_76 = arith.constant dense<0xFF800000> : vector<256xf32>
    %229 = vector.multi_reduction <maximumf>, %224, %cst_76 [0] : vector<32x256xf32> to vector<256xf32>
    %230 = vector.shape_cast %229 : vector<256xf32> to vector<1x256xf32>
    %c3_i32_77 = arith.constant 3 : i32
    %231 = vector.broadcast %c3_i32_77 : i32 to vector<8x256xi32>
    %232 = arith.cmpi eq, %160, %231 : vector<8x256xi32>
    %233 = vector.shape_cast %228 : vector<1x256xf32> to vector<1x256xf32>
    %234 = vector.broadcast %233 : vector<1x256xf32> to vector<8x256xf32>
    %235 = arith.select %232, %234, %216 : vector<8x256xi1>, vector<8x256xf32>
    %236 = vector.shape_cast %230 : vector<1x256xf32> to vector<1x256xf32>
    %237 = vector.broadcast %236 : vector<1x256xf32> to vector<8x256xf32>
    %238 = arith.select %232, %237, %219 : vector<8x256xi1>, vector<8x256xf32>
    %c4_78 = arith.constant 4 : index
    %c0_79 = arith.constant 0 : index
    %c0_80 = arith.constant 0 : index
    %239 = vector.load %arg1[%c4_78, %c0_79, %c0_80] : memref<8x32x256xf32, #tpu.memory_space<vmem>>, vector<1x32x256xf32>
    %240 = vector.shape_cast %239 : vector<1x32x256xf32> to vector<32x256xf32>
    %241 = vector.extract_strided_slice %159 {offsets = [0, 4], sizes = [32, 1], strides = [1, 1]} : vector<32x8xf32> to vector<32x1xf32>
    %242 = vector.broadcast %241 : vector<32x1xf32> to vector<32x256xf32>
    %243 = arith.mulf %240, %242 : vector<32x256xf32>
    %cst_81 = arith.constant dense<0.000000e+00> : vector<256xf32>
    %244 = vector.multi_reduction <add>, %243, %cst_81 [0] : vector<32x256xf32> to vector<256xf32>
    %245 = vector.shape_cast %244 : vector<256xf32> to vector<1x256xf32>
    %cst_82 = arith.constant 3.125000e-02 : f32
    %246 = vector.broadcast %cst_82 : f32 to vector<1x256xf32>
    %247 = arith.mulf %245, %246 : vector<1x256xf32>
    %cst_83 = arith.constant dense<0xFF800000> : vector<256xf32>
    %248 = vector.multi_reduction <maximumf>, %243, %cst_83 [0] : vector<32x256xf32> to vector<256xf32>
    %249 = vector.shape_cast %248 : vector<256xf32> to vector<1x256xf32>
    %c4_i32_84 = arith.constant 4 : i32
    %250 = vector.broadcast %c4_i32_84 : i32 to vector<8x256xi32>
    %251 = arith.cmpi eq, %160, %250 : vector<8x256xi32>
    %252 = vector.shape_cast %247 : vector<1x256xf32> to vector<1x256xf32>
    %253 = vector.broadcast %252 : vector<1x256xf32> to vector<8x256xf32>
    %254 = arith.select %251, %253, %235 : vector<8x256xi1>, vector<8x256xf32>
    %255 = vector.shape_cast %249 : vector<1x256xf32> to vector<1x256xf32>
    %256 = vector.broadcast %255 : vector<1x256xf32> to vector<8x256xf32>
    %257 = arith.select %251, %256, %238 : vector<8x256xi1>, vector<8x256xf32>
    %c5_85 = arith.constant 5 : index
    %c0_86 = arith.constant 0 : index
    %c0_87 = arith.constant 0 : index
    %258 = vector.load %arg1[%c5_85, %c0_86, %c0_87] : memref<8x32x256xf32, #tpu.memory_space<vmem>>, vector<1x32x256xf32>
    %259 = vector.shape_cast %258 : vector<1x32x256xf32> to vector<32x256xf32>
    %260 = vector.extract_strided_slice %159 {offsets = [0, 5], sizes = [32, 1], strides = [1, 1]} : vector<32x8xf32> to vector<32x1xf32>
    %261 = vector.broadcast %260 : vector<32x1xf32> to vector<32x256xf32>
    %262 = arith.mulf %259, %261 : vector<32x256xf32>
    %cst_88 = arith.constant dense<0.000000e+00> : vector<256xf32>
    %263 = vector.multi_reduction <add>, %262, %cst_88 [0] : vector<32x256xf32> to vector<256xf32>
    %264 = vector.shape_cast %263 : vector<256xf32> to vector<1x256xf32>
    %cst_89 = arith.constant 3.125000e-02 : f32
    %265 = vector.broadcast %cst_89 : f32 to vector<1x256xf32>
    %266 = arith.mulf %264, %265 : vector<1x256xf32>
    %cst_90 = arith.constant dense<0xFF800000> : vector<256xf32>
    %267 = vector.multi_reduction <maximumf>, %262, %cst_90 [0] : vector<32x256xf32> to vector<256xf32>
    %268 = vector.shape_cast %267 : vector<256xf32> to vector<1x256xf32>
    %c5_i32_91 = arith.constant 5 : i32
    %269 = vector.broadcast %c5_i32_91 : i32 to vector<8x256xi32>
    %270 = arith.cmpi eq, %160, %269 : vector<8x256xi32>
    %271 = vector.shape_cast %266 : vector<1x256xf32> to vector<1x256xf32>
    %272 = vector.broadcast %271 : vector<1x256xf32> to vector<8x256xf32>
    %273 = arith.select %270, %272, %254 : vector<8x256xi1>, vector<8x256xf32>
    %274 = vector.shape_cast %268 : vector<1x256xf32> to vector<1x256xf32>
    %275 = vector.broadcast %274 : vector<1x256xf32> to vector<8x256xf32>
    %276 = arith.select %270, %275, %257 : vector<8x256xi1>, vector<8x256xf32>
    %c6_92 = arith.constant 6 : index
    %c0_93 = arith.constant 0 : index
    %c0_94 = arith.constant 0 : index
    %277 = vector.load %arg1[%c6_92, %c0_93, %c0_94] : memref<8x32x256xf32, #tpu.memory_space<vmem>>, vector<1x32x256xf32>
    %278 = vector.shape_cast %277 : vector<1x32x256xf32> to vector<32x256xf32>
    %279 = vector.extract_strided_slice %159 {offsets = [0, 6], sizes = [32, 1], strides = [1, 1]} : vector<32x8xf32> to vector<32x1xf32>
    %280 = vector.broadcast %279 : vector<32x1xf32> to vector<32x256xf32>
    %281 = arith.mulf %278, %280 : vector<32x256xf32>
    %cst_95 = arith.constant dense<0.000000e+00> : vector<256xf32>
    %282 = vector.multi_reduction <add>, %281, %cst_95 [0] : vector<32x256xf32> to vector<256xf32>
    %283 = vector.shape_cast %282 : vector<256xf32> to vector<1x256xf32>
    %cst_96 = arith.constant 3.125000e-02 : f32
    %284 = vector.broadcast %cst_96 : f32 to vector<1x256xf32>
    %285 = arith.mulf %283, %284 : vector<1x256xf32>
    %cst_97 = arith.constant dense<0xFF800000> : vector<256xf32>
    %286 = vector.multi_reduction <maximumf>, %281, %cst_97 [0] : vector<32x256xf32> to vector<256xf32>
    %287 = vector.shape_cast %286 : vector<256xf32> to vector<1x256xf32>
    %c6_i32_98 = arith.constant 6 : i32
    %288 = vector.broadcast %c6_i32_98 : i32 to vector<8x256xi32>
    %289 = arith.cmpi eq, %160, %288 : vector<8x256xi32>
    %290 = vector.shape_cast %285 : vector<1x256xf32> to vector<1x256xf32>
    %291 = vector.broadcast %290 : vector<1x256xf32> to vector<8x256xf32>
    %292 = arith.select %289, %291, %273 : vector<8x256xi1>, vector<8x256xf32>
    %293 = vector.shape_cast %287 : vector<1x256xf32> to vector<1x256xf32>
    %294 = vector.broadcast %293 : vector<1x256xf32> to vector<8x256xf32>
    %295 = arith.select %289, %294, %276 : vector<8x256xi1>, vector<8x256xf32>
    %c7_99 = arith.constant 7 : index
    %c0_100 = arith.constant 0 : index
    %c0_101 = arith.constant 0 : index
    %296 = vector.load %arg1[%c7_99, %c0_100, %c0_101] : memref<8x32x256xf32, #tpu.memory_space<vmem>>, vector<1x32x256xf32>
    %297 = vector.shape_cast %296 : vector<1x32x256xf32> to vector<32x256xf32>
    %298 = vector.extract_strided_slice %159 {offsets = [0, 7], sizes = [32, 1], strides = [1, 1]} : vector<32x8xf32> to vector<32x1xf32>
    %299 = vector.broadcast %298 : vector<32x1xf32> to vector<32x256xf32>
    %300 = arith.mulf %297, %299 : vector<32x256xf32>
    %cst_102 = arith.constant dense<0.000000e+00> : vector<256xf32>
    %301 = vector.multi_reduction <add>, %300, %cst_102 [0] : vector<32x256xf32> to vector<256xf32>
    %302 = vector.shape_cast %301 : vector<256xf32> to vector<1x256xf32>
    %cst_103 = arith.constant 3.125000e-02 : f32
    %303 = vector.broadcast %cst_103 : f32 to vector<1x256xf32>
    %304 = arith.mulf %302, %303 : vector<1x256xf32>
    %cst_104 = arith.constant dense<0xFF800000> : vector<256xf32>
    %305 = vector.multi_reduction <maximumf>, %300, %cst_104 [0] : vector<32x256xf32> to vector<256xf32>
    %306 = vector.shape_cast %305 : vector<256xf32> to vector<1x256xf32>
    %c7_i32_105 = arith.constant 7 : i32
    %307 = vector.broadcast %c7_i32_105 : i32 to vector<8x256xi32>
    %308 = arith.cmpi eq, %160, %307 : vector<8x256xi32>
    %309 = vector.shape_cast %304 : vector<1x256xf32> to vector<1x256xf32>
    %310 = vector.broadcast %309 : vector<1x256xf32> to vector<8x256xf32>
    %311 = arith.select %308, %310, %292 : vector<8x256xi1>, vector<8x256xf32>
    %312 = vector.shape_cast %306 : vector<1x256xf32> to vector<1x256xf32>
    %313 = vector.broadcast %312 : vector<1x256xf32> to vector<8x256xf32>
    %314 = arith.select %308, %313, %295 : vector<8x256xi1>, vector<8x256xf32>
    %315 = tpu.iota {dimensions = array<i32: 1>} : vector<8x256xi32>
    %c15_i32_106 = arith.constant 15 : i32
    %316 = vector.broadcast %c15_i32_106 : i32 to vector<8x256xi32>
    %317 = arith.andi %315, %316 : vector<8x256xi32>
    %c3_i32_107 = arith.constant 3 : i32
    %318 = tpu.dynamic_rotate %311 by %c3_i32_107 dim 1 : vector<8x256xf32>, i32 -> vector<8x256xf32>
    %c3_i32_108 = arith.constant 3 : i32
    %319 = tpu.dynamic_rotate %314 by %c3_i32_108 dim 1 : vector<8x256xf32>, i32 -> vector<8x256xf32>
    %c3_i32_109 = arith.constant 3 : i32
    %320 = vector.broadcast %c3_i32_109 : i32 to vector<8x256xi32>
    %321 = arith.cmpi sge, %317, %320 : vector<8x256xi32>
    %cst_110 = arith.constant 0.000000e+00 : f32
    %322 = vector.broadcast %cst_110 : f32 to vector<8x256xf32>
    %323 = arith.select %321, %318, %322 : vector<8x256xi1>, vector<8x256xf32>
    %cst_111 = arith.constant 0.000000e+00 : f32
    %324 = vector.broadcast %cst_111 : f32 to vector<8x256xf32>
    %325 = arith.select %321, %319, %324 : vector<8x256xi1>, vector<8x256xf32>
    %c0_112 = arith.constant 0 : index
    %326 = memref.load %arg4[%c0_112] : memref<98xf32, #tpu.memory_space<smem>>
    %c49 = arith.constant 49 : index
    %327 = memref.load %arg4[%c49] : memref<98xf32, #tpu.memory_space<smem>>
    %328 = vector.broadcast %326 : f32 to vector<8x256xf32>
    %329 = arith.mulf %328, %323 : vector<8x256xf32>
    %330 = vector.broadcast %327 : f32 to vector<8x256xf32>
    %331 = arith.mulf %330, %325 : vector<8x256xf32>
    %332 = arith.addf %329, %331 : vector<8x256xf32>
    %c7_113 = arith.constant 7 : index
    %333 = memref.load %arg4[%c7_113] : memref<98xf32, #tpu.memory_space<smem>>
    %c56 = arith.constant 56 : index
    %334 = memref.load %arg4[%c56] : memref<98xf32, #tpu.memory_space<smem>>
    %335 = vector.broadcast %333 : f32 to vector<8x256xf32>
    %336 = arith.mulf %335, %323 : vector<8x256xf32>
    %337 = vector.broadcast %334 : f32 to vector<8x256xf32>
    %338 = arith.mulf %337, %325 : vector<8x256xf32>
    %339 = arith.addf %336, %338 : vector<8x256xf32>
    %c14 = arith.constant 14 : index
    %340 = memref.load %arg4[%c14] : memref<98xf32, #tpu.memory_space<smem>>
    %c63 = arith.constant 63 : index
    %341 = memref.load %arg4[%c63] : memref<98xf32, #tpu.memory_space<smem>>
    %342 = vector.broadcast %340 : f32 to vector<8x256xf32>
    %343 = arith.mulf %342, %323 : vector<8x256xf32>
    %344 = vector.broadcast %341 : f32 to vector<8x256xf32>
    %345 = arith.mulf %344, %325 : vector<8x256xf32>
    %346 = arith.addf %343, %345 : vector<8x256xf32>
    %c21 = arith.constant 21 : index
    %347 = memref.load %arg4[%c21] : memref<98xf32, #tpu.memory_space<smem>>
    %c70 = arith.constant 70 : index
    %348 = memref.load %arg4[%c70] : memref<98xf32, #tpu.memory_space<smem>>
    %349 = vector.broadcast %347 : f32 to vector<8x256xf32>
    %350 = arith.mulf %349, %323 : vector<8x256xf32>
    %351 = vector.broadcast %348 : f32 to vector<8x256xf32>
    %352 = arith.mulf %351, %325 : vector<8x256xf32>
    %353 = arith.addf %350, %352 : vector<8x256xf32>
    %c28 = arith.constant 28 : index
    %354 = memref.load %arg4[%c28] : memref<98xf32, #tpu.memory_space<smem>>
    %c77 = arith.constant 77 : index
    %355 = memref.load %arg4[%c77] : memref<98xf32, #tpu.memory_space<smem>>
    %356 = vector.broadcast %354 : f32 to vector<8x256xf32>
    %357 = arith.mulf %356, %323 : vector<8x256xf32>
    %358 = vector.broadcast %355 : f32 to vector<8x256xf32>
    %359 = arith.mulf %358, %325 : vector<8x256xf32>
    %360 = arith.addf %357, %359 : vector<8x256xf32>
    %c35 = arith.constant 35 : index
    %361 = memref.load %arg4[%c35] : memref<98xf32, #tpu.memory_space<smem>>
    %c84 = arith.constant 84 : index
    %362 = memref.load %arg4[%c84] : memref<98xf32, #tpu.memory_space<smem>>
    %363 = vector.broadcast %361 : f32 to vector<8x256xf32>
    %364 = arith.mulf %363, %323 : vector<8x256xf32>
    %365 = vector.broadcast %362 : f32 to vector<8x256xf32>
    %366 = arith.mulf %365, %325 : vector<8x256xf32>
    %367 = arith.addf %364, %366 : vector<8x256xf32>
    %c42 = arith.constant 42 : index
    %368 = memref.load %arg4[%c42] : memref<98xf32, #tpu.memory_space<smem>>
    %c91 = arith.constant 91 : index
    %369 = memref.load %arg4[%c91] : memref<98xf32, #tpu.memory_space<smem>>
    %370 = vector.broadcast %368 : f32 to vector<8x256xf32>
    %371 = arith.mulf %370, %323 : vector<8x256xf32>
    %372 = vector.broadcast %369 : f32 to vector<8x256xf32>
    %373 = arith.mulf %372, %325 : vector<8x256xf32>
    %374 = arith.addf %371, %373 : vector<8x256xf32>
    %c2_i32_114 = arith.constant 2 : i32
    %375 = tpu.dynamic_rotate %311 by %c2_i32_114 dim 1 : vector<8x256xf32>, i32 -> vector<8x256xf32>
    %c2_i32_115 = arith.constant 2 : i32
    %376 = tpu.dynamic_rotate %314 by %c2_i32_115 dim 1 : vector<8x256xf32>, i32 -> vector<8x256xf32>
    %c2_i32_116 = arith.constant 2 : i32
    %377 = vector.broadcast %c2_i32_116 : i32 to vector<8x256xi32>
    %378 = arith.cmpi sge, %317, %377 : vector<8x256xi32>
    %cst_117 = arith.constant 0.000000e+00 : f32
    %379 = vector.broadcast %cst_117 : f32 to vector<8x256xf32>
    %380 = arith.select %378, %375, %379 : vector<8x256xi1>, vector<8x256xf32>
    %cst_118 = arith.constant 0.000000e+00 : f32
    %381 = vector.broadcast %cst_118 : f32 to vector<8x256xf32>
    %382 = arith.select %378, %376, %381 : vector<8x256xi1>, vector<8x256xf32>
    %c1_119 = arith.constant 1 : index
    %383 = memref.load %arg4[%c1_119] : memref<98xf32, #tpu.memory_space<smem>>
    %c50 = arith.constant 50 : index
    %384 = memref.load %arg4[%c50] : memref<98xf32, #tpu.memory_space<smem>>
    %385 = vector.broadcast %383 : f32 to vector<8x256xf32>
    %386 = arith.mulf %385, %380 : vector<8x256xf32>
    %387 = vector.broadcast %384 : f32 to vector<8x256xf32>
    %388 = arith.mulf %387, %382 : vector<8x256xf32>
    %389 = arith.addf %386, %388 : vector<8x256xf32>
    %390 = arith.addf %332, %389 : vector<8x256xf32>
    %c8 = arith.constant 8 : index
    %391 = memref.load %arg4[%c8] : memref<98xf32, #tpu.memory_space<smem>>
    %c57 = arith.constant 57 : index
    %392 = memref.load %arg4[%c57] : memref<98xf32, #tpu.memory_space<smem>>
    %393 = vector.broadcast %391 : f32 to vector<8x256xf32>
    %394 = arith.mulf %393, %380 : vector<8x256xf32>
    %395 = vector.broadcast %392 : f32 to vector<8x256xf32>
    %396 = arith.mulf %395, %382 : vector<8x256xf32>
    %397 = arith.addf %394, %396 : vector<8x256xf32>
    %398 = arith.addf %339, %397 : vector<8x256xf32>
    %c15 = arith.constant 15 : index
    %399 = memref.load %arg4[%c15] : memref<98xf32, #tpu.memory_space<smem>>
    %c64 = arith.constant 64 : index
    %400 = memref.load %arg4[%c64] : memref<98xf32, #tpu.memory_space<smem>>
    %401 = vector.broadcast %399 : f32 to vector<8x256xf32>
    %402 = arith.mulf %401, %380 : vector<8x256xf32>
    %403 = vector.broadcast %400 : f32 to vector<8x256xf32>
    %404 = arith.mulf %403, %382 : vector<8x256xf32>
    %405 = arith.addf %402, %404 : vector<8x256xf32>
    %406 = arith.addf %346, %405 : vector<8x256xf32>
    %c22 = arith.constant 22 : index
    %407 = memref.load %arg4[%c22] : memref<98xf32, #tpu.memory_space<smem>>
    %c71 = arith.constant 71 : index
    %408 = memref.load %arg4[%c71] : memref<98xf32, #tpu.memory_space<smem>>
    %409 = vector.broadcast %407 : f32 to vector<8x256xf32>
    %410 = arith.mulf %409, %380 : vector<8x256xf32>
    %411 = vector.broadcast %408 : f32 to vector<8x256xf32>
    %412 = arith.mulf %411, %382 : vector<8x256xf32>
    %413 = arith.addf %410, %412 : vector<8x256xf32>
    %414 = arith.addf %353, %413 : vector<8x256xf32>
    %c29 = arith.constant 29 : index
    %415 = memref.load %arg4[%c29] : memref<98xf32, #tpu.memory_space<smem>>
    %c78 = arith.constant 78 : index
    %416 = memref.load %arg4[%c78] : memref<98xf32, #tpu.memory_space<smem>>
    %417 = vector.broadcast %415 : f32 to vector<8x256xf32>
    %418 = arith.mulf %417, %380 : vector<8x256xf32>
    %419 = vector.broadcast %416 : f32 to vector<8x256xf32>
    %420 = arith.mulf %419, %382 : vector<8x256xf32>
    %421 = arith.addf %418, %420 : vector<8x256xf32>
    %422 = arith.addf %360, %421 : vector<8x256xf32>
    %c36 = arith.constant 36 : index
    %423 = memref.load %arg4[%c36] : memref<98xf32, #tpu.memory_space<smem>>
    %c85 = arith.constant 85 : index
    %424 = memref.load %arg4[%c85] : memref<98xf32, #tpu.memory_space<smem>>
    %425 = vector.broadcast %423 : f32 to vector<8x256xf32>
    %426 = arith.mulf %425, %380 : vector<8x256xf32>
    %427 = vector.broadcast %424 : f32 to vector<8x256xf32>
    %428 = arith.mulf %427, %382 : vector<8x256xf32>
    %429 = arith.addf %426, %428 : vector<8x256xf32>
    %430 = arith.addf %367, %429 : vector<8x256xf32>
    %c43 = arith.constant 43 : index
    %431 = memref.load %arg4[%c43] : memref<98xf32, #tpu.memory_space<smem>>
    %c92 = arith.constant 92 : index
    %432 = memref.load %arg4[%c92] : memref<98xf32, #tpu.memory_space<smem>>
    %433 = vector.broadcast %431 : f32 to vector<8x256xf32>
    %434 = arith.mulf %433, %380 : vector<8x256xf32>
    %435 = vector.broadcast %432 : f32 to vector<8x256xf32>
    %436 = arith.mulf %435, %382 : vector<8x256xf32>
    %437 = arith.addf %434, %436 : vector<8x256xf32>
    %438 = arith.addf %374, %437 : vector<8x256xf32>
    %c1_i32_120 = arith.constant 1 : i32
    %439 = tpu.dynamic_rotate %311 by %c1_i32_120 dim 1 : vector<8x256xf32>, i32 -> vector<8x256xf32>
    %c1_i32_121 = arith.constant 1 : i32
    %440 = tpu.dynamic_rotate %314 by %c1_i32_121 dim 1 : vector<8x256xf32>, i32 -> vector<8x256xf32>
    %c1_i32_122 = arith.constant 1 : i32
    %441 = vector.broadcast %c1_i32_122 : i32 to vector<8x256xi32>
    %442 = arith.cmpi sge, %317, %441 : vector<8x256xi32>
    %cst_123 = arith.constant 0.000000e+00 : f32
    %443 = vector.broadcast %cst_123 : f32 to vector<8x256xf32>
    %444 = arith.select %442, %439, %443 : vector<8x256xi1>, vector<8x256xf32>
    %cst_124 = arith.constant 0.000000e+00 : f32
    %445 = vector.broadcast %cst_124 : f32 to vector<8x256xf32>
    %446 = arith.select %442, %440, %445 : vector<8x256xi1>, vector<8x256xf32>
    %c2_125 = arith.constant 2 : index
    %447 = memref.load %arg4[%c2_125] : memref<98xf32, #tpu.memory_space<smem>>
    %c51 = arith.constant 51 : index
    %448 = memref.load %arg4[%c51] : memref<98xf32, #tpu.memory_space<smem>>
    %449 = vector.broadcast %447 : f32 to vector<8x256xf32>
    %450 = arith.mulf %449, %444 : vector<8x256xf32>
    %451 = vector.broadcast %448 : f32 to vector<8x256xf32>
    %452 = arith.mulf %451, %446 : vector<8x256xf32>
    %453 = arith.addf %450, %452 : vector<8x256xf32>
    %454 = arith.addf %390, %453 : vector<8x256xf32>
    %c9 = arith.constant 9 : index
    %455 = memref.load %arg4[%c9] : memref<98xf32, #tpu.memory_space<smem>>
    %c58 = arith.constant 58 : index
    %456 = memref.load %arg4[%c58] : memref<98xf32, #tpu.memory_space<smem>>
    %457 = vector.broadcast %455 : f32 to vector<8x256xf32>
    %458 = arith.mulf %457, %444 : vector<8x256xf32>
    %459 = vector.broadcast %456 : f32 to vector<8x256xf32>
    %460 = arith.mulf %459, %446 : vector<8x256xf32>
    %461 = arith.addf %458, %460 : vector<8x256xf32>
    %462 = arith.addf %398, %461 : vector<8x256xf32>
    %c16 = arith.constant 16 : index
    %463 = memref.load %arg4[%c16] : memref<98xf32, #tpu.memory_space<smem>>
    %c65 = arith.constant 65 : index
    %464 = memref.load %arg4[%c65] : memref<98xf32, #tpu.memory_space<smem>>
    %465 = vector.broadcast %463 : f32 to vector<8x256xf32>
    %466 = arith.mulf %465, %444 : vector<8x256xf32>
    %467 = vector.broadcast %464 : f32 to vector<8x256xf32>
    %468 = arith.mulf %467, %446 : vector<8x256xf32>
    %469 = arith.addf %466, %468 : vector<8x256xf32>
    %470 = arith.addf %406, %469 : vector<8x256xf32>
    %c23 = arith.constant 23 : index
    %471 = memref.load %arg4[%c23] : memref<98xf32, #tpu.memory_space<smem>>
    %c72 = arith.constant 72 : index
    %472 = memref.load %arg4[%c72] : memref<98xf32, #tpu.memory_space<smem>>
    %473 = vector.broadcast %471 : f32 to vector<8x256xf32>
    %474 = arith.mulf %473, %444 : vector<8x256xf32>
    %475 = vector.broadcast %472 : f32 to vector<8x256xf32>
    %476 = arith.mulf %475, %446 : vector<8x256xf32>
    %477 = arith.addf %474, %476 : vector<8x256xf32>
    %478 = arith.addf %414, %477 : vector<8x256xf32>
    %c30 = arith.constant 30 : index
    %479 = memref.load %arg4[%c30] : memref<98xf32, #tpu.memory_space<smem>>
    %c79 = arith.constant 79 : index
    %480 = memref.load %arg4[%c79] : memref<98xf32, #tpu.memory_space<smem>>
    %481 = vector.broadcast %479 : f32 to vector<8x256xf32>
    %482 = arith.mulf %481, %444 : vector<8x256xf32>
    %483 = vector.broadcast %480 : f32 to vector<8x256xf32>
    %484 = arith.mulf %483, %446 : vector<8x256xf32>
    %485 = arith.addf %482, %484 : vector<8x256xf32>
    %486 = arith.addf %422, %485 : vector<8x256xf32>
    %c37 = arith.constant 37 : index
    %487 = memref.load %arg4[%c37] : memref<98xf32, #tpu.memory_space<smem>>
    %c86 = arith.constant 86 : index
    %488 = memref.load %arg4[%c86] : memref<98xf32, #tpu.memory_space<smem>>
    %489 = vector.broadcast %487 : f32 to vector<8x256xf32>
    %490 = arith.mulf %489, %444 : vector<8x256xf32>
    %491 = vector.broadcast %488 : f32 to vector<8x256xf32>
    %492 = arith.mulf %491, %446 : vector<8x256xf32>
    %493 = arith.addf %490, %492 : vector<8x256xf32>
    %494 = arith.addf %430, %493 : vector<8x256xf32>
    %c44 = arith.constant 44 : index
    %495 = memref.load %arg4[%c44] : memref<98xf32, #tpu.memory_space<smem>>
    %c93 = arith.constant 93 : index
    %496 = memref.load %arg4[%c93] : memref<98xf32, #tpu.memory_space<smem>>
    %497 = vector.broadcast %495 : f32 to vector<8x256xf32>
    %498 = arith.mulf %497, %444 : vector<8x256xf32>
    %499 = vector.broadcast %496 : f32 to vector<8x256xf32>
    %500 = arith.mulf %499, %446 : vector<8x256xf32>
    %501 = arith.addf %498, %500 : vector<8x256xf32>
    %502 = arith.addf %438, %501 : vector<8x256xf32>
    %c3_126 = arith.constant 3 : index
    %503 = memref.load %arg4[%c3_126] : memref<98xf32, #tpu.memory_space<smem>>
    %c52 = arith.constant 52 : index
    %504 = memref.load %arg4[%c52] : memref<98xf32, #tpu.memory_space<smem>>
    %505 = vector.broadcast %503 : f32 to vector<8x256xf32>
    %506 = arith.mulf %505, %311 : vector<8x256xf32>
    %507 = vector.broadcast %504 : f32 to vector<8x256xf32>
    %508 = arith.mulf %507, %314 : vector<8x256xf32>
    %509 = arith.addf %506, %508 : vector<8x256xf32>
    %510 = arith.addf %454, %509 : vector<8x256xf32>
    %c10 = arith.constant 10 : index
    %511 = memref.load %arg4[%c10] : memref<98xf32, #tpu.memory_space<smem>>
    %c59 = arith.constant 59 : index
    %512 = memref.load %arg4[%c59] : memref<98xf32, #tpu.memory_space<smem>>
    %513 = vector.broadcast %511 : f32 to vector<8x256xf32>
    %514 = arith.mulf %513, %311 : vector<8x256xf32>
    %515 = vector.broadcast %512 : f32 to vector<8x256xf32>
    %516 = arith.mulf %515, %314 : vector<8x256xf32>
    %517 = arith.addf %514, %516 : vector<8x256xf32>
    %518 = arith.addf %462, %517 : vector<8x256xf32>
    %c17 = arith.constant 17 : index
    %519 = memref.load %arg4[%c17] : memref<98xf32, #tpu.memory_space<smem>>
    %c66 = arith.constant 66 : index
    %520 = memref.load %arg4[%c66] : memref<98xf32, #tpu.memory_space<smem>>
    %521 = vector.broadcast %519 : f32 to vector<8x256xf32>
    %522 = arith.mulf %521, %311 : vector<8x256xf32>
    %523 = vector.broadcast %520 : f32 to vector<8x256xf32>
    %524 = arith.mulf %523, %314 : vector<8x256xf32>
    %525 = arith.addf %522, %524 : vector<8x256xf32>
    %526 = arith.addf %470, %525 : vector<8x256xf32>
    %c24 = arith.constant 24 : index
    %527 = memref.load %arg4[%c24] : memref<98xf32, #tpu.memory_space<smem>>
    %c73 = arith.constant 73 : index
    %528 = memref.load %arg4[%c73] : memref<98xf32, #tpu.memory_space<smem>>
    %529 = vector.broadcast %527 : f32 to vector<8x256xf32>
    %530 = arith.mulf %529, %311 : vector<8x256xf32>
    %531 = vector.broadcast %528 : f32 to vector<8x256xf32>
    %532 = arith.mulf %531, %314 : vector<8x256xf32>
    %533 = arith.addf %530, %532 : vector<8x256xf32>
    %534 = arith.addf %478, %533 : vector<8x256xf32>
    %c31 = arith.constant 31 : index
    %535 = memref.load %arg4[%c31] : memref<98xf32, #tpu.memory_space<smem>>
    %c80 = arith.constant 80 : index
    %536 = memref.load %arg4[%c80] : memref<98xf32, #tpu.memory_space<smem>>
    %537 = vector.broadcast %535 : f32 to vector<8x256xf32>
    %538 = arith.mulf %537, %311 : vector<8x256xf32>
    %539 = vector.broadcast %536 : f32 to vector<8x256xf32>
    %540 = arith.mulf %539, %314 : vector<8x256xf32>
    %541 = arith.addf %538, %540 : vector<8x256xf32>
    %542 = arith.addf %486, %541 : vector<8x256xf32>
    %c38 = arith.constant 38 : index
    %543 = memref.load %arg4[%c38] : memref<98xf32, #tpu.memory_space<smem>>
    %c87 = arith.constant 87 : index
    %544 = memref.load %arg4[%c87] : memref<98xf32, #tpu.memory_space<smem>>
    %545 = vector.broadcast %543 : f32 to vector<8x256xf32>
    %546 = arith.mulf %545, %311 : vector<8x256xf32>
    %547 = vector.broadcast %544 : f32 to vector<8x256xf32>
    %548 = arith.mulf %547, %314 : vector<8x256xf32>
    %549 = arith.addf %546, %548 : vector<8x256xf32>
    %550 = arith.addf %494, %549 : vector<8x256xf32>
    %c45 = arith.constant 45 : index
    %551 = memref.load %arg4[%c45] : memref<98xf32, #tpu.memory_space<smem>>
    %c94 = arith.constant 94 : index
    %552 = memref.load %arg4[%c94] : memref<98xf32, #tpu.memory_space<smem>>
    %553 = vector.broadcast %551 : f32 to vector<8x256xf32>
    %554 = arith.mulf %553, %311 : vector<8x256xf32>
    %555 = vector.broadcast %552 : f32 to vector<8x256xf32>
    %556 = arith.mulf %555, %314 : vector<8x256xf32>
    %557 = arith.addf %554, %556 : vector<8x256xf32>
    %558 = arith.addf %502, %557 : vector<8x256xf32>
    %c255_i32 = arith.constant 255 : i32
    %559 = tpu.dynamic_rotate %311 by %c255_i32 dim 1 : vector<8x256xf32>, i32 -> vector<8x256xf32>
    %c255_i32_127 = arith.constant 255 : i32
    %560 = tpu.dynamic_rotate %314 by %c255_i32_127 dim 1 : vector<8x256xf32>, i32 -> vector<8x256xf32>
    %c15_i32_128 = arith.constant 15 : i32
    %561 = vector.broadcast %c15_i32_128 : i32 to vector<8x256xi32>
    %562 = arith.cmpi slt, %317, %561 : vector<8x256xi32>
    %cst_129 = arith.constant 0.000000e+00 : f32
    %563 = vector.broadcast %cst_129 : f32 to vector<8x256xf32>
    %564 = arith.select %562, %559, %563 : vector<8x256xi1>, vector<8x256xf32>
    %cst_130 = arith.constant 0.000000e+00 : f32
    %565 = vector.broadcast %cst_130 : f32 to vector<8x256xf32>
    %566 = arith.select %562, %560, %565 : vector<8x256xi1>, vector<8x256xf32>
    %c4_131 = arith.constant 4 : index
    %567 = memref.load %arg4[%c4_131] : memref<98xf32, #tpu.memory_space<smem>>
    %c53 = arith.constant 53 : index
    %568 = memref.load %arg4[%c53] : memref<98xf32, #tpu.memory_space<smem>>
    %569 = vector.broadcast %567 : f32 to vector<8x256xf32>
    %570 = arith.mulf %569, %564 : vector<8x256xf32>
    %571 = vector.broadcast %568 : f32 to vector<8x256xf32>
    %572 = arith.mulf %571, %566 : vector<8x256xf32>
    %573 = arith.addf %570, %572 : vector<8x256xf32>
    %574 = arith.addf %510, %573 : vector<8x256xf32>
    %c11 = arith.constant 11 : index
    %575 = memref.load %arg4[%c11] : memref<98xf32, #tpu.memory_space<smem>>
    %c60 = arith.constant 60 : index
    %576 = memref.load %arg4[%c60] : memref<98xf32, #tpu.memory_space<smem>>
    %577 = vector.broadcast %575 : f32 to vector<8x256xf32>
    %578 = arith.mulf %577, %564 : vector<8x256xf32>
    %579 = vector.broadcast %576 : f32 to vector<8x256xf32>
    %580 = arith.mulf %579, %566 : vector<8x256xf32>
    %581 = arith.addf %578, %580 : vector<8x256xf32>
    %582 = arith.addf %518, %581 : vector<8x256xf32>
    %c18 = arith.constant 18 : index
    %583 = memref.load %arg4[%c18] : memref<98xf32, #tpu.memory_space<smem>>
    %c67 = arith.constant 67 : index
    %584 = memref.load %arg4[%c67] : memref<98xf32, #tpu.memory_space<smem>>
    %585 = vector.broadcast %583 : f32 to vector<8x256xf32>
    %586 = arith.mulf %585, %564 : vector<8x256xf32>
    %587 = vector.broadcast %584 : f32 to vector<8x256xf32>
    %588 = arith.mulf %587, %566 : vector<8x256xf32>
    %589 = arith.addf %586, %588 : vector<8x256xf32>
    %590 = arith.addf %526, %589 : vector<8x256xf32>
    %c25 = arith.constant 25 : index
    %591 = memref.load %arg4[%c25] : memref<98xf32, #tpu.memory_space<smem>>
    %c74 = arith.constant 74 : index
    %592 = memref.load %arg4[%c74] : memref<98xf32, #tpu.memory_space<smem>>
    %593 = vector.broadcast %591 : f32 to vector<8x256xf32>
    %594 = arith.mulf %593, %564 : vector<8x256xf32>
    %595 = vector.broadcast %592 : f32 to vector<8x256xf32>
    %596 = arith.mulf %595, %566 : vector<8x256xf32>
    %597 = arith.addf %594, %596 : vector<8x256xf32>
    %598 = arith.addf %534, %597 : vector<8x256xf32>
    %c32 = arith.constant 32 : index
    %599 = memref.load %arg4[%c32] : memref<98xf32, #tpu.memory_space<smem>>
    %c81 = arith.constant 81 : index
    %600 = memref.load %arg4[%c81] : memref<98xf32, #tpu.memory_space<smem>>
    %601 = vector.broadcast %599 : f32 to vector<8x256xf32>
    %602 = arith.mulf %601, %564 : vector<8x256xf32>
    %603 = vector.broadcast %600 : f32 to vector<8x256xf32>
    %604 = arith.mulf %603, %566 : vector<8x256xf32>
    %605 = arith.addf %602, %604 : vector<8x256xf32>
    %606 = arith.addf %542, %605 : vector<8x256xf32>
    %c39 = arith.constant 39 : index
    %607 = memref.load %arg4[%c39] : memref<98xf32, #tpu.memory_space<smem>>
    %c88 = arith.constant 88 : index
    %608 = memref.load %arg4[%c88] : memref<98xf32, #tpu.memory_space<smem>>
    %609 = vector.broadcast %607 : f32 to vector<8x256xf32>
    %610 = arith.mulf %609, %564 : vector<8x256xf32>
    %611 = vector.broadcast %608 : f32 to vector<8x256xf32>
    %612 = arith.mulf %611, %566 : vector<8x256xf32>
    %613 = arith.addf %610, %612 : vector<8x256xf32>
    %614 = arith.addf %550, %613 : vector<8x256xf32>
    %c46 = arith.constant 46 : index
    %615 = memref.load %arg4[%c46] : memref<98xf32, #tpu.memory_space<smem>>
    %c95 = arith.constant 95 : index
    %616 = memref.load %arg4[%c95] : memref<98xf32, #tpu.memory_space<smem>>
    %617 = vector.broadcast %615 : f32 to vector<8x256xf32>
    %618 = arith.mulf %617, %564 : vector<8x256xf32>
    %619 = vector.broadcast %616 : f32 to vector<8x256xf32>
    %620 = arith.mulf %619, %566 : vector<8x256xf32>
    %621 = arith.addf %618, %620 : vector<8x256xf32>
    %622 = arith.addf %558, %621 : vector<8x256xf32>
    %c254_i32 = arith.constant 254 : i32
    %623 = tpu.dynamic_rotate %311 by %c254_i32 dim 1 : vector<8x256xf32>, i32 -> vector<8x256xf32>
    %c254_i32_132 = arith.constant 254 : i32
    %624 = tpu.dynamic_rotate %314 by %c254_i32_132 dim 1 : vector<8x256xf32>, i32 -> vector<8x256xf32>
    %c14_i32_133 = arith.constant 14 : i32
    %625 = vector.broadcast %c14_i32_133 : i32 to vector<8x256xi32>
    %626 = arith.cmpi slt, %317, %625 : vector<8x256xi32>
    %cst_134 = arith.constant 0.000000e+00 : f32
    %627 = vector.broadcast %cst_134 : f32 to vector<8x256xf32>
    %628 = arith.select %626, %623, %627 : vector<8x256xi1>, vector<8x256xf32>
    %cst_135 = arith.constant 0.000000e+00 : f32
    %629 = vector.broadcast %cst_135 : f32 to vector<8x256xf32>
    %630 = arith.select %626, %624, %629 : vector<8x256xi1>, vector<8x256xf32>
    %c5_136 = arith.constant 5 : index
    %631 = memref.load %arg4[%c5_136] : memref<98xf32, #tpu.memory_space<smem>>
    %c54 = arith.constant 54 : index
    %632 = memref.load %arg4[%c54] : memref<98xf32, #tpu.memory_space<smem>>
    %633 = vector.broadcast %631 : f32 to vector<8x256xf32>
    %634 = arith.mulf %633, %628 : vector<8x256xf32>
    %635 = vector.broadcast %632 : f32 to vector<8x256xf32>
    %636 = arith.mulf %635, %630 : vector<8x256xf32>
    %637 = arith.addf %634, %636 : vector<8x256xf32>
    %638 = arith.addf %574, %637 : vector<8x256xf32>
    %c12 = arith.constant 12 : index
    %639 = memref.load %arg4[%c12] : memref<98xf32, #tpu.memory_space<smem>>
    %c61 = arith.constant 61 : index
    %640 = memref.load %arg4[%c61] : memref<98xf32, #tpu.memory_space<smem>>
    %641 = vector.broadcast %639 : f32 to vector<8x256xf32>
    %642 = arith.mulf %641, %628 : vector<8x256xf32>
    %643 = vector.broadcast %640 : f32 to vector<8x256xf32>
    %644 = arith.mulf %643, %630 : vector<8x256xf32>
    %645 = arith.addf %642, %644 : vector<8x256xf32>
    %646 = arith.addf %582, %645 : vector<8x256xf32>
    %c19 = arith.constant 19 : index
    %647 = memref.load %arg4[%c19] : memref<98xf32, #tpu.memory_space<smem>>
    %c68 = arith.constant 68 : index
    %648 = memref.load %arg4[%c68] : memref<98xf32, #tpu.memory_space<smem>>
    %649 = vector.broadcast %647 : f32 to vector<8x256xf32>
    %650 = arith.mulf %649, %628 : vector<8x256xf32>
    %651 = vector.broadcast %648 : f32 to vector<8x256xf32>
    %652 = arith.mulf %651, %630 : vector<8x256xf32>
    %653 = arith.addf %650, %652 : vector<8x256xf32>
    %654 = arith.addf %590, %653 : vector<8x256xf32>
    %c26 = arith.constant 26 : index
    %655 = memref.load %arg4[%c26] : memref<98xf32, #tpu.memory_space<smem>>
    %c75 = arith.constant 75 : index
    %656 = memref.load %arg4[%c75] : memref<98xf32, #tpu.memory_space<smem>>
    %657 = vector.broadcast %655 : f32 to vector<8x256xf32>
    %658 = arith.mulf %657, %628 : vector<8x256xf32>
    %659 = vector.broadcast %656 : f32 to vector<8x256xf32>
    %660 = arith.mulf %659, %630 : vector<8x256xf32>
    %661 = arith.addf %658, %660 : vector<8x256xf32>
    %662 = arith.addf %598, %661 : vector<8x256xf32>
    %c33 = arith.constant 33 : index
    %663 = memref.load %arg4[%c33] : memref<98xf32, #tpu.memory_space<smem>>
    %c82 = arith.constant 82 : index
    %664 = memref.load %arg4[%c82] : memref<98xf32, #tpu.memory_space<smem>>
    %665 = vector.broadcast %663 : f32 to vector<8x256xf32>
    %666 = arith.mulf %665, %628 : vector<8x256xf32>
    %667 = vector.broadcast %664 : f32 to vector<8x256xf32>
    %668 = arith.mulf %667, %630 : vector<8x256xf32>
    %669 = arith.addf %666, %668 : vector<8x256xf32>
    %670 = arith.addf %606, %669 : vector<8x256xf32>
    %c40 = arith.constant 40 : index
    %671 = memref.load %arg4[%c40] : memref<98xf32, #tpu.memory_space<smem>>
    %c89 = arith.constant 89 : index
    %672 = memref.load %arg4[%c89] : memref<98xf32, #tpu.memory_space<smem>>
    %673 = vector.broadcast %671 : f32 to vector<8x256xf32>
    %674 = arith.mulf %673, %628 : vector<8x256xf32>
    %675 = vector.broadcast %672 : f32 to vector<8x256xf32>
    %676 = arith.mulf %675, %630 : vector<8x256xf32>
    %677 = arith.addf %674, %676 : vector<8x256xf32>
    %678 = arith.addf %614, %677 : vector<8x256xf32>
    %c47 = arith.constant 47 : index
    %679 = memref.load %arg4[%c47] : memref<98xf32, #tpu.memory_space<smem>>
    %c96 = arith.constant 96 : index
    %680 = memref.load %arg4[%c96] : memref<98xf32, #tpu.memory_space<smem>>
    %681 = vector.broadcast %679 : f32 to vector<8x256xf32>
    %682 = arith.mulf %681, %628 : vector<8x256xf32>
    %683 = vector.broadcast %680 : f32 to vector<8x256xf32>
    %684 = arith.mulf %683, %630 : vector<8x256xf32>
    %685 = arith.addf %682, %684 : vector<8x256xf32>
    %686 = arith.addf %622, %685 : vector<8x256xf32>
    %c253_i32 = arith.constant 253 : i32
    %687 = tpu.dynamic_rotate %311 by %c253_i32 dim 1 : vector<8x256xf32>, i32 -> vector<8x256xf32>
    %c253_i32_137 = arith.constant 253 : i32
    %688 = tpu.dynamic_rotate %314 by %c253_i32_137 dim 1 : vector<8x256xf32>, i32 -> vector<8x256xf32>
    %c13_i32_138 = arith.constant 13 : i32
    %689 = vector.broadcast %c13_i32_138 : i32 to vector<8x256xi32>
    %690 = arith.cmpi slt, %317, %689 : vector<8x256xi32>
    %cst_139 = arith.constant 0.000000e+00 : f32
    %691 = vector.broadcast %cst_139 : f32 to vector<8x256xf32>
    %692 = arith.select %690, %687, %691 : vector<8x256xi1>, vector<8x256xf32>
    %cst_140 = arith.constant 0.000000e+00 : f32
    %693 = vector.broadcast %cst_140 : f32 to vector<8x256xf32>
    %694 = arith.select %690, %688, %693 : vector<8x256xi1>, vector<8x256xf32>
    %c6_141 = arith.constant 6 : index
    %695 = memref.load %arg4[%c6_141] : memref<98xf32, #tpu.memory_space<smem>>
    %c55 = arith.constant 55 : index
    %696 = memref.load %arg4[%c55] : memref<98xf32, #tpu.memory_space<smem>>
    %697 = vector.broadcast %695 : f32 to vector<8x256xf32>
    %698 = arith.mulf %697, %692 : vector<8x256xf32>
    %699 = vector.broadcast %696 : f32 to vector<8x256xf32>
    %700 = arith.mulf %699, %694 : vector<8x256xf32>
    %701 = arith.addf %698, %700 : vector<8x256xf32>
    %702 = arith.addf %638, %701 : vector<8x256xf32>
    %c13 = arith.constant 13 : index
    %703 = memref.load %arg4[%c13] : memref<98xf32, #tpu.memory_space<smem>>
    %c62 = arith.constant 62 : index
    %704 = memref.load %arg4[%c62] : memref<98xf32, #tpu.memory_space<smem>>
    %705 = vector.broadcast %703 : f32 to vector<8x256xf32>
    %706 = arith.mulf %705, %692 : vector<8x256xf32>
    %707 = vector.broadcast %704 : f32 to vector<8x256xf32>
    %708 = arith.mulf %707, %694 : vector<8x256xf32>
    %709 = arith.addf %706, %708 : vector<8x256xf32>
    %710 = arith.addf %646, %709 : vector<8x256xf32>
    %c20 = arith.constant 20 : index
    %711 = memref.load %arg4[%c20] : memref<98xf32, #tpu.memory_space<smem>>
    %c69 = arith.constant 69 : index
    %712 = memref.load %arg4[%c69] : memref<98xf32, #tpu.memory_space<smem>>
    %713 = vector.broadcast %711 : f32 to vector<8x256xf32>
    %714 = arith.mulf %713, %692 : vector<8x256xf32>
    %715 = vector.broadcast %712 : f32 to vector<8x256xf32>
    %716 = arith.mulf %715, %694 : vector<8x256xf32>
    %717 = arith.addf %714, %716 : vector<8x256xf32>
    %718 = arith.addf %654, %717 : vector<8x256xf32>
    %c27 = arith.constant 27 : index
    %719 = memref.load %arg4[%c27] : memref<98xf32, #tpu.memory_space<smem>>
    %c76 = arith.constant 76 : index
    %720 = memref.load %arg4[%c76] : memref<98xf32, #tpu.memory_space<smem>>
    %721 = vector.broadcast %719 : f32 to vector<8x256xf32>
    %722 = arith.mulf %721, %692 : vector<8x256xf32>
    %723 = vector.broadcast %720 : f32 to vector<8x256xf32>
    %724 = arith.mulf %723, %694 : vector<8x256xf32>
    %725 = arith.addf %722, %724 : vector<8x256xf32>
    %726 = arith.addf %662, %725 : vector<8x256xf32>
    %c34 = arith.constant 34 : index
    %727 = memref.load %arg4[%c34] : memref<98xf32, #tpu.memory_space<smem>>
    %c83 = arith.constant 83 : index
    %728 = memref.load %arg4[%c83] : memref<98xf32, #tpu.memory_space<smem>>
    %729 = vector.broadcast %727 : f32 to vector<8x256xf32>
    %730 = arith.mulf %729, %692 : vector<8x256xf32>
    %731 = vector.broadcast %728 : f32 to vector<8x256xf32>
    %732 = arith.mulf %731, %694 : vector<8x256xf32>
    %733 = arith.addf %730, %732 : vector<8x256xf32>
    %734 = arith.addf %670, %733 : vector<8x256xf32>
    %c41 = arith.constant 41 : index
    %735 = memref.load %arg4[%c41] : memref<98xf32, #tpu.memory_space<smem>>
    %c90 = arith.constant 90 : index
    %736 = memref.load %arg4[%c90] : memref<98xf32, #tpu.memory_space<smem>>
    %737 = vector.broadcast %735 : f32 to vector<8x256xf32>
    %738 = arith.mulf %737, %692 : vector<8x256xf32>
    %739 = vector.broadcast %736 : f32 to vector<8x256xf32>
    %740 = arith.mulf %739, %694 : vector<8x256xf32>
    %741 = arith.addf %738, %740 : vector<8x256xf32>
    %742 = arith.addf %678, %741 : vector<8x256xf32>
    %c48 = arith.constant 48 : index
    %743 = memref.load %arg4[%c48] : memref<98xf32, #tpu.memory_space<smem>>
    %c97 = arith.constant 97 : index
    %744 = memref.load %arg4[%c97] : memref<98xf32, #tpu.memory_space<smem>>
    %745 = vector.broadcast %743 : f32 to vector<8x256xf32>
    %746 = arith.mulf %745, %692 : vector<8x256xf32>
    %747 = vector.broadcast %744 : f32 to vector<8x256xf32>
    %748 = arith.mulf %747, %694 : vector<8x256xf32>
    %749 = arith.addf %746, %748 : vector<8x256xf32>
    %750 = arith.addf %686, %749 : vector<8x256xf32>
    %c48_i32 = arith.constant 48 : i32
    %751 = tpu.dynamic_rotate %702 by %c48_i32 dim 1 : vector<8x256xf32>, i32 -> vector<8x256xf32>
    %c48_i32_142 = arith.constant 48 : i32
    %752 = vector.broadcast %c48_i32_142 : i32 to vector<8x256xi32>
    %753 = arith.cmpi sge, %315, %752 : vector<8x256xi32>
    %cst_143 = arith.constant 0.000000e+00 : f32
    %754 = vector.broadcast %cst_143 : f32 to vector<8x256xf32>
    %755 = arith.select %753, %751, %754 : vector<8x256xi1>, vector<8x256xf32>
    %c32_i32 = arith.constant 32 : i32
    %756 = tpu.dynamic_rotate %710 by %c32_i32 dim 1 : vector<8x256xf32>, i32 -> vector<8x256xf32>
    %c32_i32_144 = arith.constant 32 : i32
    %757 = vector.broadcast %c32_i32_144 : i32 to vector<8x256xi32>
    %758 = arith.cmpi sge, %315, %757 : vector<8x256xi32>
    %cst_145 = arith.constant 0.000000e+00 : f32
    %759 = vector.broadcast %cst_145 : f32 to vector<8x256xf32>
    %760 = arith.select %758, %756, %759 : vector<8x256xi1>, vector<8x256xf32>
    %c16_i32 = arith.constant 16 : i32
    %761 = tpu.dynamic_rotate %718 by %c16_i32 dim 1 : vector<8x256xf32>, i32 -> vector<8x256xf32>
    %c16_i32_146 = arith.constant 16 : i32
    %762 = vector.broadcast %c16_i32_146 : i32 to vector<8x256xi32>
    %763 = arith.cmpi sge, %315, %762 : vector<8x256xi32>
    %cst_147 = arith.constant 0.000000e+00 : f32
    %764 = vector.broadcast %cst_147 : f32 to vector<8x256xf32>
    %765 = arith.select %763, %761, %764 : vector<8x256xi1>, vector<8x256xf32>
    %c240_i32 = arith.constant 240 : i32
    %766 = tpu.dynamic_rotate %734 by %c240_i32 dim 1 : vector<8x256xf32>, i32 -> vector<8x256xf32>
    %c240_i32_148 = arith.constant 240 : i32
    %767 = vector.broadcast %c240_i32_148 : i32 to vector<8x256xi32>
    %768 = arith.cmpi slt, %315, %767 : vector<8x256xi32>
    %cst_149 = arith.constant 0.000000e+00 : f32
    %769 = vector.broadcast %cst_149 : f32 to vector<8x256xf32>
    %770 = arith.select %768, %766, %769 : vector<8x256xi1>, vector<8x256xf32>
    %c224_i32 = arith.constant 224 : i32
    %771 = tpu.dynamic_rotate %742 by %c224_i32 dim 1 : vector<8x256xf32>, i32 -> vector<8x256xf32>
    %c224_i32_150 = arith.constant 224 : i32
    %772 = vector.broadcast %c224_i32_150 : i32 to vector<8x256xi32>
    %773 = arith.cmpi slt, %315, %772 : vector<8x256xi32>
    %cst_151 = arith.constant 0.000000e+00 : f32
    %774 = vector.broadcast %cst_151 : f32 to vector<8x256xf32>
    %775 = arith.select %773, %771, %774 : vector<8x256xi1>, vector<8x256xf32>
    %c208_i32 = arith.constant 208 : i32
    %776 = tpu.dynamic_rotate %750 by %c208_i32 dim 1 : vector<8x256xf32>, i32 -> vector<8x256xf32>
    %c208_i32_152 = arith.constant 208 : i32
    %777 = vector.broadcast %c208_i32_152 : i32 to vector<8x256xi32>
    %778 = arith.cmpi slt, %315, %777 : vector<8x256xi32>
    %cst_153 = arith.constant 0.000000e+00 : f32
    %779 = vector.broadcast %cst_153 : f32 to vector<8x256xf32>
    %780 = arith.select %778, %776, %779 : vector<8x256xi1>, vector<8x256xf32>
    %781 = arith.addf %755, %760 : vector<8x256xf32>
    %782 = arith.addf %765, %726 : vector<8x256xf32>
    %783 = arith.addf %770, %775 : vector<8x256xf32>
    %784 = arith.addf %781, %782 : vector<8x256xf32>
    %785 = arith.addf %783, %780 : vector<8x256xf32>
    %786 = arith.addf %784, %785 : vector<8x256xf32>
    %787 = arith.negf %786 : vector<8x256xf32>
    %788 = math.exp %787 : vector<8x256xf32>
    %cst_154 = arith.constant 1.000000e+00 : f32
    %789 = vector.broadcast %cst_154 : f32 to vector<8x256xf32>
    %790 = arith.addf %789, %788 : vector<8x256xf32>
    %791 = arith.divf %789, %790 : vector<8x256xf32>
    %792 = vector.extract_strided_slice %791 {offsets = [0, 0], sizes = [1, 256], strides = [1, 1]} : vector<8x256xf32> to vector<1x256xf32>
    %793 = vector.broadcast %792 : vector<1x256xf32> to vector<32x256xf32>
    %794 = arith.mulf %167, %793 : vector<32x256xf32>
    %c0_155 = arith.constant 0 : index
    %c0_156 = arith.constant 0 : index
    %c0_157 = arith.constant 0 : index
    %795 = vector.load %arg5[%c0_155, %c0_156, %c0_157] : memref<8x32x256xf32, #tpu.memory_space<vmem>>, vector<1x32x256xf32>
    %796 = vector.shape_cast %795 : vector<1x32x256xf32> to vector<32x256xf32>
    %797 = vector.shape_cast %794 : vector<32x256xf32> to vector<1x32x256xf32>
    tpu.vector_store %arg5[%c0_155, %c0_156, %c0_157], %797 {strides = array<i32>} : memref<8x32x256xf32, #tpu.memory_space<vmem>>, vector<1x32x256xf32>,
    %798 = vector.extract_strided_slice %791 {offsets = [1, 0], sizes = [1, 256], strides = [1, 1]} : vector<8x256xf32> to vector<1x256xf32>
    %799 = vector.broadcast %798 : vector<1x256xf32> to vector<32x256xf32>
    %800 = arith.mulf %186, %799 : vector<32x256xf32>
    %c1_158 = arith.constant 1 : index
    %c0_159 = arith.constant 0 : index
    %c0_160 = arith.constant 0 : index
    %801 = vector.load %arg5[%c1_158, %c0_159, %c0_160] : memref<8x32x256xf32, #tpu.memory_space<vmem>>, vector<1x32x256xf32>
    %802 = vector.shape_cast %801 : vector<1x32x256xf32> to vector<32x256xf32>
    %803 = vector.shape_cast %800 : vector<32x256xf32> to vector<1x32x256xf32>
    tpu.vector_store %arg5[%c1_158, %c0_159, %c0_160], %803 {strides = array<i32>} : memref<8x32x256xf32, #tpu.memory_space<vmem>>, vector<1x32x256xf32>,
    %804 = vector.extract_strided_slice %791 {offsets = [2, 0], sizes = [1, 256], strides = [1, 1]} : vector<8x256xf32> to vector<1x256xf32>
    %805 = vector.broadcast %804 : vector<1x256xf32> to vector<32x256xf32>
    %806 = arith.mulf %205, %805 : vector<32x256xf32>
    %c2_161 = arith.constant 2 : index
    %c0_162 = arith.constant 0 : index
    %c0_163 = arith.constant 0 : index
    %807 = vector.load %arg5[%c2_161, %c0_162, %c0_163] : memref<8x32x256xf32, #tpu.memory_space<vmem>>, vector<1x32x256xf32>
    %808 = vector.shape_cast %807 : vector<1x32x256xf32> to vector<32x256xf32>
    %809 = vector.shape_cast %806 : vector<32x256xf32> to vector<1x32x256xf32>
    tpu.vector_store %arg5[%c2_161, %c0_162, %c0_163], %809 {strides = array<i32>} : memref<8x32x256xf32, #tpu.memory_space<vmem>>, vector<1x32x256xf32>,
    %810 = vector.extract_strided_slice %791 {offsets = [3, 0], sizes = [1, 256], strides = [1, 1]} : vector<8x256xf32> to vector<1x256xf32>
    %811 = vector.broadcast %810 : vector<1x256xf32> to vector<32x256xf32>
    %812 = arith.mulf %224, %811 : vector<32x256xf32>
    %c3_164 = arith.constant 3 : index
    %c0_165 = arith.constant 0 : index
    %c0_166 = arith.constant 0 : index
    %813 = vector.load %arg5[%c3_164, %c0_165, %c0_166] : memref<8x32x256xf32, #tpu.memory_space<vmem>>, vector<1x32x256xf32>
    %814 = vector.shape_cast %813 : vector<1x32x256xf32> to vector<32x256xf32>
    %815 = vector.shape_cast %812 : vector<32x256xf32> to vector<1x32x256xf32>
    tpu.vector_store %arg5[%c3_164, %c0_165, %c0_166], %815 {strides = array<i32>} : memref<8x32x256xf32, #tpu.memory_space<vmem>>, vector<1x32x256xf32>,
    %816 = vector.extract_strided_slice %791 {offsets = [4, 0], sizes = [1, 256], strides = [1, 1]} : vector<8x256xf32> to vector<1x256xf32>
    %817 = vector.broadcast %816 : vector<1x256xf32> to vector<32x256xf32>
    %818 = arith.mulf %243, %817 : vector<32x256xf32>
    %c4_167 = arith.constant 4 : index
    %c0_168 = arith.constant 0 : index
    %c0_169 = arith.constant 0 : index
    %819 = vector.load %arg5[%c4_167, %c0_168, %c0_169] : memref<8x32x256xf32, #tpu.memory_space<vmem>>, vector<1x32x256xf32>
    %820 = vector.shape_cast %819 : vector<1x32x256xf32> to vector<32x256xf32>
    %821 = vector.shape_cast %818 : vector<32x256xf32> to vector<1x32x256xf32>
    tpu.vector_store %arg5[%c4_167, %c0_168, %c0_169], %821 {strides = array<i32>} : memref<8x32x256xf32, #tpu.memory_space<vmem>>, vector<1x32x256xf32>,
    %822 = vector.extract_strided_slice %791 {offsets = [5, 0], sizes = [1, 256], strides = [1, 1]} : vector<8x256xf32> to vector<1x256xf32>
    %823 = vector.broadcast %822 : vector<1x256xf32> to vector<32x256xf32>
    %824 = arith.mulf %262, %823 : vector<32x256xf32>
    %c5_170 = arith.constant 5 : index
    %c0_171 = arith.constant 0 : index
    %c0_172 = arith.constant 0 : index
    %825 = vector.load %arg5[%c5_170, %c0_171, %c0_172] : memref<8x32x256xf32, #tpu.memory_space<vmem>>, vector<1x32x256xf32>
    %826 = vector.shape_cast %825 : vector<1x32x256xf32> to vector<32x256xf32>
    %827 = vector.shape_cast %824 : vector<32x256xf32> to vector<1x32x256xf32>
    tpu.vector_store %arg5[%c5_170, %c0_171, %c0_172], %827 {strides = array<i32>} : memref<8x32x256xf32, #tpu.memory_space<vmem>>, vector<1x32x256xf32>,
    %828 = vector.extract_strided_slice %791 {offsets = [6, 0], sizes = [1, 256], strides = [1, 1]} : vector<8x256xf32> to vector<1x256xf32>
    %829 = vector.broadcast %828 : vector<1x256xf32> to vector<32x256xf32>
    %830 = arith.mulf %281, %829 : vector<32x256xf32>
    %c6_173 = arith.constant 6 : index
    %c0_174 = arith.constant 0 : index
    %c0_175 = arith.constant 0 : index
    %831 = vector.load %arg5[%c6_173, %c0_174, %c0_175] : memref<8x32x256xf32, #tpu.memory_space<vmem>>, vector<1x32x256xf32>
    %832 = vector.shape_cast %831 : vector<1x32x256xf32> to vector<32x256xf32>
    %833 = vector.shape_cast %830 : vector<32x256xf32> to vector<1x32x256xf32>
    tpu.vector_store %arg5[%c6_173, %c0_174, %c0_175], %833 {strides = array<i32>} : memref<8x32x256xf32, #tpu.memory_space<vmem>>, vector<1x32x256xf32>,
    %834 = vector.extract_strided_slice %791 {offsets = [7, 0], sizes = [1, 256], strides = [1, 1]} : vector<8x256xf32> to vector<1x256xf32>
    %835 = vector.broadcast %834 : vector<1x256xf32> to vector<32x256xf32>
    %836 = arith.mulf %300, %835 : vector<32x256xf32>
    %c7_176 = arith.constant 7 : index
    %c0_177 = arith.constant 0 : index
    %c0_178 = arith.constant 0 : index
    %837 = vector.load %arg5[%c7_176, %c0_177, %c0_178] : memref<8x32x256xf32, #tpu.memory_space<vmem>>, vector<1x32x256xf32>
    %838 = vector.shape_cast %837 : vector<1x32x256xf32> to vector<32x256xf32>
    %839 = vector.shape_cast %836 : vector<32x256xf32> to vector<1x32x256xf32>
    tpu.vector_store %arg5[%c7_176, %c0_177, %c0_178], %839 {strides = array<i32>} : memref<8x32x256xf32, #tpu.memory_space<vmem>>, vector<1x32x256xf32>,
    return
  }
  func.func @transform_0(%arg0: i32) -> (i32, i32, i32) {
    %c0_i32 = arith.constant 0 : i32
    %c0_i32_0 = arith.constant 0 : i32
    %c0_i32_1 = arith.constant 0 : i32
    return %arg0, %c0_i32, %c0_i32_0 : i32, i32, i32
  }
  func.func @transform_1(%arg0: i32) -> (i32, i32) {
    %c0_i32 = arith.constant 0 : i32
    %c0_i32_0 = arith.constant 0 : i32
    %c0_i32_1 = arith.constant 0 : i32
    return %c0_i32, %c0_i32_0 : i32, i32
  }
  func.func @transform_2(%arg0: i32) -> (i32, i32) {
    %c0_i32 = arith.constant 0 : i32
    %c0_i32_0 = arith.constant 0 : i32
    %c0_i32_1 = arith.constant 0 : i32
    return %c0_i32, %c0_i32_0 : i32, i32
  }
  func.func @transform_3(%arg0: i32) -> i32 {
    %c0_i32 = arith.constant 0 : i32
    %c0_i32_0 = arith.constant 0 : i32
    return %c0_i32 : i32
  }
  func.func @transform_4(%arg0: i32) -> (i32, i32, i32) {
    %c0_i32 = arith.constant 0 : i32
    %c0_i32_0 = arith.constant 0 : i32
    %c0_i32_1 = arith.constant 0 : i32
    return %arg0, %c0_i32, %c0_i32_0 : i32, i32, i32
  }
}

</mosaic_0001>

<bundles_post_ra>
// kernel: tpu_custom_call.1
= control target key start
LH: loop header
LB: loop body
LE: loop exit
PB: predicated region body
PF: predicated region fallthrough
CT: control target
= control target key end

     0   :  { %s5804_s0 = inlined_call_operand.hbm [shape: f32[16,32,256], index: 0, kind: input, shape index: {}]   ;;  %s5805_s1 = inlined_call_operand.vmem [shape: f32[2,32], index: 1, kind: input, shape index: {}]   ;;  %s5806_s2 = inlined_call_operand.vmem [shape: f32[32,2], index: 2, kind: input, shape index: {}]   ;;  %s5807_s3 = inlined_call_operand.vmem [shape: f32[98], index: 3, kind: input, shape index: {}]   ;;  %s5808_s4 = inlined_call_operand.hbm [shape: f32[16,32,256], index: 4, kind: output, shape index: {}]  }
   0x1   :  { %6032 = sst [smem:[#allocation204_spill]] %s5804_s0 }
   0x2   :  { %6033 = sst [smem:[#allocation205_spill]] %s5805_s1 }
   0x3   :  { %6034 = sst [smem:[#allocation206_spill]] %s5806_s2 }
   0x4   :  { %6035 = sst [smem:[#allocation207_spill]] %s5807_s3 }
   0x5   :  { %6036 = sst [smem:[#allocation208_spill]] %s5808_s4 }
   0x6   :  { %9 = vsyncpa [#allocation3], 0 }
   0x7   :  { %11 = vsyncpa [#allocation3 + $0x1], 0 }
   0x8   :  { %12 = vsyncpa [#allocation5], 0 }
   0x9   :  { %13 = vsyncpa [#allocation4], 0 }
   0xa   :  { %15 = vsyncpa [#allocation4 + $0x1], 0  ;;  %s3085_s15 = smov 0   ;;  %s3087_s16 = smov 0  }
   0xb   :  { %s3089_s17 = smov 0   ;;  %s3091_s18 = smov 0  }
   0xc LB: > { %6037 = sst [smem:[#allocation11_spill]] %s3016_s15  ;;  %s3106_s19 = sadd.s32 4294967295, %s3028_s18   ;;  %s3028_s18 = sphi %s3091_s18, %s6671_s18   ;;  %s3024_s17 = sphi %s3089_s17, %s6674_s17   ;;  %s3020_s16 = sphi %s3087_s16, %s6673_s16   ;;  %s3016_s15 = sphi %s3085_s15, %s6672_s15  }
   0xd   : > { %6038 = sst [smem:[#allocation12_spill]] %s3020_s16  ;;  %s2458_s20 = sadd.s32 4294967294, %s3028_s18  }
   0xe   : > { %6039 = sst [smem:[#allocation13_spill]] %s3024_s17  ;;  %s3110_s21 = sadd.s32 1, %s3028_s18  }
   0xf   : > { %6040 = sst [smem:[#allocation14_spill]] %s3028_s18  ;;  %s28_s22 = sadd.s32 1, %s3024_s17 }
  0x10   : > { %6041 = sst [smem:[#allocation15_spill]] %s3106_s19  ;;  %s25_s23 = ssub.s32 %s3028_s18, %s3110_s21 }
  0x11   : > { %6042 = sst [smem:[#allocation16_spill]] %s3110_s21  ;;  %p35_p0 = scmp.ne.s32.totalorder %s3024_s17, %s3020_s16 }
  0x12   : > { %p26_p1 = scmp.eq.s32.totalorder %s25_s23, 0  ;;  %p36_p2 = scmp.eq.s32.totalorder %s3028_s18, 0 }
  0x13   : > { %p41_p3 = scmp.ne.s32.totalorder %s3020_s16, %s3016_s15  ;;  %p5810_p4 = scmp.eq.s32.totalorder %s3106_s19, 0 }
  0x14   : > { %s3122_s24 = scalar_select %p26_p1, %s3024_s17, %s28_s22  }
  0x15   : > { %p3124_p5 = por %p36_p2, %p35_p0  ;;  %p3130_p6 = por %p5810_p4, %p41_p3 }
  0x16   : > { %6043 = sst [smem:[#allocation17_spill]] %s3122_s24  ;;  %p128_p7 = scmp.eq.s32.totalorder %s3106_s19, 1 }
  0x17   : > { %s6045_s26 = scalar_select %p3130_p6, 1, 0 }
  0x18   : > { %p134_p8 = scmp.eq.s32.totalorder %s2458_s20, 1  ;;  %p2459_p9 = scmp.ge.s32.totalorder %s3028_s18, 1 }
  0x19   : > { %p141_p10 = scmp.lt.s32.totalorder %s3028_s18, 3  ;;  %p3137_p11 = por %p128_p7, %p35_p0 }
  0x1a   : > { %p3141_p12 = por %p134_p8, %p41_p3  ;;  %s6051_s3 = sld [smem:[#allocation207_spill]] }
  0x1b   : > { %s6046_s27 = scalar_select %p3137_p11, 1, 0 }
  0x1c   : > { %s6048_s28 = scalar_select %p3141_p12, 1, 0 }
  0x1d   : > { %6047 = sst [smem:[#allocation18_spill]] %s6046_s27  ;;  %p3145_p13 = pnand %p2459_p9, %p141_p10 }
  0x1e   : > { %6049 = sst [smem:[#allocation19_spill]] %s6048_s28  ;;  %p2757_p2 = scmp.lt.s32.totalorder %s3028_s18, 2 }
  0x1f   : > { %p2744_p1 = pneg %p3145_p13  ;;  %s171_s8 = sand.u32 1, %s3024_s17  }
  0x20   : > { %s160_s6 = sshll.u32 %s6051_s3, 4  ;;  %p3165_p3 = pnand %p2757_p2, %p3124_p5  ;;  %s161_s6 = int_to_ptr.vmem [resolvable:$true] %s160_s6 }
  0x21   : > { %p3158_p7 = pnand %p2744_p1, %p5810_p4  ;;  %s2462_s10 = sshll.u32 %s171_s8, 9 }
  0x22   : > { %s2913_s11 = scalar_lea.vmem %s161_s6, 16  ;;  %p2921_p12 = scmp.lt.s32.totalorder %s161_s6, %s161_s6 }
  0x23   : > { %p2914_p8 = scmp.ne.s32.totalorder %s161_s6, %s2913_s11  ;;  %p2915_p9 = pneg %p3158_p7 }
  0x24   : > { %p2922_p11 = scmp.lt.s32.totalorder %s2913_s11, %s2913_s11 }
  0x25   : > { %p2916_p10 = pnand %p2915_p9, %p2914_p8 }
  0x26   : > { %p2923_p1 = por %p2922_p11, %p2921_p12 }
  0x27   : > { %p2917_p0 = pneg %p2916_p10 }
  0x29   : > { %p2924_p4 = pnand %p2923_p1, %p2917_p0 }
  0x2b   : > { %2927 = shalt.err (!%p2924_p4)
}
  0x2c   : > { %s3030_s12 = smov [#allocation6]   ;;  %s2698_s13 = sshll.u32 %s3028_s18, 13 }
  0x2d   : > { %2747 = dma.vmem_to_smem (!%p3158_p7), %s161_s6, 16, %s3030_s12, [#allocation5]  }
  0x2e   : > { %s175_s14 = scalar_lea.vmem [#allocation2], %s2462_s10  ;;  %s6054_s0 = sld [smem:[#allocation204_spill]] }
  0x2f   : > { %s183_s20 = sshll.u32 %s175_s14, 4  ;;  %s3181_s30 = scalar_lea.sflag [#allocation3], %s171_s8  ;;  %s3179_s20 = int_to_ptr.vmem [resolvable:$true] %s183_s20 }
  0x30   : > { %p2930_p5 = pneg %p3165_p3 }
  0x34   : > { %s3177_s25 = scalar_lea.hbm %s6054_s0, %s2698_s13  ;;  %s2933_s10 = scalar_lea.hbm %s6054_s0, 16384 }
  0x35   : > { %s2928_s5 = scalar_lea.hbm %s3177_s25, 8192  ;;  %p2934_p0 = scmp.lt.u32.totalorder %s3177_s25, %s6054_s0 }
  0x36   : > { %p2929_p4 = scmp.ne.s32.totalorder %s3177_s25, %s2928_s5  ;;  %p2935_p2 = scmp.lt.u32.totalorder %s2933_s10, %s2928_s5 }
  0x37   : > { %p2937_p8 = scmp.lt.u32.totalorder %s2928_s5, %s3177_s25 }
  0x38   : > { %p2931_p11 = pnand %p2930_p5, %p2929_p4  ;;  %p2936_p7 = por %p2935_p2, %p2934_p0 }
  0x3a   : > { %p2932_p12 = pneg %p2931_p11  ;;  %p2938_p9 = por %p2937_p8, %p2936_p7 }
  0x3c   : > { %p2939_p10 = pnand %p2938_p9, %p2932_p12 }
  0x3e   : > { %2942 = shalt.err (!%p2939_p10)
}
  0x3f   : > { %s2943_s8 = scalar_lea.vmem %s3179_s20, 8192  ;;  %s3031_s13 = smov [#allocation2]  }
  0x40   : > { %p2944_p1 = scmp.ne.s32.totalorder %s3179_s20, %s2943_s8  ;;  %s2948_s14 = sshll.u32 %s3031_s13, 4  ;;  %s2949_s14 = int_to_ptr.vmem [resolvable:$false] %s2948_s14 }
  0x41   : > { %s2950_s22 = scalar_lea.vmem %s2949_s14, 16384  ;;  %p2951_p6 = scmp.lt.s32.totalorder %s3179_s20, %s2949_s14 }
  0x42   : > { %p2946_p4 = pnand %p2944_p1, %p2930_p5  ;;  %p2952_p0 = scmp.lt.s32.totalorder %s2950_s22, %s2943_s8 }
  0x44   : > { %p2947_p11 = pneg %p2946_p4  ;;  %p2953_p2 = por %p2952_p0, %p2951_p6 }
  0x46   : > { %p2954_p7 = pnand %p2953_p2, %p2947_p11 }
  0x48   : > { %2957 = shalt.err (!%p2954_p7)
}
  0x49   : > { %s3032_s23 = smov 256   ;;  %s3033_s5 = smov 16  }
  0x4a   : > { %2751 = dma.hbm_to_vmem [thread:$0]  (!%p3165_p3), %s3177_s25, 8192, %s3179_s20, %s3181_s30, %s3032_s23, %s3032_s23, %s3033_s5  }
  0x4b   : > { %195 = sbr.rel (%p3145_p13) target bundleno = 1645 (0x66d), region = 36 }
  0x52   : > { %s3212_s6 = sand.u32 1, %s3020_s16   ;;  %p6056_p6 = scmp.ne.s32.totalorder %s6045_s26, 0 }
  0x53   : > { %6055 = sst [smem:[#allocation20_spill]] %s3212_s6  ;;  %s5891_s7 = sshll.u32 %s3212_s6, 9 }
  0x54   : > { %s198_s10 = scalar_lea.sflag [#allocation3], %s3212_s6  ;;  %s3218_s11 = scalar_lea.vmem [#allocation2], %s5891_s7 }
  0x55   : > { %3003 = dma.done.wait (%p6056_p6), %s198_s10, 8192  }
  0x56   : > { %3005 = vsyncadd (%p6056_p6), %s198_s10, 4294959104  ;;  %p6057_p3 = scmp.eq.s32.totalorder %s3106_s19, 0 }
  0x58   : > { %3007 = dma.done.wait (%p6057_p3), [#allocation5], 16   ;;  %p6058_p13 = pmov %p6057_p3 }
  0x5a   : > { %3009 = vsyncadd (%p6058_p13), [#allocation5], 4294967280 }
  0x5b   : > { %210 = sfence }
  0x5c   : > { %v2470_v0 = vld [vmem:[%s3218_s11 + $0x40] sm:$0xff]  ;;  %v2471_v1 = vld [vmem:[%s3218_s11 + $0x48] sm:$0xff]  ;;  %v2472_v5 = vld [vmem:[%s3218_s11 + $0x50] sm:$0xff]  ;;  %vm3035_vm0 = vmmov 0   ;;  %s6075_s1 = sld [smem:[#allocation205_spill]]  ;;  %s6076_s2 = sld [smem:[#allocation206_spill]] }
  0x5d   : > { %v235_v2 = vld [vmem:[%s3218_s11] sm:$0xff]  ;;  %v290_v3 = vadd.f32 %v2471_v1, %v2470_v0  ;;  %v236_v4 = vld [vmem:[%s3218_s11 + $0x8] sm:$0xff]  ;;  %v2473_v6 = vld [vmem:[%s3218_s11 + $0x58] sm:$0xff]  ;;  %v306_v27 = vmax.f32 %v2470_v0, %v2471_v1  ;;  %s3037_s22 = smov 120   ;;  %s4197_s23 = sld [smem:[#allocation6 + $0x3]] }
  0x5e   : > { %v243_v7 = vadd.f32 %v236_v4, %v235_v2  ;;  %v237_v8 = vld [vmem:[%s3218_s11 + $0x10] sm:$0xff]  ;;  %v238_v9 = vld [vmem:[%s3218_s11 + $0x18] sm:$0xff]  ;;  %v293_v10 = vadd.f32 %v2473_v6, %v2472_v5  ;;  %v259_v13 = vmax.f32 %v235_v2, %v236_v4  ;;  %v239_v16 = vld [vmem:[%s3218_s11 + $0x20] sm:$0xff]  ;;  %v309_v26 = vmax.f32 %v2472_v5, %v2473_v6  ;;  %s4199_s5 = sld [smem:[#allocation6 + $0x34]]  ;;  %s4207_s10 = sld [smem:[#allocation6 + $0xa]] }
  0x5f   : > { %291 = vadd.xlane.f32.xlu1 %v290_v3  ;;  %v246_v11 = vadd.f32 %v238_v9, %v237_v8  ;;  %v262_v12 = vmax.f32 %v237_v8, %v238_v9  ;;  %v241_v14 = vld [vmem:[%s3218_s11 + $0x30] sm:$0xff]  ;;  %v242_v15 = vld [vmem:[%s3218_s11 + $0x38] sm:$0xff]  ;;  %v240_v17 = vld [vmem:[%s3218_s11 + $0x28] sm:$0xff]  ;;  %s4225_s26 = sld [smem:[#allocation6 + $0x11]]  ;;  %s4227_s29 = sld [smem:[#allocation6 + $0x42]] }
  0x60   : > { %244 = vadd.xlane.f32.xlu0 %v243_v7  ;;  %v252_v18 = vadd.f32 %v242_v15, %v241_v14  ;;  %v249_v19 = vadd.f32 %v240_v17, %v239_v16  ;;  %v3241_v20 = vld [vmem:[%s3218_s11 + $0x90] sm:$0xff]  ;;  %v3244_v21 = vld [vmem:[%s3218_s11 + $0x98] sm:$0xff]  ;;  %v2478_v22 = vld [vmem:[%s3218_s11 + $0x80] sm:$0xff]  ;;  %v268_v40 = vmax.f32 %v241_v14, %v242_v15  ;;  %v265_v41 = vmax.f32 %v239_v16, %v240_v17  ;;  %s3046_s9 = smov 3   ;;  %s4238_s20 = sld [smem:[#allocation6 + $0x1f]] }
  0x61   : > { %v2479_v23 = vld [vmem:[%s3218_s11 + $0x88] sm:$0xff]  ;;  %v340_v24 = vadd.f32 %v3244_v21, %v3241_v20  ;;  %v2476_v28 = vld [vmem:[%s3218_s11 + $0x70] sm:$0xff]  ;;  %v2477_v29 = vld [vmem:[%s3218_s11 + $0x78] sm:$0xff]  ;;  %v356_v42 = vmax.f32 %v3241_v20, %v3244_v21  ;;  %s4240_s25 = sld [smem:[#allocation6 + $0x50]]  ;;  %s3047_s30 = smov 2  }
  0x62   : > { %v337_v25 = vadd.f32 %v2479_v23, %v2478_v22  ;;  %v2474_v30 = vld [vmem:[%s3218_s11 + $0x60] sm:$0xff]  ;;  %v2475_v31 = vld [vmem:[%s3218_s11 + $0x68] sm:$0xff]  ;;  %v299_v32 = vadd.f32 %v2477_v29, %v2476_v28  ;;  %v3255_v34 = vld [vmem:[%s3218_s11 + $0xd0] sm:$0xff]  ;;  %v353_v43 = vmax.f32 %v2478_v22, %v2479_v23  ;;  %v315_v56 = vmax.f32 %v2476_v28, %v2477_v29  ;;  %s4255_s12 = sld [smem:[#allocation6 + $0x26]]  ;;  %s4264_s8 = sld [smem:[#allocation6 + $0x57]] }
  0x63   : > { %294 = vadd.xlane.f32.xlu1 %v293_v10  ;;  %v296_v33 = vadd.f32 %v2475_v31, %v2474_v30  ;;  %v3258_v35 = vld [vmem:[%s3218_s11 + $0xd8] sm:$0xff]  ;;  %v2486_v36 = vld [vmem:[%s3218_s11 + $0xc0] sm:$0xff]  ;;  %v2487_v37 = vld [vmem:[%s3218_s11 + $0xc8] sm:$0xff]  ;;  %v312_v57 = vmax.f32 %v2474_v30, %v2475_v31  ;;  %s3048_s13 = smov 1   ;;  %s4282_s14 = sld [smem:[#allocation6 + $0x2d]] }
  0x64   : > { %247 = vadd.xlane.f32.xlu0 %v246_v11  ;;  %v387_v38 = vadd.f32 %v3258_v35, %v3255_v34  ;;  %v384_v39 = vadd.f32 %v2487_v37, %v2486_v36  ;;  %v2484_v44 = vld [vmem:[%s3218_s11 + $0xb0] sm:$0xff]  ;;  %v2485_v45 = vld [vmem:[%s3218_s11 + $0xb8] sm:$0xff]  ;;  %v2482_v46 = vld [vmem:[%s3218_s11 + $0xa0] sm:$0xff]  ;;  %v403_v58 = vmax.f32 %v3255_v34, %v3258_v35  ;;  %v400_v59 = vmax.f32 %v2486_v36, %v2487_v37  ;;  %s4413_s7 = sld [smem:[#allocation6 + $0x3a]]  ;;  %s4415_s0 = sld [smem:[#allocation6 + $0x41]] }
  0x65   : > { %v2483_v47 = vld [vmem:[%s3218_s11 + $0xa8] sm:$0xff]  ;;  %v346_v48 = vadd.f32 %v2485_v45, %v2484_v44  ;;  %v3271_v50 = vld [vmem:[%s3218_s11 + $0x110] sm:$0xff]  ;;  %v3274_v51 = vld [vmem:[%s3218_s11 + $0x118] sm:$0xff]  ;;  %v362_v8 = vmax.f32 %v2484_v44, %v2485_v45  ;;  %s4421_s3 = sld [smem:[#allocation6 + $0x56]]  ;;  %s4423_s24 = sld [smem:[#allocation6 + $0x5d]] }
  0x66   : > { %v343_v49 = vadd.f32 %v2483_v47, %v2482_v46  ;;  %v3277_v52 = vld [vmem:[%s3218_s11 + $0x100] sm:$0xff]  ;;  %v3280_v53 = vld [vmem:[%s3218_s11 + $0x108] sm:$0xff]  ;;  %v434_v54 = vadd.f32 %v3274_v51, %v3271_v50  ;;  %v3289_v60 = vld [vmem:[%s3218_s11 + $0xf0] sm:$0xff]  ;;  %v359_v9 = vmax.f32 %v2482_v46, %v2483_v47  ;;  %v450_v10 = vmax.f32 %v3271_v50, %v3274_v51  ;;  %s4425_s17 = sld [smem:[#allocation6 + $0x35]]  ;;  %s4427_s16 = sld [smem:[#allocation6 + $0x3c]] }
  0x67   : > { %263 = vmax.xlane.f32.xlu1 %v262_v12  ;;  %6059 = vst [vmem:[#allocation21_spill] sm:$0xff] %v3277_v52  ;;  %6060 = vst [vmem:[#allocation22_spill] sm:$0xff] %v3280_v53  ;;  %v431_v55 = vadd.f32 %v3280_v53, %v3277_v52  ;;  %v3292_v61 = vld [vmem:[%s3218_s11 + $0xf8] sm:$0xff]  ;;  %v3295_v62 = vld [vmem:[%s3218_s11 + $0xe0] sm:$0xff]  ;;  %v447_v11 = vmax.f32 %v3277_v52, %v3280_v53  ;;  %s4429_s21 = sld [smem:[#allocation6 + $0x43]]  ;;  %s4431_s18 = sld [smem:[#allocation6 + $0x51]] }
  0x68   : > { %260 = vmax.xlane.f32.xlu0 %v259_v13  ;;  %6061 = vst [vmem:[#allocation23_spill] sm:$0xff] %v3289_v60  ;;  %6062 = vst [vmem:[#allocation24_spill] sm:$0xff] %v3292_v61  ;;  %v3298_v63 = vld [vmem:[%s3218_s11 + $0xe8] sm:$0xff]  ;;  %v393_v0 = vadd.f32 %v3292_v61, %v3289_v60  ;;  %v3305_v2 = vld [vmem:[%s3218_s11 + $0x150] sm:$0xff]  ;;  %s4433_s28 = sld [smem:[#allocation6 + $0x58]]  ;;  %s4435_s15 = sld [smem:[#allocation6 + $0x5f]] }
  0x69   : > { %6063 = vst [vmem:[#allocation25_spill] sm:$0xff] %v3295_v62  ;;  %6064 = vst [vmem:[#allocation26_spill] sm:$0xff] %v3298_v63  ;;  %v390_v1 = vadd.f32 %v3298_v63, %v3295_v62  ;;  %v3308_v3 = vld [vmem:[%s3218_s11 + $0x158] sm:$0xff]  ;;  %v2502_v4 = vld [vmem:[%s3218_s11 + $0x140] sm:$0xff]  ;;  %s4437_s27 = sld [smem:[#allocation6]]  ;;  %s4439_s4 = sld [smem:[#allocation6 + $0x7]] }
  0x6a   : > { %6065 = vst [vmem:[#allocation27_spill] sm:$0xff] %v3305_v2  ;;  %6066 = vst [vmem:[#allocation28_spill] sm:$0xff] %v3308_v3  ;;  %v2503_v5 = vld [vmem:[%s3218_s11 + $0x148] sm:$0xff]  ;;  %v481_v6 = vadd.f32 %v3308_v3, %v3305_v2  ;;  %v2500_v12 = vld [vmem:[%s3218_s11 + $0x130] sm:$0xff]  ;;  %v497_v28 = vmax.f32 %v3305_v2, %v3308_v3  ;;  %6207 = sst [smem:[#allocation116_spill]] %s4413_s7  ;;  %s4441_s19 = sld [smem:[#allocation6 + $0xe]] }
  0x6b   : > { %253 = vadd.xlane.f32.xlu1 %v252_v18  ;;  %v478_v7 = vadd.f32 %v2503_v5, %v2502_v4  ;;  %v2501_v13 = vld [vmem:[%s3218_s11 + $0x138] sm:$0xff]  ;;  %v2498_v14 = vld [vmem:[%s3218_s11 + $0x120] sm:$0xff]  ;;  %v2499_v15 = vld [vmem:[%s3218_s11 + $0x128] sm:$0xff]  ;;  %v494_v29 = vmax.f32 %v2502_v4, %v2503_v5  ;;  %6208 = sst [smem:[#allocation117_spill]] %s4415_s0  ;;  %s4443_s6 = sld [smem:[#allocation6 + $0x15]] }
  0x6c   : > { %250 = vadd.xlane.f32.xlu0 %v249_v19  ;;  %v440_v16 = vadd.f32 %v2501_v13, %v2500_v12  ;;  %v437_v17 = vadd.f32 %v2499_v15, %v2498_v14  ;;  %v3323_v18 = vld [vmem:[%s3218_s11 + $0x190] sm:$0xff]  ;;  %v3326_v19 = vld [vmem:[%s3218_s11 + $0x198] sm:$0xff]  ;;  %v3329_v22 = vld [vmem:[%s3218_s11 + $0x180] sm:$0xff]  ;;  %v456_v44 = vmax.f32 %v2500_v12, %v2501_v13  ;;  %v453_v45 = vmax.f32 %v2498_v14, %v2499_v15  ;;  %6211 = sst [smem:[#allocation120_spill]] %s4421_s3  ;;  %s4585_s0 = sld [smem:[#allocation6 + $0x5a]] }
  0x6d   : > { %v3332_v23 = vld [vmem:[%s3218_s11 + $0x188] sm:$0xff]  ;;  %v2508_v30 = vld [vmem:[%s3218_s11 + $0x170] sm:$0xff]  ;;  %v2509_v31 = vld [vmem:[%s3218_s11 + $0x178] sm:$0xff]  ;;  %v544_v46 = vmax.f32 %v3323_v18, %v3326_v19  ;;  %v5812_v14 = vmov 0.0|0.0   ;;  %6212 = sst [smem:[#allocation121_spill]] %s4423_s24  ;;  %s4445_s24 = sld [smem:[#allocation6 + $0x1c]] }
  0x6e   : > { %v487_v36 = vadd.f32 %v2509_v31, %v2508_v30  ;;  %v541_v47 = vmax.f32 %v3329_v22, %v3332_v23  ;;  %v2524_v4 = vld [vmem:[%s3218_s11 + $0x1f0] sm:$0xff]  ;;  %v2525_v5 = vld [vmem:[%s3218_s11 + $0x1f8] sm:$0xff]  ;;  %2730 = vmatprep.subr.bf16.mxu0 %v5812_v14  ;;  %v5823_v14 = vlaneseq  ;;  %6213 = sst [smem:[#allocation122_spill]] %s4425_s17  ;;  %s4447_s17 = sld [smem:[#allocation6 + $0x23]] }
  0x6f   : > { %341 = vadd.xlane.f32.xlu1 %v340_v24  ;;  %v528_v24 = vadd.f32 %v3326_v19, %v3323_v18  ;;  %v597_v12 = vmax.f32 %v2524_v4, %v2525_v5  ;;  %6214 = sst [smem:[#allocation123_spill]] %s4427_s16  ;;  %s4449_s16 = sld [smem:[#allocation6 + $0x2a]] }
  0x70   : > { %338 = vadd.xlane.f32.xlu0 %v337_v25  ;;  %v525_v25 = vadd.f32 %v3332_v23, %v3329_v22  ;;  %6215 = sst [smem:[#allocation124_spill]] %s4429_s21  ;;  %s4591_s3 = sld [smem:[#allocation6 + $0x2f]] }
  0x71   : > { %6216 = sst [smem:[#allocation125_spill]] %s4431_s18  ;;  %s4451_s21 = sld [smem:[#allocation6 + $0x1]] }
  0x72   : > { %6217 = sst [smem:[#allocation126_spill]] %s4433_s28  ;;  %s4453_s18 = sld [smem:[#allocation6 + $0x8]] }
  0x73   : > { %310 = vmax.xlane.f32.xlu1 %v309_v26  ;;  %v409_v26 = vmax.f32 %v3289_v60, %v3292_v61  ;;  %v3446_v61 = vand.u32 127, %v5823_v14  ;;  %6218 = sst [smem:[#allocation127_spill]] %s4435_s15  ;;  %s4455_s28 = sld [smem:[#allocation6 + $0xf]] }
  0x74   : > { %307 = vmax.xlane.f32.xlu0 %v306_v27  ;;  %v406_v27 = vmax.f32 %v3295_v62, %v3298_v63  ;;  %6219 = sst [smem:[#allocation128_spill]] %s4437_s27  ;;  %s4457_s15 = sld [smem:[#allocation6 + $0x16]] }
  0x75   : > { %6073 = vst [vmem:[#allocation35_spill] sm:$0xff] %v3446_v61  ;;  %vm271_vm1 = vcmp.eq.s32.totalorder %v3446_v61, 0  ;;  %vm276_vm2 = vcmp.eq.s32.totalorder %v3446_v61, 8  ;;  %vm318_vm3 = vcmp.eq.s32.totalorder %v3446_v61, 1  ;;  %vm323_vm4 = vcmp.eq.s32.totalorder %v3446_v61, 9  ;;  %6220 = sst [smem:[#allocation129_spill]] %s4439_s4 }
  0x76   : > { %vm365_vm5 = vcmp.eq.s32.totalorder %v3446_v61, 2  ;;  %vm370_vm6 = vcmp.eq.s32.totalorder %v3446_v61, 10  ;;  %vm412_vm7 = vcmp.eq.s32.totalorder %v3446_v61, 3  ;;  %vm417_vm8 = vcmp.eq.s32.totalorder %v3446_v61, 11  ;;  %6221 = sst [smem:[#allocation130_spill]] %s4441_s19  ;;  %s4459_s27 = sld [smem:[#allocation6 + $0x1d]] }
  0x77   : > { %300 = vadd.xlane.f32.xlu1 %v299_v32  ;;  %v2506_v32 = vld [vmem:[%s3218_s11 + $0x160] sm:$0xff]  ;;  %vm459_vm9 = vcmp.eq.s32.totalorder %v3446_v61, 4  ;;  %vm464_vm10 = vcmp.eq.s32.totalorder %v3446_v61, 12  ;;  %vm506_vm11 = vcmp.eq.s32.totalorder %v3446_v61, 5  ;;  %vm511_vm12 = vcmp.eq.s32.totalorder %v3446_v61, 13  ;;  %6222 = sst [smem:[#allocation131_spill]] %s4443_s6 }
  0x78   : > { %297 = vadd.xlane.f32.xlu0 %v296_v33  ;;  %v2507_v33 = vld [vmem:[%s3218_s11 + $0x168] sm:$0xff]  ;;  %vm553_vm13 = vcmp.eq.s32.totalorder %v3446_v61, 6  ;;  %vm558_vm14 = vcmp.eq.s32.totalorder %v3446_v61, 14  ;;  %vm600_vm15 = vcmp.eq.s32.totalorder %v3446_v61, 7  ;;  %6223 = sst [smem:[#allocation132_spill]] %s4445_s24  ;;  %s4461_s4 = sld [smem:[#allocation6 + $0x24]] }
  0x79   : > { %v484_v37 = vadd.f32 %v2507_v33, %v2506_v32  ;;  %6224 = sst [smem:[#allocation133_spill]] %s4447_s17  ;;  %s4463_s19 = sld [smem:[#allocation6 + $0x2b]] }
  0x7a   : > { %6225 = sst [smem:[#allocation134_spill]] %s4449_s16  ;;  %s4465_s24 = sld [smem:[#allocation6 + $0x36]] }
  0x7b   : > { %388 = vadd.xlane.f32.xlu1 %v387_v38  ;;  %v3349_v38 = vld [vmem:[%s3218_s11 + $0x1d0] sm:$0xff]  ;;  %6226 = sst [smem:[#allocation135_spill]] %s4451_s21  ;;  %s4467_s17 = sld [smem:[#allocation6 + $0x2]] }
  0x7c   : > { %385 = vadd.xlane.f32.xlu0 %v384_v39  ;;  %6067 = vst [vmem:[#allocation29_spill] sm:$0xff] %v3349_v38  ;;  %v3352_v39 = vld [vmem:[%s3218_s11 + $0x1d8] sm:$0xff]  ;;  %6227 = sst [smem:[#allocation136_spill]] %s4453_s18  ;;  %s4469_s16 = sld [smem:[#allocation6 + $0x9]] }
  0x7d   : > { %6068 = vst [vmem:[#allocation30_spill] sm:$0xff] %v3352_v39  ;;  %6228 = sst [smem:[#allocation137_spill]] %s4455_s28  ;;  %s4471_s21 = sld [smem:[#allocation6 + $0x10]] }
  0x7e   : > { %6229 = sst [smem:[#allocation138_spill]] %s4457_s15  ;;  %s4475_s15 = sld [smem:[#allocation6 + $0x1e]] }
  0x7f   : > { %269 = vmax.xlane.f32.xlu1 %v268_v40  ;;  %v3355_v40 = vld [vmem:[%s3218_s11 + $0x1c0] sm:$0xff]  ;;  %6230 = sst [smem:[#allocation139_spill]] %s4459_s27  ;;  %s4473_s18 = sld [smem:[#allocation6 + $0x17]] }
  0x80   : > { %266 = vmax.xlane.f32.xlu0 %v265_v41  ;;  %6069 = vst [vmem:[#allocation31_spill] sm:$0xff] %v3355_v40  ;;  %v3358_v41 = vld [vmem:[%s3218_s11 + $0x1c8] sm:$0xff]  ;;  %6231 = sst [smem:[#allocation140_spill]] %s4461_s4  ;;  %s4477_s27 = sld [smem:[#allocation6 + $0x25]] }
  0x81   : > { %6070 = vst [vmem:[#allocation32_spill] sm:$0xff] %v3358_v41  ;;  %6232 = sst [smem:[#allocation141_spill]] %s4463_s19  ;;  %s4482_s19 = sld [smem:[#allocation6 + $0x2c]] }
  0x82   : > { %6233 = sst [smem:[#allocation142_spill]] %s4465_s24  ;;  %s4484_s24 = sld [smem:[#allocation6 + $0x3d]] }
  0x83   : > { %357 = vmax.xlane.f32.xlu1 %v356_v42  ;;  %v575_v42 = vadd.f32 %v3352_v39, %v3349_v38  ;;  %6234 = sst [smem:[#allocation143_spill]] %s4467_s17  ;;  %s4575_s6 = sld [smem:[#allocation6 + $0x53]] }
  0x84   : > { %354 = vmax.xlane.f32.xlu0 %v353_v43  ;;  %v572_v43 = vadd.f32 %v3358_v41, %v3355_v40  ;;  %6235 = sst [smem:[#allocation144_spill]] %s4469_s16  ;;  %s4486_s16 = sld [smem:[#allocation6 + $0x4]] }
  0x85   : > { %6236 = sst [smem:[#allocation145_spill]] %s4471_s21  ;;  %s4488_s21 = sld [smem:[#allocation6 + $0xb]] }
  0x86   : > { %6237 = sst [smem:[#allocation146_spill]] %s4473_s18  ;;  %s4490_s18 = sld [smem:[#allocation6 + $0x12]] }
  0x87   : > { %347 = vadd.xlane.f32.xlu1 %v346_v48  ;;  %v3369_v48 = vld [vmem:[%s3218_s11 + $0x1b0] sm:$0xff]  ;;  %6238 = sst [smem:[#allocation147_spill]] %s4475_s15  ;;  %s4599_s4 = sld [smem:[#allocation6 + $0x61]] }
  0x88   : > { %344 = vadd.xlane.f32.xlu0 %v343_v49  ;;  %6071 = vst [vmem:[#allocation33_spill] sm:$0xff] %v3369_v48  ;;  %v3372_v49 = vld [vmem:[%s3218_s11 + $0x1b8] sm:$0xff]  ;;  %6239 = sst [smem:[#allocation148_spill]] %s4477_s27  ;;  %s4492_s15 = sld [smem:[#allocation6 + $0x20]] }
  0x89   : > { %6072 = vst [vmem:[#allocation34_spill] sm:$0xff] %v3372_v49  ;;  %6242 = sst [smem:[#allocation150_spill]] %s4482_s19  ;;  %s4498_s19 = sld [smem:[#allocation6 + $0x27]] }
  0x8a   : > { %6243 = sst [smem:[#allocation151_spill]] %s4484_s24  ;;  %s4500_s24 = sld [smem:[#allocation6 + $0x2e]] }
  0x8b   : > { %435 = vadd.xlane.f32.xlu1 %v434_v54  ;;  %v3375_v54 = vld [vmem:[%s3218_s11 + $0x1a0] sm:$0xff]  ;;  %6244 = sst [smem:[#allocation152_spill]] %s4486_s16  ;;  %s4610_s27 = sld [smem:[#allocation6 + $0x1a]] }
  0x8c   : > { %432 = vadd.xlane.f32.xlu0 %v431_v55  ;;  %v3378_v55 = vld [vmem:[%s3218_s11 + $0x1a8] sm:$0xff]  ;;  %6245 = sst [smem:[#allocation153_spill]] %s4488_s21  ;;  %s4620_s21 = sld [smem:[#allocation6 + $0x4c]] }
  0x8d   : > { %6246 = sst [smem:[#allocation154_spill]] %s4490_s18  ;;  %s4510_s18 = sld [smem:[#allocation6 + $0x44]] }
  0x8e   : > { %6247 = sst [smem:[#allocation155_spill]] %s4492_s15  ;;  %s4508_s15 = sld [smem:[#allocation6 + $0x5]] }
  0x8f   : > { %316 = vmax.xlane.f32.xlu1 %v315_v56  ;;  %v534_v56 = vadd.f32 %v3372_v49, %v3369_v48  ;;  %s6284_s28 = sld [smem:[#allocation154_spill]] }
  0x90   : > { %313 = vmax.xlane.f32.xlu0 %v312_v57  ;;  %v531_v57 = vadd.f32 %v3378_v55, %v3375_v54 }
  0x93   : > { %404 = vmax.xlane.f32.xlu1 %v403_v58  ;;  %v503_v58 = vmax.f32 %v2508_v30, %v2509_v31  ;;  %6248 = sst [smem:[#allocation156_spill]] %s4510_s18  ;;  %s4524_s18 = sld [smem:[#allocation6 + $0x37]] }
  0x94   : > { %401 = vmax.xlane.f32.xlu0 %v400_v59  ;;  %v500_v59 = vmax.f32 %v2506_v32, %v2507_v33 }
  0x97   : > { %394 = vadd.xlane.f32.xlu1 %v393_v0  ;;  %v591_v0 = vmax.f32 %v3349_v38, %v3352_v39 }
  0x98   : > { %391 = vadd.xlane.f32.xlu0 %v390_v1  ;;  %v588_v1 = vmax.f32 %v3355_v40, %v3358_v41 }
  0x99   : > { %6253 = sst [smem:[#allocation159_spill]] %s4524_s18 }
  0x9a   : > { %s4540_s18 = sld [smem:[#allocation6 + $0x13]] }
  0x9b   : > { %482 = vadd.xlane.f32.xlu1 %v481_v6  ;;  %v2522_v6 = vld [vmem:[%s3218_s11 + $0x1e0] sm:$0xff] }
  0x9c   : > { %479 = vadd.xlane.f32.xlu0 %v478_v7  ;;  %v2523_v7 = vld [vmem:[%s3218_s11 + $0x1e8] sm:$0xff] }
  0x9d   : > { %v594_v13 = vmax.f32 %v2522_v6, %v2523_v7 }
  0x9f   : > { %363 = vmax.xlane.f32.xlu1 %v362_v8  ;;  %v581_v8 = vadd.f32 %v2525_v5, %v2524_v4 }
  0xa0   : > { %360 = vmax.xlane.f32.xlu0 %v359_v9  ;;  %v578_v9 = vadd.f32 %v2523_v7, %v2522_v6  ;;  %6262 = sst [smem:[#allocation161_spill]] %s4540_s18  ;;  %s4556_s18 = sld [smem:[#allocation6 + $0x60]] }
  0xa3   : > { %451 = vmax.xlane.f32.xlu1 %v450_v10  ;;  %v550_v10 = vmax.f32 %v3369_v48, %v3372_v49 }
  0xa4   : > { %448 = vmax.xlane.f32.xlu0 %v447_v11  ;;  %v547_v11 = vmax.f32 %v3375_v54, %v3378_v55 }
  0xa6   : > { %6270 = sst [smem:[#allocation163_spill]] %s4556_s18  ;;  %s4583_s18 = sld [smem:[#allocation6 + $0x29]] }
  0xa7   : > { %441 = vadd.xlane.f32.xlu1 %v440_v16 }
  0xa8   : > { %438 = vadd.xlane.f32.xlu0 %v437_v17  ;;  %v3036_v17 = vmov 0.0  }
  0xa9   : > { %2719 = vmatprep.mubr.msk.f32.mxu0 %vm3035_vm0, %v3036_v17  ;;  %vm605_vm0 = vcmp.eq.s32.totalorder %v3446_v61, 15 }
  0xab   : > { %529 = vadd.xlane.f32.xlu1 %v528_v24 }
  0xac   : > { %526 = vadd.xlane.f32.xlu0 %v525_v25  ;;  %6282 = sst [smem:[#allocation166_spill]] %s4583_s18 }
  0xaf   : > { %410 = vmax.xlane.f32.xlu1 %v409_v26 }
  0xb0   : > { %407 = vmax.xlane.f32.xlu0 %v406_v27 }
  0xb3   : > { %498 = vmax.xlane.f32.xlu1 %v497_v28 }
  0xb4   : > { %495 = vmax.xlane.f32.xlu0 %v494_v29 }
  0xb7   : > { %488 = vadd.xlane.f32.xlu1 %v487_v36 }
  0xb8   : > { %485 = vadd.xlane.f32.xlu0 %v484_v37 }
  0xbb   : > { %576 = vadd.xlane.f32.xlu1 %v575_v42 }
  0xbc   : > { %573 = vadd.xlane.f32.xlu0 %v572_v43 }
  0xbf   : > { %457 = vmax.xlane.f32.xlu1 %v456_v44 }
  0xc0   : > { %454 = vmax.xlane.f32.xlu0 %v453_v45 }
  0xc3   : > { %545 = vmax.xlane.f32.xlu1 %v544_v46 }
  0xc4   : > { %542 = vmax.xlane.f32.xlu0 %v541_v47 }
  0xc7   : > { %535 = vadd.xlane.f32.xlu1 %v534_v56 }
  0xc8   : > { %532 = vadd.xlane.f32.xlu0 %v531_v57 }
  0xcb   : > { %504 = vmax.xlane.f32.xlu1 %v503_v58 }
  0xcc   : > { %501 = vmax.xlane.f32.xlu0 %v500_v59 }
  0xcf   : > { %592 = vmax.xlane.f32.xlu1 %v591_v0 }
  0xd0   : > { %589 = vmax.xlane.f32.xlu0 %v588_v1 }
  0xd3   : > { %582 = vadd.xlane.f32.xlu1 %v581_v8 }
  0xd4   : > { %579 = vadd.xlane.f32.xlu0 %v578_v9 }
  0xd7   : > { %551 = vmax.xlane.f32.xlu1 %v550_v10 }
  0xd8   : > { %548 = vmax.xlane.f32.xlu0 %v547_v11 }
  0xdb   : > { %598 = vmax.xlane.f32.xlu1 %v597_v12 }
  0xdc   : > { %595 = vmax.xlane.f32.xlu0 %v594_v13 }
  0xec   : > { %v292_v15 = vpop.xlane.xlu1 %291 }
  0xed   : > { %v245_v16 = vpop.xlane.xlu0 %244 }
  0xee   : > { %v255_v53 = vmul.f32 0.00390625, %v245_v16 }
  0xf0   : > { %v295_v24 = vpop.xlane.xlu1 %294  ;;  %v272_v14 = vsel %vm271_vm1, %v255_v53, 0.0 }
  0xf1   : > { %v248_v25 = vpop.xlane.xlu0 %247  ;;  %v303_v39 = vmul.f32 0.00390625, %v295_v24 }
  0xf2   : > { %v256_v63 = vmul.f32 0.00390625, %v248_v25 }
  0xf4   : > { %v264_v26 = vpop.xlane.xlu1 %263  ;;  %v273_v49 = vsel %vm271_vm1, %v256_v63, 0.0  ;;  %v302_v63 = vmul.f32 0.00390625, %v292_v15 }
  0xf5   : > { %v261_v27 = vpop.xlane.xlu0 %260  ;;  %v278_v25 = vsel %vm276_vm2, %v264_v26, %v273_v49 }
  0xf6   : > { %v277_v38 = vsel %vm276_vm2, %v261_v27, %v272_v14  ;;  %v320_v3 = vsel %vm318_vm3, %v303_v39, %v278_v25 }
  0xf7   : > { %v319_v49 = vsel %vm318_vm3, %v302_v63, %v277_v38 }
  0xf8   : > { %v254_v28 = vpop.xlane.xlu1 %253 }
  0xf9   : > { %v3397_v29 = vpop.xlane.xlu0 %250  ;;  %v258_v39 = vmul.f32 0.00390625, %v254_v28 }
  0xfc   : > { %v342_v30 = vpop.xlane.xlu1 %341 }
  0xfd   : > { %v339_v31 = vpop.xlane.xlu0 %338  ;;  %v350_v26 = vmul.f32 0.00390625, %v342_v30 }
  0xfe   : > { %v349_v15 = vmul.f32 0.00390625, %v339_v31 }
 0x100   : > { %v311_v32 = vpop.xlane.xlu1 %310 }
 0x101   : > { %v308_v33 = vpop.xlane.xlu0 %307  ;;  %v325_v53 = vsel %vm323_vm4, %v311_v32, %v320_v3  ;;  %v257_v3 = vmul.f32 0.00390625, %v3397_v29  ;;  %v275_v29 = vsel %vm271_vm1, %v258_v39, 0.0 }
 0x102   : > { %v324_v14 = vsel %vm323_vm4, %v308_v33, %v319_v49  ;;  %v367_v27 = vsel %vm365_vm5, %v350_v26, %v325_v53 }
 0x103   : > { %v366_v30 = vsel %vm365_vm5, %v349_v15, %v324_v14 }
 0x104   : > { %v3399_v36 = vpop.xlane.xlu1 %300 }
 0x105   : > { %v3401_v37 = vpop.xlane.xlu0 %297  ;;  %v305_v26 = vmul.f32 0.00390625, %v3399_v36 }
 0x106   : > { %v304_v39 = vmul.f32 0.00390625, %v3401_v37 }
 0x108   : > { %v389_v42 = vpop.xlane.xlu1 %388 }
 0x109   : > { %v3403_v43 = vpop.xlane.xlu0 %385  ;;  %v397_v33 = vmul.f32 0.00390625, %v389_v42  ;;  %v274_v42 = vsel %vm271_vm1, %v257_v3, 0.0  ;;  %vm611_vm1 = vcmask 261120  }
 0x10a   : > { %v396_v31 = vmul.f32 0.00390625, %v3403_v43 }
 0x10c   : > { %v3405_v44 = vpop.xlane.xlu1 %269 }
 0x10d   : > { %v3407_v45 = vpop.xlane.xlu0 %266 }
 0x10e   : > { %v279_v14 = vsel %vm276_vm2, %v3407_v45, %v274_v42 }
 0x10f   : > { %v321_v37 = vsel %vm318_vm3, %v304_v39, %v279_v14 }
 0x110   : > { %v358_v46 = vpop.xlane.xlu1 %357 }
 0x111   : > { %v355_v47 = vpop.xlane.xlu0 %354  ;;  %v372_v38 = vsel %vm370_vm6, %v358_v46, %v367_v27 }
 0x112   : > { %v371_v28 = vsel %vm370_vm6, %v355_v47, %v366_v30  ;;  %v414_v46 = vsel %vm412_vm7, %v397_v33, %v372_v38  ;;  %v280_v47 = vsel %vm276_vm2, %v3405_v44, %v275_v29  ;;  %vm690_vm2 = vcmask 15360  }
 0x113   : > { %v413_v53 = vsel %vm412_vm7, %v396_v31, %v371_v28  ;;  %v322_v27 = vsel %vm318_vm3, %v305_v26, %v280_v47  ;;  %vm703_vm3 = vcmask 1041408  }
 0x114   : > { %v3409_v56 = vpop.xlane.xlu1 %347 }
 0x115   : > { %v3411_v57 = vpop.xlane.xlu0 %344  ;;  %v352_v38 = vmul.f32 0.00390625, %v3409_v56 }
 0x116   : > { %v351_v28 = vmul.f32 0.00390625, %v3411_v57 }
 0x118   : > { %v3413_v58 = vpop.xlane.xlu1 %435 }
 0x119   : > { %v3415_v59 = vpop.xlane.xlu0 %432  ;;  %v444_v15 = vmul.f32 0.00390625, %v3413_v58 }
 0x11c   : > { %v3417_v0 = vpop.xlane.xlu1 %316 }
 0x11d   : > { %v3419_v1 = vpop.xlane.xlu0 %313  ;;  %v327_v58 = vsel %vm323_vm4, %v3417_v0, %v322_v27 }
 0x11e   : > { %v326_v30 = vsel %vm323_vm4, %v3419_v1, %v321_v37  ;;  %v369_v31 = vsel %vm365_vm5, %v352_v38, %v327_v58 }
 0x11f   : > { %v368_v57 = vsel %vm365_vm5, %v351_v28, %v326_v30  ;;  %v6074_v28 = vmov 0.0|0.0  }
 0x120   : > { %v405_v4 = vpop.xlane.xlu1 %404 }
 0x121   : > { %v3421_v5 = vpop.xlane.xlu0 %401  ;;  %v419_v43 = vsel %vm417_vm8, %v405_v4, %v414_v46  ;;  %v443_v4 = vmul.f32 0.00390625, %v3415_v59 }
 0x122   : > { %v418_v44 = vsel %vm417_vm8, %v3421_v5, %v413_v53  ;;  %v461_v36 = vsel %vm459_vm9, %v444_v15, %v419_v43 }
 0x123   : > { %v460_v5 = vsel %vm459_vm9, %v443_v4, %v418_v44 }
 0x124   : > { %v3423_v6 = vpop.xlane.xlu1 %394 }
 0x125   : > { %v3425_v7 = vpop.xlane.xlu0 %391  ;;  %v399_v46 = vmul.f32 0.00390625, %v3423_v6 }
 0x126   : > { %v398_v43 = vmul.f32 0.00390625, %v3425_v7 }
 0x128   : > { %v3427_v8 = vpop.xlane.xlu1 %482 }
 0x129   : > { %v3429_v9 = vpop.xlane.xlu0 %479  ;;  %v491_v33 = vmul.f32 0.00390625, %v3427_v8 }
 0x12c   : > { %v3431_v10 = vpop.xlane.xlu1 %363 }
 0x12d   : > { %v3433_v11 = vpop.xlane.xlu0 %360  ;;  %v374_v8 = vsel %vm370_vm6, %v3431_v10, %v369_v31 }
 0x12e   : > { %v373_v42 = vsel %vm370_vm6, %v3433_v11, %v368_v57  ;;  %v416_v53 = vsel %vm412_vm7, %v399_v46, %v374_v8 }
 0x12f   : > { %v415_v7 = vsel %vm412_vm7, %v398_v43, %v373_v42 }
 0x130   : > { %v3435_v12 = vpop.xlane.xlu1 %451 }
 0x131   : > { %v3437_v13 = vpop.xlane.xlu0 %448  ;;  %v466_v59 = vsel %vm464_vm10, %v3435_v12, %v461_v36  ;;  %v490_v12 = vmul.f32 0.00390625, %v3429_v9 }
 0x132   : > { %v465_v0 = vsel %vm464_vm10, %v3437_v13, %v460_v5  ;;  %v508_v56 = vsel %vm506_vm11, %v491_v33, %v466_v59 }
 0x133   : > { %v507_v13 = vsel %vm506_vm11, %v490_v12, %v465_v0 }
 0x134   : > { %v3439_v17 = vpop.xlane.xlu1 %441 }
 0x135   : > { %v3441_v41 = vpop.xlane.xlu0 %438  ;;  %v446_v14 = vmul.f32 0.00390625, %v3439_v17 }
 0x136   : > { %v445_v39 = vmul.f32 0.00390625, %v3441_v41 }
 0x138   : > { %v3443_v40 = vpop.xlane.xlu1 %529 }
 0x139   : > { %v3448_v60 = vpop.xlane.xlu0 %526  ;;  %v538_v47 = vmul.f32 0.00390625, %v3443_v40 }
 0x13c   : > { %v3450_v62 = vpop.xlane.xlu1 %410 }
 0x13d   : > { %v3453_v52 = vpop.xlane.xlu0 %407  ;;  %v421_v40 = vsel %vm417_vm8, %v3450_v62, %v416_v53  ;;  %v610_v53 = vld [vmem:[%s6075_s1] sm:$0x3]  ;;  %s4417_s1 = sld [smem:[#allocation6 + $0x48]] }
 0x13e   : > { %v420_v15 = vsel %vm417_vm8, %v3453_v52, %v415_v7  ;;  %v463_v27 = vsel %vm459_vm9, %v446_v14, %v421_v40 }
 0x140   : > { %v3458_v48 = vpop.xlane.xlu1 %498 }
 0x141   : > { %v3465_v16 = vpop.xlane.xlu0 %495  ;;  %v513_v9 = vsel %vm511_vm12, %v3458_v48, %v508_v56  ;;  %v537_v48 = vmul.f32 0.00390625, %v3448_v60 }
 0x142   : > { %v512_v10 = vsel %vm511_vm12, %v3465_v16, %v507_v13  ;;  %v555_v6 = vsel %vm553_vm13, %v538_v47, %v513_v9 }
 0x143   : > { %v554_v11 = vsel %vm553_vm13, %v537_v48, %v512_v10  ;;  %6209 = sst [smem:[#allocation118_spill]] %s4417_s1  ;;  %s4593_s1 = sld [smem:[#allocation6 + $0x30]] }
 0x144   : > { %v3472_v2 = vpop.xlane.xlu1 %488 }
 0x145   : > { %v3479_v24 = vpop.xlane.xlu0 %485  ;;  %v493_v58 = vmul.f32 0.00390625, %v3472_v2 }
 0x148   : > { %v3486_v25 = vpop.xlane.xlu1 %576 }
 0x149   : > { %v3494_v32 = vpop.xlane.xlu0 %573  ;;  %v585_v44 = vmul.f32 0.00390625, %v3486_v25  ;;  %v462_v25 = vsel %vm459_vm9, %v445_v39, %v420_v15  ;;  %v3038_v39 = vmov 1  }
 0x14a   : > { %v584_v4 = vmul.f32 0.00390625, %v3494_v32  ;;  %2821 = vset.pattern.permute.xlu0 %v3038_v39 }
 0x14c   : > { %v3506_v63 = vpop.xlane.xlu1 %457 }
 0x14d   : > { %v3517_v49 = vpop.xlane.xlu0 %454  ;;  %v468_v52 = vsel %vm464_vm10, %v3506_v63, %v463_v27  ;;  %v492_v63 = vmul.f32 0.00390625, %v3479_v24 }
 0x14e   : > { %v467_v37 = vsel %vm464_vm10, %v3517_v49, %v462_v25 }
 0x14f   : > { %v509_v2 = vsel %vm506_vm11, %v492_v63, %v467_v37 }
 0x150   : > { %v546_v45 = vpop.xlane.xlu1 %545 }
 0x151   : > { %v543_v3 = vpop.xlane.xlu0 %542  ;;  %v560_v60 = vsel %vm558_vm14, %v546_v45, %v555_v6  ;;  %v686_v6 = vld [vmem:[%s6076_s2] sm:$0xff] }
 0x152   : > { %v559_v62 = vsel %vm558_vm14, %v543_v3, %v554_v11  ;;  %v602_v17 = vsel %vm600_vm15, %v585_v44, %v560_v60  ;;  %v510_v3 = vsel %vm506_vm11, %v493_v58, %v468_v52  ;;  %2724 = vmatprep.mubr.msk.f32.mxu1 %vm690_vm2, %v686_v6  ;;  %v687_v60 = vld [vmem:[%s6076_s2 + $0x8] sm:$0xff]  ;;  %v688_v11 = vld [vmem:[%s6076_s2 + $0x10] sm:$0xff] }
 0x153   : > { %v601_v32 = vsel %vm600_vm15, %v584_v4, %v559_v62  ;;  %v3039_v4 = vmov 0  }
 0x154   : > { %v536_v1 = vpop.xlane.xlu1 %535  ;;  %2820 = vset.pattern.permute.xlu1 %v3039_v4 }
 0x155   : > { %v533_v29 = vpop.xlane.xlu0 %532  ;;  %v540_v0 = vmul.f32 0.00390625, %v536_v1 }
 0x156   : > { %v539_v24 = vmul.f32 0.00390625, %v533_v29 }
 0x158   : > { %v505_v26 = vpop.xlane.xlu1 %504 }
 0x159   : > { %v502_v16 = vpop.xlane.xlu0 %501  ;;  %v515_v30 = vsel %vm511_vm12, %v505_v26, %v510_v3 }
 0x15a   : > { %v514_v49 = vsel %vm511_vm12, %v502_v16, %v509_v2  ;;  %v557_v31 = vsel %vm553_vm13, %v540_v0, %v515_v30  ;;  %v689_v16 = vld [vmem:[%s6076_s2 + $0x18] sm:$0xff]  ;;  %v3040_v30 = vmov 2   ;;  %v3041_v2 = vmov 4   ;;  %s4419_s2 = sld [smem:[#allocation6 + $0x4f]] }
 0x15b   : > { %v556_v57 = vsel %vm553_vm13, %v539_v24, %v514_v49  ;;  %v3042_v49 = vmov 3   ;;  %v3044_v24 = vmov 6  }
 0x15c   : > { %v593_v36 = vpop.xlane.xlu1 %592 }
 0x15d   : > { %v607_v45 = vsel %vm605_vm0, %v593_v36, %v602_v17  ;;  %v590_v41 = vpop.xlane.xlu0 %589 }
 0x15e   : > { %v606_v59 = vsel %vm605_vm0, %v590_v41, %v601_v32 }
 0x15f   : > { %v2731_v5 = vpack.c.bf16 %v607_v45, %v606_v59 }
 0x160   : > { %v583_v38 = vpop.xlane.xlu1 %582  ;;  %6210 = sst [smem:[#allocation119_spill]] %s4419_s2  ;;  %s4618_s2 = sld [smem:[#allocation6 + $0x1b]] }
 0x161   : > { %v580_v33 = vpop.xlane.xlu0 %579  ;;  %2732 = vmatpush3.bf16.msra.mxu0 %v2731_v5  ;;  %v587_v9 = vmul.f32 0.00390625, %v583_v38 }
 0x162   : > { %2733 = vmatprep.subr.bf16.mxu0 %v6074_v28  ;;  %v586_v13 = vmul.f32 0.00390625, %v580_v33  ;;  %v3043_v28 = vmov 5  }
 0x164   : > { %v552_v12 = vpop.xlane.xlu1 %551 }
 0x165   : > { %v562_v56 = vsel %vm558_vm14, %v552_v12, %v557_v31  ;;  %v549_v8 = vpop.xlane.xlu0 %548  ;;  %v3045_v12 = vmov 7  }
 0x166   : > { %v561_v1 = vsel %vm558_vm14, %v549_v8, %v556_v57  ;;  %v604_v29 = vsel %vm600_vm15, %v587_v9, %v562_v56 }
 0x167   : > { %v603_v10 = vsel %vm600_vm15, %v586_v13, %v561_v1 }
 0x168   : > { %v599_v46 = vpop.xlane.xlu1 %598 }
 0x169   : > { %v609_v42 = vsel %vm605_vm0, %v599_v46, %v604_v29  ;;  %v596_v47 = vpop.xlane.xlu0 %595 }
 0x16a   : > { %v608_v43 = vsel %vm605_vm0, %v596_v47, %v603_v10 }
 0x16b   : > { %v2734_v48 = vpack.c.bf16 %v609_v42, %v608_v43 }
 0x16d   : > { %2735 = vmatpush3.bf16.msra.mxu0 %v2734_v48 }
 0x170   : > { %2720 = vmatmul.mubr.msk.f32.vlgmr.msra.gmra.mrb[0].mxu0 %vm611_vm1, %v610_v53 }
 0x243   : > { %v681_v26 = vpop.f32.mrb[0].mxu0 }
 0x244   : > { %v685_v40 = vmax.f32 %v681_v26, 0.0  ;;  %v2721_v7 = vpop.f32.mrb[1].mxu0 }
 0x246   : > { %2722 = vmatprep.subr.msk.mxu1 %vm703_vm3, %v685_v40 }
 0x247   : > { %2723 = vmatpush3.msk.msra.mxu1 %vm703_vm3, %v685_v40 }
 0x248   : > { %2725 = vmatmul.mubr.msk.f32.vlgmr.msra.gmra.mrb[0].mxu1 %vm690_vm2, %v687_v60 }
 0x249   : > { %2727 = vmatprep.mubr.msk.f32.mxu1 %vm690_vm2, %v688_v11 }
 0x24c   : > { %2728 = vmatmul.mubr.msk.f32.gmra.mrb[2].mxu1 %vm690_vm2, %v689_v16 }
 0x31b   : > { %v2726_v14 = vpop.f32.mrb[0].mxu1 }
 0x31c   : > { %798 = vrot.lane.b32.xlu1 %v2726_v14, %s3037_s22  ;;  %v773_v15 = vpop.f32.mrb[1].mxu1 }
 0x31d   : > { %796 = vrot.lane.b32.xlu0 %v773_v15, %s3037_s22 }
 0x31f   : > { %v2729_v44 = vpop.f32.mrb[2].mxu1 }
 0x320   : > { %v783_v62 = vpop.f32.mrb[3].mxu1 }
 0x321   : > { %800 = vrot.lane.b32.xlu1 %v783_v62, %s3037_s22 }
 0x325   : > { %802 = vrot.lane.b32.xlu1 %v2729_v44, %s3037_s22  ;;  %s4284_s22 = sld [smem:[#allocation6 + $0x5e]] }
 0x38e   : > { %v799_v27 = vpop.permute.xlu1 %798 }
 0x38f   : > { %v809_v36 = vadd.f32 %v2726_v14, %v799_v27  ;;  %v797_v52 = vpop.permute.xlu0 %796 }
 0x390   : > { %v808_v25 = vadd.f32 %v797_v52, %v773_v15 }
 0x391   : > { %v2533_v17 = vmul.f32 -1.442695, %v809_v36 }
 0x392   : > { %v2532_v32 = vmul.f32 -1.442695, %v808_v25  ;;  %v2877_v25 = vld [vmem:[%s3218_s11 + $0x10] sm:$0xff] }
 0x393   : > { %2851 = vpow2.f32 %v2533_v17  ;;  %v801_v58 = vpop.permute.xlu1 %800  ;;  %v6080_v17 = vlaneseq }
 0x394   : > { %v810_v38 = vadd.f32 %v801_v58, %v783_v62  ;;  %v2875_v62 = vld [vmem:[%s3218_s11 + $0x50] sm:$0xff] }
 0x395   : > { %v3703_v52 = vshrl.u32 %v6080_v17, 7  ;;  %v2884_v17 = vld [vmem:[%s3218_s11 + $0x48] sm:$0xff] }
 0x396   : > { %v2534_v0 = vmul.f32 -1.442695, %v810_v38 }
 0x397   : > { %v803_v37 = vpop.permute.xlu1 %802  ;;  %6081 = vst [vmem:[#allocation39_spill] sm:$0xff] %v3703_v52  ;;  %vm904_vm4 = vcmp.eq.s32.totalorder %v3703_v52, 0  ;;  %vm971_vm5 = vcmp.eq.s32.totalorder %v3703_v52, 1  ;;  %vm1038_vm6 = vcmp.eq.s32.totalorder %v3703_v52, 2  ;;  %vm1105_vm7 = vcmp.eq.s32.totalorder %v3703_v52, 3 }
 0x398   : > { %v811_v63 = vadd.f32 %v2729_v44, %v803_v37  ;;  %vm1172_vm8 = vcmp.eq.s32.totalorder %v3703_v52, 4  ;;  %vm1239_vm9 = vcmp.eq.s32.totalorder %v3703_v52, 5  ;;  %vm1306_vm10 = vcmp.eq.s32.totalorder %v3703_v52, 6 }
 0x399   : > { %vm1373_vm11 = vcmp.eq.s32.totalorder %v3703_v52, 7 }
 0x39a   : > { %v2535_v3 = vmul.f32 -1.442695, %v811_v63 }
 0x39d   : > { %v2852_v45 = vpop.eup %2851 }
 0x39e   : > { %v825_v41 = vadd.f32 1.0, %v2852_v45 }
 0x3a0   : > { %2853 = vrcp.f32 %v825_v41  ;;  %v2878_v41 = vld [vmem:[%s3218_s11 + $0x18] sm:$0xff] }
 0x3a1   : > { %2855 = vpow2.f32 %v2532_v32 }
 0x3a2   : > { %2857 = vpow2.f32 %v2535_v3 }
 0x3aa   : > { %v2854_v59 = vpop.eup %2853 }
 0x3ab   : > { %914 = vperm.xlu0 %2821, %v2854_v59   ;;  %845 = vperm.xlu1 %2820, %v2854_v59   ;;  %v2856_v5 = vpop.eup %2855 }
 0x3ac   : > { %v824_v33 = vadd.f32 1.0, %v2856_v5  ;;  %v2858_v31 = vpop.eup %2857 }
 0x3ad   : > { %v827_v8 = vadd.f32 1.0, %v2858_v31 }
 0x3ae   : > { %2859 = vrcp.f32 %v824_v33 }
 0x3af   : > { %2822 = vset.pattern.permute.xlu0 %v3040_v30  ;;  %2824 = vset.pattern.permute.xlu1 %v3041_v2  ;;  %2861 = vpow2.f32 %v2534_v0  ;;  %v6101_v0 = vld [vmem:[#allocation30_spill] sm:$0xff] }
 0x3b0   : > { %981 = vperm.xlu0 %2822, %v2854_v59   ;;  %1115 = vperm.xlu1 %2824, %v2854_v59   ;;  %2863 = vrcp.f32 %v827_v8  ;;  %v6105_v8 = vld [vmem:[#allocation33_spill] sm:$0xff] }
 0x3b4   : > { %2823 = vset.pattern.permute.xlu0 %v3042_v49  ;;  %2825 = vset.pattern.permute.xlu1 %v3043_v28 }
 0x3b5   : > { %1048 = vperm.xlu0 %2823, %v2854_v59   ;;  %1182 = vperm.xlu1 %2825, %v2854_v59  }
 0x3b8   : > { %v2860_v56 = vpop.eup %2859 }
 0x3b9   : > { %2826 = vset.pattern.permute.xlu0 %v3044_v24  ;;  %2827 = vset.pattern.permute.xlu1 %v3045_v12  ;;  %v2862_v57 = vpop.eup %2861 }
 0x3ba   : > { %1249 = vperm.xlu0 %2826, %v2854_v59   ;;  %1316 = vperm.xlu1 %2827, %v2854_v59   ;;  %v826_v9 = vadd.f32 1.0, %v2862_v57  ;;  %v2864_v1 = vpop.eup %2863 }
 0x3bc   : > { %2865 = vrcp.f32 %v826_v9  ;;  %v6107_v9 = vld [vmem:[#allocation34_spill] sm:$0xff] }
 0x3be   : > { %2828 = vset.pattern.permute.xlu0 %v3039_v4  ;;  %2829 = vset.pattern.permute.xlu1 %v3038_v39 }
 0x3bf   : > { %840 = vperm.xlu0 %2828, %v2860_v56   ;;  %910 = vperm.xlu1 %2829, %v2860_v56  }
 0x3c3   : > { %2832 = vset.pattern.permute.xlu0 %v3041_v2  ;;  %2830 = vset.pattern.permute.xlu1 %v3040_v30 }
 0x3c4   : > { %1111 = vperm.xlu0 %2832, %v2860_v56   ;;  %977 = vperm.xlu1 %2830, %v2860_v56  }
 0x3c6   : > { %v2866_v13 = vpop.eup %2865 }
 0x3c8   : > { %2835 = vset.pattern.permute.xlu0 %v3045_v12  ;;  %2831 = vset.pattern.permute.xlu1 %v3042_v49 }
 0x3c9   : > { %1312 = vperm.xlu0 %2835, %v2860_v56   ;;  %1044 = vperm.xlu1 %2831, %v2860_v56  }
 0x3cd   : > { %2838 = vset.pattern.permute.xlu0 %v3040_v30  ;;  %2833 = vset.pattern.permute.xlu1 %v3043_v28 }
 0x3ce   : > { %1178 = vperm.xlu1 %2833, %v2860_v56   ;;  %989 = vperm.xlu0 %2838, %v2864_v1  }
 0x3d2   : > { %2834 = vset.pattern.permute.xlu1 %v3044_v24  ;;  %2845 = vset.pattern.permute.xlu0 %v3042_v49 }
 0x3d3   : > { %1245 = vperm.xlu1 %2834, %v2860_v56   ;;  %1052 = vperm.xlu0 %2845, %v2866_v13  }
 0x3d7   : > { %2836 = vset.pattern.permute.xlu1 %v3039_v4  ;;  %2848 = vset.pattern.permute.xlu0 %v3044_v24 }
 0x3d8   : > { %1253 = vperm.xlu0 %2848, %v2866_v13   ;;  %855 = vperm.xlu1 %2836, %v2864_v1  }
 0x3dc   : > { %1257 = vperm.xlu0 %2848, %v2864_v1   ;;  %2837 = vset.pattern.permute.xlu1 %v3038_v39 }
 0x3dd   : > { %922 = vperm.xlu1 %2837, %v2864_v1  }
 0x3e0   : > { %2850 = vset.pattern.permute.xlu0 %v3045_v12 }
 0x3e1   : > { %2839 = vset.pattern.permute.xlu1 %v3042_v49  ;;  %v2879_v49 = vld [vmem:[%s3218_s11] sm:$0xff] }
 0x3e2   : > { %1056 = vperm.xlu1 %2839, %v2864_v1  }
 0x3e6   : > { %2840 = vset.pattern.permute.xlu1 %v3041_v2 }
 0x3e7   : > { %1123 = vperm.xlu1 %2840, %v2864_v1  }
 0x3eb   : > { %2841 = vset.pattern.permute.xlu1 %v3043_v28 }
 0x3ec   : > { %1190 = vperm.xlu1 %2841, %v2864_v1  }
 0x3f0   : > { %2842 = vset.pattern.permute.xlu1 %v3039_v4  ;;  %v2876_v4 = vld [vmem:[%s3218_s11 + $0x58] sm:$0xff] }
 0x3f1   : > { %850 = vperm.xlu1 %2842, %v2866_v13  }
 0x3f5   : > { %2843 = vset.pattern.permute.xlu1 %v3038_v39 }
 0x3f6   : > { %918 = vperm.xlu1 %2843, %v2866_v13  }
 0x3fa   : > { %2844 = vset.pattern.permute.xlu1 %v3040_v30 }
 0x3fb   : > { %985 = vperm.xlu1 %2844, %v2866_v13  }
 0x3ff   : > { %2846 = vset.pattern.permute.xlu1 %v3041_v2 }
 0x400   : > { %1119 = vperm.xlu1 %2846, %v2866_v13  }
 0x404   : > { %2847 = vset.pattern.permute.xlu1 %v3043_v28 }
 0x405   : > { %1186 = vperm.xlu1 %2847, %v2866_v13  }
 0x409   : > { %2849 = vset.pattern.permute.xlu1 %v3045_v12  ;;  %v2880_v12 = vld [vmem:[%s3218_s11 + $0x8] sm:$0xff] }
 0x40a   : > { %1320 = vperm.xlu1 %2849, %v2866_v13  }
 0x40e   : > { %1324 = vperm.xlu1 %2849, %v2864_v1  }
 0x42a   : > { %v915_v46 = vpop.permute.xlu0 %914  ;;  %v846_v29 = vpop.permute.xlu1 %845 }
 0x42b   : > { %v3694_v39 = vmul.f32 %v2875_v62, %v915_v46  ;;  %v3697_v27 = vmul.f32 %v2876_v4, %v915_v46  ;;  %v3706_v45 = vmul.f32 %v2877_v25, %v846_v29  ;;  %v3709_v32 = vmul.f32 %v2878_v41, %v846_v29  ;;  %v2881_v46 = vld [vmem:[%s3218_s11 + $0xc0] sm:$0xff] }
 0x42c   : > { %v2883_v62 = vld [vmem:[%s3218_s11 + $0x40] sm:$0xff] }
 0x42d   : > { %6077 = vst [vmem:[#allocation36_spill] sm:$0xff] %v3694_v39  ;;  %6078 = vst [vmem:[#allocation37_spill] sm:$0xff] %v3697_v27 }
 0x42e   : > { %6082 = vst [vmem:[#allocation40_spill] sm:$0xff] %v3706_v45  ;;  %6083 = vst [vmem:[#allocation41_spill] sm:$0xff] %v3709_v32 }
 0x42f   : > { %v982_v42 = vpop.permute.xlu0 %981  ;;  %v1116_v47 = vpop.permute.xlu1 %1115 }
 0x430   : > { %v3712_v58 = vmul.f32 %v3241_v20, %v982_v42  ;;  %v3723_v5 = vmul.f32 %v3271_v50, %v1116_v47 }
 0x432   : > { %6084 = vst [vmem:[#allocation42_spill] sm:$0xff] %v3712_v58  ;;  %6087 = vst [vmem:[#allocation45_spill] sm:$0xff] %v3723_v5 }
 0x434   : > { %v1049_v10 = vpop.permute.xlu0 %1048  ;;  %v1183_v43 = vpop.permute.xlu1 %1182 }
 0x435   : > { %v3735_v38 = vmul.f32 %v3255_v34, %v1049_v10  ;;  %v3744_v50 = vmul.f32 %v3258_v35, %v1049_v10 }
 0x437   : > { %6091 = vst [vmem:[#allocation49_spill] sm:$0xff] %v3735_v38  ;;  %6094 = vst [vmem:[#allocation52_spill] sm:$0xff] %v3744_v50 }
 0x439   : > { %v1250_v48 = vpop.permute.xlu0 %1249  ;;  %v1317_v53 = vpop.permute.xlu1 %1316 }
 0x43a   : > { %v3726_v3 = vmul.f32 %v3326_v19, %v1250_v48  ;;  %v3738_v30 = vmul.f32 %v3323_v18, %v1250_v48  ;;  %v6095_v19 = vld [vmem:[#allocation27_spill] sm:$0xff] }
 0x43b   : > { %v3747_v2 = vmul.f32 %v6095_v19, %v1183_v43 }
 0x43c   : > { %6088 = vst [vmem:[#allocation46_spill] sm:$0xff] %v3726_v3  ;;  %6092 = vst [vmem:[#allocation50_spill] sm:$0xff] %v3738_v30 }
 0x43d   : > { %6096 = vst [vmem:[#allocation27_spill] sm:$0xff] %v3747_v2 }
 0x43e   : > { %v841_v6 = vpop.permute.xlu0 %840  ;;  %v911_v26 = vpop.permute.xlu1 %910 }
 0x43f   : > { %v3761_v35 = vmul.f32 %v2879_v49, %v841_v6  ;;  %v3766_v31 = vmul.f32 %v2880_v12, %v841_v6  ;;  %v3798_v4 = vmul.f32 %v2883_v62, %v911_v26  ;;  %v3801_v25 = vmul.f32 %v2884_v17, %v911_v26  ;;  %v6115_v49 = vld [vmem:[#allocation22_spill] sm:$0xff]  ;;  %v6117_v26 = vld [vmem:[#allocation25_spill] sm:$0xff] }
 0x440   : > { %v6119_v12 = vld [vmem:[#allocation26_spill] sm:$0xff]  ;;  %v2885_v17 = vld [vmem:[%s3218_s11 + $0x80] sm:$0xff] }
 0x441   : > { %6103 = vst [vmem:[#allocation53_spill] sm:$0xff] %v3761_v35  ;;  %6104 = vst [vmem:[#allocation54_spill] sm:$0xff] %v3766_v31 }
 0x442   : > { %6111 = vst [vmem:[#allocation57_spill] sm:$0xff] %v3798_v4  ;;  %6112 = vst [vmem:[#allocation58_spill] sm:$0xff] %v3801_v25 }
 0x443   : > { %v3681_v40 = vpop.permute.xlu0 %1111  ;;  %v3683_v7 = vpop.permute.xlu1 %977 }
 0x448   : > { %v3685_v60 = vpop.permute.xlu0 %1312  ;;  %v1045_v11 = vpop.permute.xlu1 %1044 }
 0x449   : > { %v3778_v29 = vmul.f32 %v2881_v46, %v1045_v11 }
 0x44b   : > { %6109 = vst [vmem:[#allocation55_spill] sm:$0xff] %v3778_v29 }
 0x44d   : > { %v3687_v16 = vpop.permute.xlu0 %989  ;;  %v3689_v14 = vpop.permute.xlu1 %1178 }
 0x452   : > { %v3691_v15 = vpop.permute.xlu0 %1052  ;;  %v1246_v44 = vpop.permute.xlu1 %1245 }
 0x453   : > { %v3700_v36 = vmul.f32 %v3332_v23, %v1246_v44  ;;  %v3715_v37 = vmul.f32 %v3329_v22, %v1246_v44  ;;  %v3720_v23 = vmul.f32 %v3244_v21, %v982_v42  ;;  %v3732_v22 = vmul.f32 %v3274_v51, %v1116_v47  ;;  %v6099_v51 = vld [vmem:[#allocation29_spill] sm:$0xff]  ;;  %v2882_v42 = vld [vmem:[%s3218_s11 + $0xc8] sm:$0xff] }
 0x454   : > { %v3755_v18 = vmul.f32 %v6099_v51, %v1317_v53  ;;  %v3781_v47 = vmul.f32 %v2882_v42, %v1045_v11  ;;  %v3795_v11 = vadd.f32 %v3706_v45, %v3761_v35  ;;  %v6113_v51 = vld [vmem:[#allocation21_spill] sm:$0xff] }
 0x455   : > { %6079 = vst [vmem:[#allocation38_spill] sm:$0xff] %v3700_v36  ;;  %6085 = vst [vmem:[#allocation43_spill] sm:$0xff] %v3715_v37  ;;  %v1277_v34 = vadd.f32 %v3726_v3, %v3700_v36  ;;  %v1268_v28 = vadd.f32 %v3738_v30, %v3715_v37 }
 0x456   : > { %6086 = vst [vmem:[#allocation44_spill] sm:$0xff] %v3720_v23  ;;  %6090 = vst [vmem:[#allocation48_spill] sm:$0xff] %v3732_v22  ;;  %v1076_v46 = vadd.f32 %v3744_v50, %v3781_v47 }
 0x457   : > { %v1254_v59 = vpop.permute.xlu0 %1253  ;;  %v3717_v63 = vpop.permute.xlu1 %855  ;;  %6100 = vst [vmem:[#allocation29_spill] sm:$0xff] %v3755_v18  ;;  %6110 = vst [vmem:[#allocation56_spill] sm:$0xff] %v3781_v47 }
 0x458   : > { %v3729_v20 = vmul.f32 %v3378_v55, %v1254_v59  ;;  %v3741_v21 = vmul.f32 %v3375_v54, %v1254_v59  ;;  %v6097_v55 = vld [vmem:[#allocation28_spill] sm:$0xff]  ;;  %v3758_v54 = vmul.f32 %v6101_v0, %v1317_v53  ;;  %v3806_v59 = vadd.f32 %v3709_v32, %v3766_v31 }
 0x459   : > { %v3750_v33 = vmul.f32 %v6097_v55, %v1183_v43  ;;  %v3810_v0 = vmul.f32 %v6113_v51, %v3681_v40  ;;  %v2886_v51 = vld [vmem:[%s3218_s11 + $0x88] sm:$0xff] }
 0x45a   : > { %6089 = vst [vmem:[#allocation47_spill] sm:$0xff] %v3729_v20  ;;  %6093 = vst [vmem:[#allocation51_spill] sm:$0xff] %v3741_v21  ;;  %v1278_v56 = vadd.f32 %v1277_v34, %v3729_v20  ;;  %v1269_v10 = vadd.f32 %v1268_v28, %v3741_v21  ;;  %v1288_v43 = vmax.f32 %v3715_v37, %v3741_v21 }
 0x45b   : > { %6098 = vst [vmem:[#allocation28_spill] sm:$0xff] %v3750_v33  ;;  %6102 = vst [vmem:[#allocation30_spill] sm:$0xff] %v3758_v54  ;;  %v1258_v24 = vpop.permute.xlu0 %1257  ;;  %v1297_v48 = vmax.f32 %v3700_v36, %v3729_v20  ;;  %v3814_v28 = vmul.f32 %v6115_v49, %v3681_v40  ;;  %v3840_v49 = vmul.f32 %v2886_v51, %v3683_v7  ;;  %v2887_v20 = vld [vmem:[%s3218_s11 + $0xb0] sm:$0xff] }
 0x45c   : > { %v3770_v57 = vmul.f32 %v6105_v8, %v1258_v24  ;;  %v3773_v1 = vmul.f32 %v6107_v9, %v1258_v24  ;;  %v3775_v13 = vpop.permute.xlu1 %922  ;;  %6114 = vst [vmem:[#allocation21_spill] sm:$0xff] %v3810_v0  ;;  %v3818_v24 = vmul.f32 %v6117_v26, %v3691_v15  ;;  %v1067_v9 = vadd.f32 %v3735_v38, %v3778_v29  ;;  %v6127_v26 = vld [vmem:[#allocation31_spill] sm:$0xff] }
 0x45d   : > { %6116 = vst [vmem:[#allocation22_spill] sm:$0xff] %v3814_v28  ;;  %6126 = vst [vmem:[#allocation60_spill] sm:$0xff] %v3840_v49  ;;  %v3862_v51 = vadd.f32 %v3723_v5, %v3810_v0  ;;  %v3894_v21 = vmul.f32 %v2887_v20, %v3687_v16  ;;  %v2889_v20 = vld [vmem:[%s3218_s11 + $0x140] sm:$0xff] }
 0x45e   : > { %6106 = vst [vmem:[#allocation33_spill] sm:$0xff] %v3770_v57  ;;  %6108 = vst [vmem:[#allocation34_spill] sm:$0xff] %v3773_v1  ;;  %v1279_v53 = vadd.f32 %v1278_v56, %v3773_v1  ;;  %v1289_v6 = vmax.f32 %v3738_v30, %v3770_v57  ;;  %v1298_v44 = vmax.f32 %v3726_v3, %v3773_v1  ;;  %v2888_v3 = vld [vmem:[%s3218_s11 + $0xb8] sm:$0xff] }
 0x45f   : > { %v1270_v41 = vadd.f32 %v1269_v10, %v3770_v57  ;;  %6118 = vst [vmem:[#allocation25_spill] sm:$0xff] %v3818_v24  ;;  %v3822_v56 = vmul.f32 %v6119_v12, %v3691_v15  ;;  %v3836_v15 = vmul.f32 %v2885_v17, %v3683_v7  ;;  %v3844_v12 = vmul.f32 %v6127_v26, %v3685_v60 }
 0x460   : > { %v1280_v19 = vrot.slane %v1279_v53, 4  ;;  %v1290_v55 = vmax.f32 %v1288_v43, %v1289_v6  ;;  %v1299_v34 = vmax.f32 %v1297_v48, %v1298_v44  ;;  %v6121_v48 = vld [vmem:[#allocation23_spill] sm:$0xff]  ;;  %v6123_v44 = vld [vmem:[#allocation24_spill] sm:$0xff]  ;;  %v3854_v17 = vadd.f32 %v3694_v39, %v3798_v4  ;;  %6133 = vst [vmem:[#allocation63_spill] sm:$0xff] %v3894_v21 }
 0x461   : > { %6120 = vst [vmem:[#allocation26_spill] sm:$0xff] %v3822_v56  ;;  %v1057_v8 = vpop.permute.xlu1 %1056  ;;  %v1271_v43 = vrot.slane %v1270_v41, 4  ;;  %6125 = vst [vmem:[#allocation59_spill] sm:$0xff] %v3836_v15  ;;  %v3858_v7 = vadd.f32 %v3697_v27, %v3801_v25  ;;  %v3878_v26 = vadd.f32 %v3720_v23, %v3840_v49  ;;  %v3898_v30 = vmul.f32 %v2888_v3, %v3687_v16  ;;  %v2890_v16 = vld [vmem:[%s3218_s11 + $0x148] sm:$0xff] }
 0x462   : > { %v1291_v42 = vrot.slane %v1290_v55, 4  ;;  %v1300_v10 = vrot.slane %v1299_v34, 4  ;;  %v1281_v40 = vadd.f32 %v1280_v19, %v1279_v53  ;;  %v3829_v6 = vmul.f32 %v6121_v48, %v1057_v8  ;;  %6128 = vst [vmem:[#allocation31_spill] sm:$0xff] %v3844_v12  ;;  %v6129_v53 = vld [vmem:[#allocation32_spill] sm:$0xff] }
 0x463   : > { %v3832_v62 = vmul.f32 %v6123_v44, %v1057_v8  ;;  %v3848_v19 = vmul.f32 %v6129_v53, %v3685_v60  ;;  %v1068_v48 = vadd.f32 %v1067_v9, %v3818_v24  ;;  %v1077_v8 = vadd.f32 %v1076_v46, %v3822_v56  ;;  %6134 = vst [vmem:[#allocation64_spill] sm:$0xff] %v3898_v30 }
 0x464   : > { %6122 = vst [vmem:[#allocation23_spill] sm:$0xff] %v3829_v6  ;;  %v1292_v44 = vmax.f32 %v1290_v55, %v1291_v42  ;;  %v1301_v1 = vmax.f32 %v1299_v34, %v1300_v10  ;;  %v3866_v60 = vadd.f32 %v3732_v22, %v3814_v28  ;;  %v1272_v34 = vadd.f32 %v1271_v43, %v1270_v41 }
 0x465   : > { %6124 = vst [vmem:[#allocation24_spill] sm:$0xff] %v3832_v62  ;;  %6130 = vst [vmem:[#allocation32_spill] sm:$0xff] %v3848_v19  ;;  %v1282_v9 = vrot.slane %v1281_v40, 2  ;;  %v1069_v46 = vadd.f32 %v1068_v48, %v3829_v6  ;;  %v1078_v42 = vadd.f32 %v1077_v8, %v3832_v62  ;;  %v3874_v10 = vadd.f32 %v3712_v58, %v3836_v15 }
 0x466   : > { %v3868_v55 = vpop.permute.xlu1 %1123  ;;  %v3882_v53 = vadd.f32 %v3755_v18, %v3844_v12  ;;  %v3886_v41 = vadd.f32 %v3758_v54, %v3848_v19  ;;  %v1293_v43 = vrot.slane %v1292_v44, 2  ;;  %v1302_v48 = vrot.slane %v1301_v1, 2 }
 0x467   : > { %v1088_v8 = vmax.f32 %v3735_v38, %v3829_v6  ;;  %v1097_v57 = vmax.f32 %v3744_v50, %v3832_v62  ;;  %v1087_v36 = vmax.f32 %v3778_v29, %v3818_v24  ;;  %v1096_v37 = vmax.f32 %v3781_v47, %v3822_v56  ;;  %v2891_v24 = vld [vmem:[%s3218_s11 + $0x30] sm:$0xff]  ;;  %v2892_v56 = vld [vmem:[%s3218_s11 + $0x38] sm:$0xff] }
 0x468   : > { %6131 = vst [vmem:[#allocation61_spill] sm:$0xff] %v3882_v53  ;;  %6132 = vst [vmem:[#allocation62_spill] sm:$0xff] %v3886_v41  ;;  %v1273_v6 = vrot.slane %v1272_v34, 2  ;;  %v1283_v38 = vadd.f32 %v1282_v9, %v1281_v40  ;;  %v1070_v61 = vrot.slane %v1069_v46, 4  ;;  %v1079_v62 = vrot.slane %v1078_v42, 4 }
 0x469   : > { %v3908_v54 = vmul.f32 %v2889_v20, %v3689_v14  ;;  %v3912_v3 = vmul.f32 %v2890_v16, %v3689_v14  ;;  %v3916_v29 = vmul.f32 %v2891_v24, %v3717_v63  ;;  %v3920_v40 = vmul.f32 %v2892_v56, %v3717_v63  ;;  %v2893_v14 = vld [vmem:[%s3218_s11 + $0x70] sm:$0xff]  ;;  %v2894_v24 = vld [vmem:[%s3218_s11 + $0x78] sm:$0xff] }
 0x46a   : > { %v1294_v9 = vmax.f32 %v1292_v44, %v1293_v43  ;;  %v1303_v47 = vmax.f32 %v1301_v1, %v1302_v48  ;;  %v1089_v18 = vmax.f32 %v1087_v36, %v1088_v8  ;;  %v1098_v19 = vmax.f32 %v1096_v37, %v1097_v57 }
 0x46b   : > { %v3904_v50 = vpop.permute.xlu1 %1190  ;;  %6135 = vst [vmem:[#allocation65_spill] sm:$0xff] %v3908_v54  ;;  %6136 = vst [vmem:[#allocation66_spill] sm:$0xff] %v3912_v3  ;;  %v3928_v16 = vmul.f32 %v2893_v14, %v3775_v13  ;;  %v3932_v41 = vmul.f32 %v2894_v24, %v3775_v13  ;;  %v3934_v63 = vadd.f32 %v1273_v6, %v1272_v34  ;;  %v1284_v1 = vrot.slane %v1283_v38, 1  ;;  %v2896_v14 = vld [vmem:[%s3218_s11 + $0x28] sm:$0xff] }
 0x46c   : > { %6137 = vst [vmem:[#allocation67_spill] sm:$0xff] %v3916_v29  ;;  %6138 = vst [vmem:[#allocation68_spill] sm:$0xff] %v3920_v40  ;;  %v1071_v36 = vadd.f32 %v1070_v61, %v1069_v46  ;;  %v1080_v37 = vadd.f32 %v1079_v62, %v1078_v42  ;;  %v3938_v57 = vadd.f32 %v3747_v2, %v3908_v54  ;;  %v1295_v34 = vrot.slane %v1294_v9, 1  ;;  %v2895_v42 = vld [vmem:[%s3218_s11 + $0x20] sm:$0xff] }
 0x46d   : > { %6139 = vst [vmem:[#allocation69_spill] sm:$0xff] %v3928_v16  ;;  %6140 = vst [vmem:[#allocation70_spill] sm:$0xff] %v3932_v41  ;;  %v3942_v56 = vadd.f32 %v3750_v33, %v3912_v3  ;;  %v887_v44 = vmax.f32 %v3706_v45, %v3916_v29  ;;  %v896_v13 = vmax.f32 %v3709_v32, %v3920_v40  ;;  %v1304_v43 = vrot.slane %v1303_v47, 1 }
 0x46e   : > { %6141 = vst [vmem:[#allocation71_spill] sm:$0xff] %v3934_v63  ;;  %v1090_v48 = vrot.slane %v1089_v18, 4  ;;  %v1099_v61 = vrot.slane %v1098_v19, 4  ;;  %v954_v62 = vmax.f32 %v3694_v39, %v3928_v16  ;;  %v963_v46 = vmax.f32 %v3697_v27, %v3932_v41 }
 0x46f   : > { %6142 = vst [vmem:[#allocation72_spill] sm:$0xff] %v3942_v56  ;;  %v3959_v20 = vadd.f32 %v1284_v1, %v1283_v38  ;;  %v1072_v32 = vrot.slane %v1071_v36, 2  ;;  %v1081_v45 = vrot.slane %v1080_v37, 2  ;;  %v3971_v38 = vmax.f32 %v1303_v47, %v1304_v43  ;;  %v2897_v56 = vld [vmem:[%s3218_s11 + $0x60] sm:$0xff] }
 0x470   : > { %v851_v6 = vpop.permute.xlu1 %850  ;;  %v1091_v1 = vmax.f32 %v1089_v18, %v1090_v48  ;;  %v1100_v12 = vmax.f32 %v1098_v19, %v1099_v61 }
 0x471   : > { %v3953_v8 = vmul.f32 %v2895_v42, %v851_v6  ;;  %v3956_v24 = vmul.f32 %v2896_v14, %v851_v6  ;;  %6145 = vst [vmem:[#allocation75_spill] sm:$0xff] %v3959_v20  ;;  %v3969_v14 = vmax.f32 %v1294_v9, %v1295_v34  ;;  %v1073_v3 = vadd.f32 %v1072_v32, %v1071_v36 }
 0x472   : > { %v1082_v54 = vadd.f32 %v1081_v45, %v1080_v37  ;;  %v1101_v36 = vrot.slane %v1100_v12, 2 }
 0x473   : > { %6143 = vst [vmem:[#allocation73_spill] sm:$0xff] %v3953_v8  ;;  %6144 = vst [vmem:[#allocation74_spill] sm:$0xff] %v3956_v24  ;;  %v867_v53 = vadd.f32 %v3795_v11, %v3953_v8  ;;  %v876_v39 = vadd.f32 %v3806_v59, %v3956_v24  ;;  %v886_v42 = vmax.f32 %v3761_v35, %v3953_v8  ;;  %v2898_v35 = vld [vmem:[%s3218_s11 + $0x68] sm:$0xff] }
 0x474   : > { %v895_v6 = vmax.f32 %v3766_v31, %v3956_v24 }
 0x475   : > { %v919_v27 = vpop.permute.xlu1 %918  ;;  %v868_v20 = vadd.f32 %v867_v53, %v3916_v29  ;;  %v877_v11 = vadd.f32 %v876_v39, %v3920_v40  ;;  %v888_v63 = vmax.f32 %v886_v42, %v887_v44  ;;  %v1092_v53 = vrot.slane %v1091_v1, 2 }
 0x476   : > { %v897_v59 = vmax.f32 %v895_v6, %v896_v13  ;;  %v3976_v8 = vmul.f32 %v2897_v56, %v919_v27  ;;  %v3979_v24 = vmul.f32 %v2898_v35, %v919_v27  ;;  %v1074_v13 = vrot.slane %v1073_v3, 1 }
 0x477   : > { %v869_v9 = vrot.slane %v868_v20, 4  ;;  %v878_v47 = vrot.slane %v877_v11, 4  ;;  %v889_v34 = vrot.slane %v888_v63, 4 }
 0x478   : > { %6146 = vst [vmem:[#allocation76_spill] sm:$0xff] %v3976_v8  ;;  %6147 = vst [vmem:[#allocation77_spill] sm:$0xff] %v3979_v24  ;;  %v898_v18 = vrot.slane %v897_v59, 4  ;;  %v934_v19 = vadd.f32 %v3854_v17, %v3976_v8  ;;  %v943_v39 = vadd.f32 %v3858_v7, %v3979_v24  ;;  %v953_v32 = vmax.f32 %v3798_v4, %v3976_v8 }
 0x479   : > { %v962_v45 = vmax.f32 %v3801_v25, %v3979_v24  ;;  %v870_v27 = vadd.f32 %v869_v9, %v868_v20  ;;  %v879_v35 = vadd.f32 %v878_v47, %v877_v11  ;;  %v1083_v7 = vrot.slane %v1082_v54, 1  ;;  %v2899_v11 = vld [vmem:[%s3218_s11 + $0x130] sm:$0xff] }
 0x47a   : > { %v935_v37 = vadd.f32 %v934_v19, %v3928_v16  ;;  %v944_v56 = vadd.f32 %v943_v39, %v3932_v41  ;;  %v955_v17 = vmax.f32 %v953_v32, %v954_v62  ;;  %v890_v43 = vmax.f32 %v888_v63, %v889_v34  ;;  %v2900_v19 = vld [vmem:[%s3218_s11 + $0x138] sm:$0xff]  ;;  %v2901_v32 = vld [vmem:[%s3218_s11 + $0x170] sm:$0xff] }
 0x47b   : > { %v964_v44 = vmax.f32 %v962_v45, %v963_v46  ;;  %v899_v48 = vmax.f32 %v897_v59, %v898_v18  ;;  %v1093_v20 = vmax.f32 %v1091_v1, %v1092_v53  ;;  %v1102_v9 = vmax.f32 %v1100_v12, %v1101_v36  ;;  %v2902_v1 = vld [vmem:[%s3218_s11 + $0x178] sm:$0xff] }
 0x47c   : > { %v936_v61 = vrot.slane %v935_v37, 4  ;;  %v945_v42 = vrot.slane %v944_v56, 4  ;;  %v956_v6 = vrot.slane %v955_v17, 4  ;;  %v3993_v47 = vmul.f32 %v2899_v11, %v3868_v55 }
 0x47d   : > { %v965_v24 = vrot.slane %v964_v44, 4  ;;  %v3997_v62 = vmul.f32 %v2900_v19, %v3868_v55  ;;  %v871_v46 = vrot.slane %v870_v27, 2  ;;  %v880_v39 = vrot.slane %v879_v35, 2 }
 0x47e   : > { %6148 = vst [vmem:[#allocation78_spill] sm:$0xff] %v3993_v47  ;;  %v937_v63 = vadd.f32 %v936_v61, %v935_v37  ;;  %v946_v59 = vadd.f32 %v945_v42, %v944_v56  ;;  %v1075_v34 = vadd.f32 %v1074_v13, %v1073_v3  ;;  %v1084_v18 = vadd.f32 %v1083_v7, %v1082_v54  ;;  %v986_v3 = vpop.permute.xlu1 %985 }
 0x47f   : > { %6149 = vst [vmem:[#allocation79_spill] sm:$0xff] %v3997_v62  ;;  %v4001_v45 = vmul.f32 %v2901_v32, %v3904_v50  ;;  %v4005_v12 = vmul.f32 %v2902_v1, %v3904_v50  ;;  %v891_v53 = vrot.slane %v890_v43, 2  ;;  %v900_v36 = vrot.slane %v899_v48, 2 }
 0x480   : > { %v957_v11 = vmax.f32 %v955_v17, %v956_v6  ;;  %v966_v41 = vmax.f32 %v964_v44, %v965_v24  ;;  %v1094_v55 = vrot.slane %v1093_v20, 1  ;;  %v1103_v19 = vrot.slane %v1102_v9, 1 }
 0x481   : > { %6150 = vst [vmem:[#allocation80_spill] sm:$0xff] %v4001_v45  ;;  %6151 = vst [vmem:[#allocation81_spill] sm:$0xff] %v4005_v12  ;;  %v1155_v37 = vmax.f32 %v3723_v5, %v3993_v47  ;;  %v1164_v54 = vmax.f32 %v3732_v22, %v3997_v62  ;;  %v872_v56 = vadd.f32 %v871_v46, %v870_v27  ;;  %v938_v7 = vrot.slane %v937_v63, 2 }
 0x482   : > { %v881_v13 = vadd.f32 %v880_v39, %v879_v35  ;;  %v947_v50 = vrot.slane %v946_v59, 2  ;;  %v4011_v61 = vmul.f32 0.03125, %v1075_v34  ;;  %v4013_v42 = vmul.f32 0.03125, %v1084_v18  ;;  %v2903_v39 = vld [vmem:[%s3218_s11 + $0xa0] sm:$0xff]  ;;  %v2904_v18 = vld [vmem:[%s3218_s11 + $0xa8] sm:$0xff] }
 0x483   : > { %v4019_v44 = vmax.f32 %v890_v43, %v891_v53  ;;  %v4021_v6 = vmax.f32 %v899_v48, %v900_v36  ;;  %v958_v32 = vrot.slane %v957_v11, 2  ;;  %v967_v27 = vrot.slane %v966_v41, 2  ;;  %v1120_v53 = vpop.permute.xlu1 %1119 }
 0x484   : > { %v4023_v46 = vmax.f32 %v1093_v20, %v1094_v55  ;;  %v4025_v35 = vmax.f32 %v1102_v9, %v1103_v19  ;;  %v4028_v34 = vmul.f32 %v2903_v39, %v986_v3  ;;  %v4031_v1 = vmul.f32 %v2904_v18, %v986_v3 }
 0x485   : > { %v873_v24 = vrot.slane %v872_v56, 1  ;;  %v882_v22 = vrot.slane %v881_v13, 1  ;;  %v939_v5 = vadd.f32 %v938_v7, %v937_v63  ;;  %v948_v17 = vadd.f32 %v947_v50, %v946_v59 }
 0x486   : > { %6152 = vst [vmem:[#allocation82_spill] sm:$0xff] %v4028_v34  ;;  %6153 = vst [vmem:[#allocation83_spill] sm:$0xff] %v4031_v1  ;;  %v1001_v43 = vadd.f32 %v3874_v10, %v4028_v34  ;;  %v1010_v48 = vadd.f32 %v3878_v26, %v4031_v1  ;;  %v1020_v20 = vmax.f32 %v3836_v15, %v4028_v34  ;;  %v893_v36 = vrot.slane %v4019_v44, 1 }
 0x487   : > { %v1029_v9 = vmax.f32 %v3840_v49, %v4031_v1  ;;  %v902_v63 = vrot.slane %v4021_v6, 1  ;;  %v959_v59 = vmax.f32 %v957_v11, %v958_v32  ;;  %v968_v55 = vmax.f32 %v966_v41, %v967_v27  ;;  %v2905_v1 = vld [vmem:[%s3218_s11 + $0x120] sm:$0xff]  ;;  %v2906_v49 = vld [vmem:[%s3218_s11 + $0x128] sm:$0xff] }
 0x488   : > { %v1002_v19 = vadd.f32 %v1001_v43, %v3894_v21  ;;  %v1011_v10 = vadd.f32 %v1010_v48, %v3898_v30  ;;  %v6154_v26 = vmax.f32 %v3712_v58, %v3894_v21  ;;  %v6155_v7 = vmax.f32 %v3720_v23, %v3898_v30 }
 0x489   : > { %v940_v39 = vrot.slane %v939_v5, 1  ;;  %v949_v18 = vrot.slane %v948_v17, 1  ;;  %v4052_v34 = vmul.f32 %v2905_v1, %v1120_v53  ;;  %v4055_v11 = vmul.f32 %v2906_v49, %v1120_v53 }
 0x48a   : > { %v1022_v3 = vmax.f32 %v1020_v20, %v6154_v26  ;;  %v1031_v50 = vmax.f32 %v1029_v9, %v6155_v7  ;;  %v1003_v41 = vrot.slane %v1002_v19, 4  ;;  %v1012_v32 = vrot.slane %v1011_v10, 4 }
 0x48b   : > { %6156 = vst [vmem:[#allocation84_spill] sm:$0xff] %v4052_v34  ;;  %6157 = vst [vmem:[#allocation85_spill] sm:$0xff] %v4055_v11  ;;  %v1135_v48 = vadd.f32 %v3862_v51, %v4052_v34  ;;  %v1144_v20 = vadd.f32 %v3866_v60, %v4055_v11  ;;  %v1154_v9 = vmax.f32 %v3810_v0, %v4052_v34 }
 0x48c   : > { %v1023_v27 = vrot.slane %v1022_v3, 4  ;;  %v1032_v43 = vrot.slane %v1031_v50, 4  ;;  %v1163_v1 = vmax.f32 %v3814_v28, %v4055_v11  ;;  %v1004_v49 = vadd.f32 %v1003_v41, %v1002_v19 }
 0x48d   : > { %v1013_v53 = vadd.f32 %v1012_v32, %v1011_v10  ;;  %v1136_v30 = vadd.f32 %v1135_v48, %v3993_v47  ;;  %v1145_v21 = vadd.f32 %v1144_v20, %v3997_v62  ;;  %v1156_v51 = vmax.f32 %v1154_v9, %v1155_v37  ;;  %v1187_v48 = vpop.permute.xlu1 %1186 }
 0x48e   : > { %v1024_v26 = vmax.f32 %v1022_v3, %v1023_v27  ;;  %v1033_v7 = vmax.f32 %v1031_v50, %v1032_v43  ;;  %v1165_v23 = vmax.f32 %v1163_v1, %v1164_v54  ;;  %v874_v58 = vadd.f32 %v873_v24, %v872_v56 }
 0x48f   : > { %v883_v60 = vadd.f32 %v882_v22, %v881_v13  ;;  %v1005_v34 = vrot.slane %v1004_v49, 2  ;;  %v1014_v0 = vrot.slane %v1013_v53, 2  ;;  %v1157_v8 = vrot.slane %v1156_v51, 4 }
 0x490   : > { %v1025_v15 = vrot.slane %v1024_v26, 2  ;;  %v1034_v16 = vrot.slane %v1033_v7, 2  ;;  %v1166_v11 = vrot.slane %v1165_v23, 4  ;;  %v960_v19 = vrot.slane %v959_v59, 1 }
 0x491   : > { %v969_v10 = vrot.slane %v968_v55, 1  ;;  %v1137_v3 = vrot.slane %v1136_v30, 4  ;;  %v1146_v50 = vrot.slane %v1145_v21, 4  ;;  %v941_v41 = vadd.f32 %v940_v39, %v939_v5 }
 0x492   : > { %v950_v32 = vadd.f32 %v949_v18, %v948_v17  ;;  %v1026_v27 = vmax.f32 %v1024_v26, %v1025_v15  ;;  %v1035_v43 = vmax.f32 %v1033_v7, %v1034_v16  ;;  %v894_v37 = vmax.f32 %v4019_v44, %v893_v36 }
 0x493   : > { %v903_v54 = vmax.f32 %v4021_v6, %v902_v63  ;;  %v1158_v22 = vmax.f32 %v1156_v51, %v1157_v8  ;;  %v1167_v56 = vmax.f32 %v1165_v23, %v1166_v11  ;;  %v884_v13 = vmul.f32 0.03125, %v874_v58  ;;  %v2907_v51 = vld [vmem:[%s3218_s11 + $0x160] sm:$0xff] }
 0x494   : > { %v885_v24 = vmul.f32 0.03125, %v883_v60  ;;  %v1006_v20 = vadd.f32 %v1005_v34, %v1004_v49  ;;  %v1015_v9 = vadd.f32 %v1014_v0, %v1013_v53  ;;  %v961_v1 = vmax.f32 %v959_v59, %v960_v19  ;;  %v1321_v34 = vpop.permute.xlu1 %1320 }
 0x495   : > { %v970_v62 = vmax.f32 %v968_v55, %v969_v10  ;;  %v1138_v47 = vadd.f32 %v1137_v3, %v1136_v30  ;;  %v1147_v5 = vadd.f32 %v1146_v50, %v1145_v21  ;;  %v951_v17 = vmul.f32 0.03125, %v941_v41  ;;  %v2909_v50 = vld [vmem:[%s3218_s11 + $0x1e0] sm:$0xff] }
 0x496   : > { %v952_v15 = vmul.f32 0.03125, %v950_v32  ;;  %v1027_v16 = vrot.slane %v1026_v27, 1  ;;  %v1036_v39 = vrot.slane %v1035_v43, 1  ;;  %v907_v44 = vsel %vm904_vm4, %v894_v37, 0.0  ;;  %v2910_v32 = vld [vmem:[%s3218_s11 + $0x1e8] sm:$0xff] }
 0x497   : > { %v908_v6 = vsel %vm904_vm4, %v903_v54, 0.0  ;;  %v1159_v8 = vrot.slane %v1158_v22, 2  ;;  %v1168_v23 = vrot.slane %v1167_v56, 2  ;;  %v905_v58 = vsel %vm904_vm4, %v884_v13, 0.0 }
 0x498   : > { %v906_v30 = vsel %vm904_vm4, %v885_v24, 0.0  ;;  %v1007_v21 = vrot.slane %v1006_v20, 1  ;;  %v1016_v0 = vrot.slane %v1015_v9, 1  ;;  %v974_v36 = vsel %vm971_vm5, %v961_v1, %v907_v44 }
 0x499   : > { %v975_v63 = vsel %vm971_vm5, %v970_v62, %v908_v6  ;;  %v1139_v59 = vrot.slane %v1138_v47, 2  ;;  %v1148_v55 = vrot.slane %v1147_v5, 2  ;;  %v4086_v18 = vsel %vm971_vm5, %v951_v17, %v905_v58  ;;  %v2908_v62 = vld [vmem:[%s3218_s11 + $0x168] sm:$0xff] }
 0x49a   : > { %v4090_v11 = vsel %vm971_vm5, %v952_v15, %v906_v30  ;;  %v1028_v49 = vmax.f32 %v1026_v27, %v1027_v16  ;;  %v1037_v53 = vmax.f32 %v1035_v43, %v1036_v39  ;;  %v4092_v26 = vmax.f32 %v1158_v22, %v1159_v8  ;;  %v6167_v8 = vld [vmem:[#allocation61_spill] sm:$0xff]  ;;  %v6168_v58 = vld [vmem:[#allocation62_spill] sm:$0xff] }
 0x49b   : > { %v4094_v7 = vmax.f32 %v1167_v56, %v1168_v23  ;;  %v4097_v60 = vmul.f32 %v2907_v51, %v1187_v48  ;;  %v4100_v19 = vmul.f32 %v2908_v62, %v1187_v48  ;;  %v4102_v10 = vadd.f32 %v1007_v21, %v1006_v20  ;;  %v6162_v48 = vld [vmem:[#allocation72_spill] sm:$0xff]  ;;  %v6164_v20 = vld [vmem:[#allocation66_spill] sm:$0xff] }
 0x49c   : > { %v4104_v3 = vadd.f32 %v1016_v0, %v1015_v9  ;;  %v4107_v41 = vmul.f32 %v2909_v50, %v1321_v34  ;;  %v4110_v27 = vmul.f32 %v2910_v32, %v1321_v34  ;;  %v4112_v43 = vadd.f32 %v1139_v59, %v1138_v47  ;;  %v6163_v47 = vld [vmem:[#allocation65_spill] sm:$0xff]  ;;  %v2911_v34 = vld [vmem:[%s3218_s11 + $0x1f0] sm:$0xff]  ;;  %v6172_v62 = vld [vmem:[#allocation32_spill] sm:$0xff] }
 0x49d   : > { %6158 = vst [vmem:[#allocation86_spill] sm:$0xff] %v4097_v60  ;;  %6159 = vst [vmem:[#allocation87_spill] sm:$0xff] %v4100_v19  ;;  %v4114_v37 = vadd.f32 %v1148_v55, %v1147_v5  ;;  %v1202_v54 = vadd.f32 %v3938_v57, %v4097_v60  ;;  %v1211_v22 = vadd.f32 %v6162_v48, %v4100_v19  ;;  %v1325_v57 = vpop.permute.xlu1 %1324  ;;  %v1161_v1 = vrot.slane %v4092_v26, 1 }
 0x49e   : > { %6160 = vst [vmem:[#allocation88_spill] sm:$0xff] %v4107_v41  ;;  %6161 = vst [vmem:[#allocation89_spill] sm:$0xff] %v4110_v27  ;;  %v4122_v56 = vsel %vm1038_vm6, %v1028_v49, %v974_v36  ;;  %v4126_v13 = vsel %vm1038_vm6, %v1037_v53, %v975_v63  ;;  %v1221_v24 = vmax.f32 %v6163_v47, %v4097_v60  ;;  %v1170_v5 = vrot.slane %v4094_v7, 1  ;;  %v2912_v63 = vld [vmem:[%s3218_s11 + $0x1f8] sm:$0xff]  ;;  %v6171_v53 = vld [vmem:[#allocation31_spill] sm:$0xff]  ;;  %s4209_s11 = sld [smem:[#allocation6 + $0x3b]] }
 0x49f   : > { %v1230_v9 = vmax.f32 %v6164_v20, %v4100_v19  ;;  %v1203_v17 = vadd.f32 %v1202_v54, %v4001_v45  ;;  %v1212_v15 = vadd.f32 %v1211_v22, %v4005_v12  ;;  %v6165_v16 = vmax.f32 %v3747_v2, %v4001_v45 }
 0x4a0   : > { %v6166_v44 = vmax.f32 %v3750_v33, %v4005_v12  ;;  %v1336_v23 = vadd.f32 %v6167_v8, %v4107_v41  ;;  %v1345_v30 = vadd.f32 %v6168_v58, %v4110_v27  ;;  %v4147_v36 = vmul.f32 %v2911_v34, %v1325_v57 }
 0x4a1   : > { %v1223_v39 = vmax.f32 %v1221_v24, %v6165_v16  ;;  %v1204_v21 = vrot.slane %v1203_v17, 4  ;;  %v1213_v0 = vrot.slane %v1212_v15, 4  ;;  %v4150_v59 = vmul.f32 %v2912_v63, %v1325_v57  ;;  %v6173_v57 = vld [vmem:[#allocation29_spill] sm:$0xff] }
 0x4a2   : > { %v1232_v6 = vmax.f32 %v1230_v9, %v6166_v44  ;;  %6169 = vst [vmem:[#allocation72_spill] sm:$0xff] %v4147_v36  ;;  %v1355_v51 = vmax.f32 %v6171_v53, %v4107_v41  ;;  %v1364_v50 = vmax.f32 %v6172_v62, %v4110_v27  ;;  %v1337_v48 = vadd.f32 %v1336_v23, %v4147_v36  ;;  %v6174_v44 = vld [vmem:[#allocation30_spill] sm:$0xff] }
 0x4a3   : > { %6170 = vst [vmem:[#allocation61_spill] sm:$0xff] %v4150_v59  ;;  %v1224_v55 = vrot.slane %v1223_v39, 4  ;;  %v1205_v32 = vadd.f32 %v1204_v21, %v1203_v17  ;;  %v1214_v54 = vadd.f32 %v1213_v0, %v1212_v15  ;;  %v1346_v22 = vadd.f32 %v1345_v30, %v4150_v59 }
 0x4a4   : > { %v1233_v49 = vrot.slane %v1232_v6, 4  ;;  %v1356_v16 = vmax.f32 %v6173_v57, %v4147_v36  ;;  %v1365_v8 = vmax.f32 %v6174_v44, %v4150_v59  ;;  %v1338_v17 = vrot.slane %v1337_v48, 4 }
 0x4a5   : > { %v1225_v24 = vmax.f32 %v1223_v39, %v1224_v55  ;;  %v1206_v58 = vrot.slane %v1205_v32, 2  ;;  %v1215_v34 = vrot.slane %v1214_v54, 2  ;;  %v1347_v15 = vrot.slane %v1346_v22, 4 }
 0x4a6   : > { %v1234_v9 = vmax.f32 %v1232_v6, %v1233_v49  ;;  %v1357_v21 = vmax.f32 %v1355_v51, %v1356_v16  ;;  %v1366_v0 = vmax.f32 %v1364_v50, %v1365_v8  ;;  %v1339_v63 = vadd.f32 %v1338_v17, %v1337_v48 }
 0x4a7   : > { %v1226_v23 = vrot.slane %v1225_v24, 2  ;;  %v1207_v39 = vadd.f32 %v1206_v58, %v1205_v32  ;;  %v1216_v6 = vadd.f32 %v1215_v34, %v1214_v54  ;;  %v1348_v55 = vadd.f32 %v1347_v15, %v1346_v22 }
 0x4a8   : > { %v1235_v30 = vrot.slane %v1234_v9, 2  ;;  %v1358_v27 = vrot.slane %v1357_v21, 4  ;;  %v1367_v59 = vrot.slane %v1366_v0, 4  ;;  %v1141_v41 = vrot.slane %v4112_v43, 1 }
 0x4a9   : > { %v1227_v49 = vmax.f32 %v1225_v24, %v1226_v23  ;;  %v1150_v44 = vrot.slane %v4114_v37, 1  ;;  %v1340_v57 = vrot.slane %v1339_v63, 2  ;;  %v1349_v62 = vrot.slane %v1348_v55, 2 }
 0x4aa   : > { %v1236_v36 = vmax.f32 %v1234_v9, %v1235_v30  ;;  %v1359_v51 = vmax.f32 %v1357_v21, %v1358_v27  ;;  %v1368_v50 = vmax.f32 %v1366_v0, %v1367_v59  ;;  %v1162_v32 = vmax.f32 %v4092_v26, %v1161_v1 }
 0x4ab   : > { %v1228_v53 = vrot.slane %v1227_v49, 1  ;;  %v1171_v54 = vmax.f32 %v4094_v7, %v1170_v5  ;;  %v1217_v48 = vrot.slane %v1216_v6, 1  ;;  %v1350_v22 = vadd.f32 %v1349_v62, %v1348_v55 }
 0x4ac   : > { %v1237_v12 = vrot.slane %v1236_v36, 1  ;;  %v1208_v24 = vrot.slane %v1207_v39, 1  ;;  %v1341_v9 = vadd.f32 %v1340_v57, %v1339_v63  ;;  %v1360_v16 = vrot.slane %v1359_v51, 2 }
 0x4ad   : > { %v1369_v8 = vrot.slane %v1368_v50, 2  ;;  %v1018_v58 = vmul.f32 0.03125, %v4102_v10  ;;  %v1019_v34 = vmul.f32 0.03125, %v4104_v3  ;;  %v1229_v17 = vmax.f32 %v1227_v49, %v1228_v53 }
 0x4ae   : > { %v1238_v15 = vmax.f32 %v1236_v36, %v1237_v12  ;;  %v1142_v23 = vadd.f32 %v1141_v41, %v4112_v43  ;;  %v1151_v27 = vadd.f32 %v1150_v44, %v4114_v37  ;;  %v1361_v59 = vmax.f32 %v1359_v51, %v1360_v16 }
 0x4af   : > { %v1370_v26 = vmax.f32 %v1368_v50, %v1369_v8  ;;  %v1108_v7 = vsel %vm1105_vm7, %v4023_v46, %v4122_v56  ;;  %v1109_v10 = vsel %vm1105_vm7, %v4025_v35, %v4126_v13  ;;  %v1218_v1 = vadd.f32 %v1217_v48, %v1216_v6  ;;  %v6175_v6 = vld [vmem:[#allocation71_spill] sm:$0xff] }
 0x4b0   : > { %v1351_v3 = vrot.slane %v1350_v22, 1  ;;  %v1175_v12 = vsel %vm1172_vm8, %v1162_v32, %v1108_v7  ;;  %v1176_v41 = vsel %vm1172_vm8, %v1171_v54, %v1109_v10  ;;  %v1209_v43 = vadd.f32 %v1208_v24, %v1207_v39  ;;  %v6177_v54 = vld [vmem:[#allocation75_spill] sm:$0xff] }
 0x4b1   : > { %v1342_v37 = vrot.slane %v1341_v9, 1  ;;  %v1242_v5 = vsel %vm1239_vm9, %v1229_v17, %v1175_v12  ;;  %v1243_v46 = vsel %vm1239_vm9, %v1238_v15, %v1176_v41  ;;  %v1362_v56 = vrot.slane %v1361_v59, 1 }
 0x4b2   : > { %v1371_v36 = vrot.slane %v1370_v26, 1  ;;  %v1039_v35 = vsel %vm1038_vm6, %v1018_v58, %v4086_v18  ;;  %v1040_v13 = vsel %vm1038_vm6, %v1019_v34, %v4090_v11  ;;  %v1152_v53 = vmul.f32 0.03125, %v1142_v23 }
 0x4b3   : > { %v1153_v62 = vmul.f32 0.03125, %v1151_v27  ;;  %v1220_v57 = vmul.f32 0.03125, %v1218_v1  ;;  %v1352_v44 = vadd.f32 %v1351_v3, %v1350_v22  ;;  %v1363_v30 = vmax.f32 %v1361_v59, %v1362_v56 }
 0x4b4   : > { %v1372_v21 = vmax.f32 %v1370_v26, %v1371_v36  ;;  %v1219_v0 = vmul.f32 0.03125, %v1209_v43  ;;  %v1309_v39 = vsel %vm1306_vm10, %v3969_v14, %v1242_v5  ;;  %v1310_v18 = vsel %vm1306_vm10, %v3971_v38, %v1243_v46 }
 0x4b5   : > { %v1343_v11 = vadd.f32 %v1342_v37, %v1341_v9  ;;  %v6176_v63 = vrot.slane %v6175_v6, 1  ;;  %v1107_v49 = vsel %vm1105_vm7, %v4013_v42, %v1040_v13  ;;  %v4219_v14 = vsel %vm1373_vm11, %v1363_v30, %v1309_v39 }
 0x4b6   : > { %v4223_v38 = vsel %vm1373_vm11, %v1372_v21, %v1310_v18  ;;  %v1106_v51 = vsel %vm1105_vm7, %v4011_v61, %v1039_v35  ;;  %v1174_v50 = vsel %vm1172_vm8, %v1153_v62, %v1107_v49  ;;  %1388 = vrot.lane.b32.xlu0 %v4219_v14, %s3046_s9  ;;  %v1354_v32 = vmul.f32 0.03125, %v1352_v44 }
 0x4b7   : > { %v1276_v55 = vadd.f32 %v6176_v63, %v6175_v6  ;;  %1390 = vrot.lane.b32.xlu1 %v4223_v38, %s3046_s9  ;;  %v1173_v42 = vsel %vm1172_vm8, %v1152_v53, %v1106_v51  ;;  %v1241_v61 = vsel %vm1239_vm9, %v1220_v57, %v1174_v50  ;;  %v1287_v48 = vmul.f32 0.03125, %v6177_v54 }
 0x4b8   : > { %v1240_v22 = vsel %vm1239_vm9, %v1219_v0, %v1173_v42  ;;  %v1353_v24 = vmul.f32 0.03125, %v1343_v11  ;;  %v1678_v34 = vstv %s4197_s23  ;;  %v1681_v15 = vstv %s4199_s5  ;;  %s4294_s23 = sld [smem:[#allocation6 + $0x18]]  ;;  %s4296_s5 = sld [smem:[#allocation6 + $0x49]] }
 0x4b9   : > { %v1286_v9 = vmul.f32 0.03125, %v1276_v55  ;;  %v1308_v16 = vsel %vm1306_vm10, %v1287_v48, %v1241_v61  ;;  %v1690_v23 = vstv %s4207_s10  ;;  %v1693_v27 = vstv %s4209_s11  ;;  %s3049_s10 = smov 127   ;;  %s3050_s11 = smov 126  }
 0x4ba   : > { %1477 = vrot.lane.b32.xlu0 %v4219_v14, %s3047_s30  ;;  %v4261_v58 = vsel %vm1373_vm11, %v1354_v32, %v1308_v16  ;;  %v1702_v59 = vstv %s4225_s26  ;;  %v1705_v26 = vstv %s4227_s29  ;;  %v1726_v10 = vstv %s4238_s20  ;;  %s3051_s26 = smov 125   ;;  %s4383_s29 = sld [smem:[#allocation6 + $0x31]] }
 0x4bb   : > { %1479 = vrot.lane.b32.xlu1 %v4223_v38, %s3047_s30  ;;  %v1307_v8 = vsel %vm1306_vm10, %v1286_v9, %v1240_v22  ;;  %v1680_v7 = vmul.f32 %v1678_v34, %v4261_v58  ;;  %v1729_v1 = vstv %s4240_s25  ;;  %v1683_v3 = vmul.f32 %v1681_v15, %v4223_v38  ;;  %s4387_s20 = sld [smem:[#allocation6 + $0x3f]]  ;;  %s4389_s25 = sld [smem:[#allocation6 + $0x46]] }
 0x4bc   : > { %v4268_v17 = vsel %vm1373_vm11, %v1353_v24, %v1307_v8  ;;  %v1682_v41 = vmul.f32 %v1681_v15, %v4219_v14  ;;  %v1692_v43 = vmul.f32 %v1690_v23, %v4261_v58  ;;  %v1695_v37 = vmul.f32 %v1693_v27, %v4223_v38 }
 0x4bd   : > { %v1679_v12 = vmul.f32 %v1678_v34, %v4268_v17  ;;  %v1691_v5 = vmul.f32 %v1690_v23, %v4268_v17  ;;  %v1694_v46 = vmul.f32 %v1693_v27, %v4219_v14  ;;  %v1704_v56 = vmul.f32 %v1702_v59, %v4261_v58 }
 0x4be   : > { %1580 = vrot.lane.b32.xlu0 %v4219_v14, %s3048_s13  ;;  %v4298_v36 = vadd.f32 %v1683_v3, %v1680_v7  ;;  %v1707_v13 = vmul.f32 %v1705_v26, %v4223_v38  ;;  %v1703_v53 = vmul.f32 %v1702_v59, %v4268_v17  ;;  %v4308_v62 = vadd.f32 %v1695_v37, %v1692_v43 }
 0x4bf   : > { %1582 = vrot.lane.b32.xlu1 %v4223_v38, %s3048_s13  ;;  %v4300_v35 = vadd.f32 %v1682_v41, %v1679_v12  ;;  %v4310_v57 = vadd.f32 %v1694_v46, %v1691_v5  ;;  %v1706_v44 = vmul.f32 %v1705_v26, %v4219_v14  ;;  %v1738_v30 = vstv %s4255_s12  ;;  %s4393_s12 = sld [smem:[#allocation6 + $0x54]] }
 0x4c0   : > { %6178 = vst [vmem:[#allocation62_spill] sm:$0xff] %v4298_v36  ;;  %6180 = vst [vmem:[#allocation75_spill] sm:$0xff] %v4308_v62  ;;  %v4314_v21 = vadd.f32 %v1707_v13, %v1704_v56  ;;  %v1728_v0 = vmul.f32 %v1726_v10, %v4261_v58  ;;  %v1741_v39 = vstv %s4264_s8  ;;  %v1731_v11 = vmul.f32 %v1729_v1, %v4223_v38  ;;  %6192 = sst [smem:[#allocation101_spill]] %s4383_s29  ;;  %s4395_s8 = sld [smem:[#allocation6 + $0x5b]] }
 0x4c1   : > { %6179 = vst [vmem:[#allocation71_spill] sm:$0xff] %v4300_v35  ;;  %6181 = vst [vmem:[#allocation90_spill] sm:$0xff] %v4310_v57  ;;  %v4318_v18 = vadd.f32 %v1706_v44, %v1703_v53  ;;  %v1727_v6 = vmul.f32 %v1726_v10, %v4268_v17  ;;  %v1730_v63 = vmul.f32 %v1729_v1, %v4219_v14  ;;  %v1750_v50 = vstv %s4282_s14  ;;  %6194 = sst [smem:[#allocation103_spill]] %s4387_s20  ;;  %s4399_s14 = sld [smem:[#allocation6 + $0x39]] }
 0x4c2   : > { %1767 = vrot.lane.b32.xlu0 %v4219_v14, %s3049_s10  ;;  %6182 = vst [vmem:[#allocation91_spill] sm:$0xff] %v4314_v21  ;;  %v1740_v55 = vmul.f32 %v1738_v30, %v4261_v58  ;;  %v4328_v49 = vadd.f32 %v1731_v11, %v1728_v0  ;;  %v1743_v51 = vmul.f32 %v1741_v39, %v4223_v38  ;;  %v1753_v42 = vstv %s4284_s22  ;;  %6195 = sst [smem:[#allocation104_spill]] %s4389_s25  ;;  %s4401_s22 = sld [smem:[#allocation6 + $0x40]] }
 0x4c3   : > { %1769 = vrot.lane.b32.xlu1 %v4223_v38, %s3049_s10  ;;  %6183 = vst [vmem:[#allocation92_spill] sm:$0xff] %v4318_v18  ;;  %v4333_v61 = vadd.f32 %v1730_v63, %v1727_v6  ;;  %v1739_v32 = vmul.f32 %v1738_v30, %v4268_v17  ;;  %v1742_v48 = vmul.f32 %v1741_v39, %v4219_v14  ;;  %v1714_v22 = vstv %s4294_s23  ;;  %s4403_s23 = sld [smem:[#allocation6 + $0x47]] }
 0x4c4   : > { %6184 = vst [vmem:[#allocation93_spill] sm:$0xff] %v4328_v49  ;;  %v4336_v54 = vadd.f32 %v1743_v51, %v1740_v55  ;;  %v1717_v24 = vstv %s4296_s5  ;;  %v1752_v9 = vmul.f32 %v1750_v50, %v4261_v58  ;;  %v1755_v16 = vmul.f32 %v1753_v42, %v4223_v38  ;;  %s4405_s5 = sld [smem:[#allocation6 + $0x4e]] }
 0x4c5   : > { %6185 = vst [vmem:[#allocation94_spill] sm:$0xff] %v4333_v61  ;;  %v4347_v8 = vadd.f32 %v1742_v48, %v1739_v32  ;;  %v1751_v34 = vmul.f32 %v1750_v50, %v4268_v17  ;;  %v1754_v15 = vmul.f32 %v1753_v42, %v4219_v14  ;;  %v1715_v27 = vmul.f32 %v1714_v22, %v4268_v17  ;;  %6197 = sst [smem:[#allocation106_spill]] %s4393_s12 }
 0x4c6   : > { %1870 = vrot.lane.b32.xlu0 %v4219_v14, %s3050_s11  ;;  %6186 = vst [vmem:[#allocation95_spill] sm:$0xff] %v4336_v54  ;;  %v4351_v23 = vadd.f32 %v1755_v16, %v1752_v9  ;;  %v1716_v59 = vmul.f32 %v1714_v22, %v4261_v58  ;;  %v1718_v26 = vmul.f32 %v1717_v24, %v4219_v14  ;;  %6198 = sst [smem:[#allocation107_spill]] %s4395_s8  ;;  %v1425_v43 = vstv %s4387_s20  ;;  %s6293_s20 = sld [smem:[#allocation161_spill]] }
 0x4c7   : > { %1872 = vrot.lane.b32.xlu1 %v4223_v38, %s3050_s11  ;;  %6187 = vst [vmem:[#allocation96_spill] sm:$0xff] %v4347_v8  ;;  %v4356_v7 = vadd.f32 %v1754_v15, %v1751_v34  ;;  %v1719_v10 = vmul.f32 %v1717_v24, %v4223_v38  ;;  %6200 = sst [smem:[#allocation109_spill]] %s4399_s14  ;;  %v1435_v37 = vstv %s4389_s25  ;;  %v1455_v46 = vstv %s4393_s12  ;;  %s4577_s25 = sld [smem:[#allocation6 + $0x28]] }
 0x4c8   : > { %6188 = vst [vmem:[#allocation97_spill] sm:$0xff] %v4351_v23  ;;  %v4359_v1 = vadd.f32 %v1718_v26, %v1715_v27  ;;  %6201 = sst [smem:[#allocation110_spill]] %s4401_s22  ;;  %v1465_v56 = vstv %s4395_s8  ;;  %v1506_v53 = vstv %s4399_s14  ;;  %v1518_v44 = vstv %s4401_s22  ;;  %s4526_s12 = sld [smem:[#allocation6 + $0x52]] }
 0x4c9   : > { %6189 = vst [vmem:[#allocation98_spill] sm:$0xff] %v4356_v7  ;;  %v4365_v3 = vadd.f32 %v1719_v10, %v1716_v59  ;;  %6202 = sst [smem:[#allocation111_spill]] %s4403_s23  ;;  %v1530_v30 = vstv %s4403_s23  ;;  %s4534_s22 = sld [smem:[#allocation6 + $0x3e]] }
 0x4ca   : > { %1381 = vrot.lane.b32.xlu0 %v4268_v17, %s3046_s9  ;;  %6190 = vst [vmem:[#allocation99_spill] sm:$0xff] %v4359_v1  ;;  %6203 = sst [smem:[#allocation112_spill]] %s4405_s5  ;;  %v1542_v0 = vstv %s4405_s5  ;;  %s4567_s14 = sld [smem:[#allocation6 + $0x22]] }
 0x4cb   : > { %1383 = vrot.lane.b32.xlu1 %v4261_v58, %s3046_s9  ;;  %6191 = vst [vmem:[#allocation100_spill] sm:$0xff] %v4365_v3  ;;  %s4385_s9 = sld [smem:[#allocation6 + $0x38]]  ;;  %s4601_s8 = sld [smem:[#allocation6 + $0x4b]] }
 0x4cc   : > { %s6290_s5 = sld [smem:[#allocation159_spill]] }
 0x4cd   : > { %6280 = sst [smem:[#allocation165_spill]] %s4577_s25  ;;  %s6327_s25 = sld [smem:[#allocation121_spill]] }
 0x4ce   : > { %1470 = vrot.lane.b32.xlu0 %v4268_v17, %s3047_s30  ;;  %6255 = sst [smem:[#allocation160_spill]] %s4526_s12  ;;  %s4608_s12 = sld [smem:[#allocation6 + $0x19]] }
 0x4cf   : > { %1472 = vrot.lane.b32.xlu1 %v4261_v58, %s3047_s30  ;;  %s4391_s30 = sld [smem:[#allocation6 + $0x4d]] }
 0x4d1   : > { %6193 = sst [smem:[#allocation102_spill]] %s4385_s9  ;;  %v1415_v41 = vstv %s4385_s9  ;;  %s4518_s9 = sld [smem:[#allocation6 + $0xc]] }
 0x4d2   : > { %1573 = vrot.lane.b32.xlu0 %v4268_v17, %s3048_s13  ;;  %6286 = sst [smem:[#allocation154_spill]] %s4601_s8 }
 0x4d3   : > { %1575 = vrot.lane.b32.xlu1 %v4261_v58, %s3048_s13  ;;  %s4397_s13 = sld [smem:[#allocation6 + $0x32]] }
 0x4d5   : > { %6196 = sst [smem:[#allocation105_spill]] %s4391_s30  ;;  %v1445_v5 = vstv %s4391_s30  ;;  %s6285_s30 = sld [smem:[#allocation155_spill]] }
 0x4d6   : > { %1760 = vrot.lane.b32.xlu0 %v4268_v17, %s3049_s10  ;;  %6291 = sst [smem:[#allocation155_spill]] %s4610_s27  ;;  %s6318_s27 = sld [smem:[#allocation117_spill]] }
 0x4d7   : > { %1762 = vrot.lane.b32.xlu1 %v4261_v58, %s3049_s10  ;;  %s4407_s10 = sld [smem:[#allocation6 + $0x55]]  ;;  %6250 = sst [smem:[#allocation158_spill]] %s4518_s9 }
 0x4d8   : > { %s4532_s9 = sld [smem:[#allocation6 + $0xd]]  ;;  %s6288_s17 = sld [smem:[#allocation158_spill]] }
 0x4d9   : > { %6199 = sst [smem:[#allocation108_spill]] %s4397_s13  ;;  %v1494_v13 = vstv %s4397_s13  ;;  %s6299_s16 = sld [smem:[#allocation155_spill]] }
 0x4da   : > { %1863 = vrot.lane.b32.xlu0 %v4268_v17, %s3050_s11  ;;  %s4565_s13 = sld [smem:[#allocation6 + $0x21]]  ;;  %6296 = sst [smem:[#allocation158_spill]] %s4620_s21 }
 0x4db   : > { %1865 = vrot.lane.b32.xlu1 %v4261_v58, %s3050_s11  ;;  %s4409_s11 = sld [smem:[#allocation6 + $0x5c]]  ;;  %s6316_s21 = sld [smem:[#allocation116_spill]] }
 0x4dd   : > { %6204 = sst [smem:[#allocation113_spill]] %s4407_s10  ;;  %s4542_s10 = sld [smem:[#allocation6 + $0x59]] }
 0x4de   : > { %1966 = vrot.lane.b32.xlu0 %v4268_v17, %s3051_s26  ;;  %v1405_v17 = vstv %s4383_s29  ;;  %s4516_s29 = sld [smem:[#allocation6 + $0x6]] }
 0x4df   : > { %1968 = vrot.lane.b32.xlu1 %v4261_v58, %s3051_s26  ;;  %s6313_s18 = sld [smem:[#allocation113_spill]] }
 0x4e1   : > { %6205 = sst [smem:[#allocation114_spill]] %s4409_s11  ;;  %s4550_s11 = sld [smem:[#allocation6 + $0x45]] }
 0x4e2   : > { %1973 = vrot.lane.b32.xlu0 %v4219_v14, %s3051_s26  ;;  %v6240_v14 = vld [vmem:[#allocation35_spill] sm:$0xff]  ;;  %s6314_s8 = sld [smem:[#allocation114_spill]] }
 0x4e3   : > { %1975 = vrot.lane.b32.xlu1 %v4223_v38, %s3051_s26  ;;  %s4411_s26 = sld [smem:[#allocation6 + $0x33]]  ;;  %v4480_v38 = vadd.s32 128, %v6240_v14  ;;  %v4495_v58 = vand.u32 15, %v6240_v14  ;;  %6264 = sst [smem:[#allocation162_spill]] %s4542_s10  ;;  %vm1385_vm12 = vcmp.lt.s32.totalorder %v6240_v14, 3  ;;  %vm1474_vm15 = vcmp.lt.s32.totalorder %v6240_v14, 2 }
 0x4e4   : > { %6249 = sst [smem:[#allocation157_spill]] %s4516_s29  ;;  %s4558_s10 = sld [smem:[#allocation6 + $0x4a]]  ;;  %vm1577_vm2 = vcmp.lt.s32.totalorder %v6240_v14, 1  ;;  %vm1764_vm5 = vcmp.lt.s32.totalorder %v6240_v14, 127  ;;  %vm1867_vm8 = vcmp.lt.s32.totalorder %v6240_v14, 126  ;;  %vm1970_vm11 = vcmp.lt.s32.totalorder %v6240_v14, 125 }
 0x4e5   : > { %6241 = vst [vmem:[#allocation149_spill] sm:$0xff] %v4480_v38  ;;  %v4503_v12 = vand.u32 15, %v4480_v38  ;;  %vm1394_vm13 = vcmp.ge.s32.totalorder %v4495_v58, 3  ;;  %s6287_s23 = sld [smem:[#allocation157_spill]]  ;;  %s6289_s29 = sld [smem:[#allocation156_spill]]  ;;  %vm1483_vm0 = vcmp.ge.s32.totalorder %v4495_v58, 2  ;;  %v6323_v19 = vstv %s6313_s18 }
 0x4e6   : > { %6295 = sst [smem:[#allocation157_spill]] %s4618_s2  ;;  %vm1586_vm3 = vcmp.ge.s32.totalorder %v4495_v58, 1  ;;  %vm1773_vm6 = vcmp.lt.s32.totalorder %v4495_v58, 15  ;;  %vm1876_vm9 = vcmp.lt.s32.totalorder %v4495_v58, 14  ;;  %s6321_s2 = sld [smem:[#allocation120_spill]]  ;;  %v6324_v33 = vmov %v6323_v19 }
 0x4e7   : > { %vm1395_vm14 = vcmp.ge.s32.totalorder %v4503_v12, 3  ;;  %vm1484_vm1 = vcmp.ge.s32.totalorder %v4503_v12, 2  ;;  %vm1587_vm4 = vcmp.ge.s32.totalorder %v4503_v12, 1  ;;  %vm1774_vm7 = vcmp.lt.s32.totalorder %v4503_v12, 15  ;;  %s6332_s18 = sld [smem:[#allocation122_spill]] }
 0x4e8   : > { %vm1877_vm10 = vcmp.lt.s32.totalorder %v4503_v12, 14 }
 0x4e9   : > { %6206 = sst [smem:[#allocation115_spill]] %s4411_s26  ;;  %s4548_s26 = sld [smem:[#allocation6 + $0x14]] }
 0x4ea   : > { %6271 = sst [smem:[#allocation164_spill]] %s4558_s10  ;;  %s6319_s10 = sld [smem:[#allocation119_spill]] }
 0x4eb   : > { %s6315_s7 = sld [smem:[#allocation115_spill]] }
 0x4f1   : > { %v6328_v28 = vstv %s6315_s7  ;;  %s6340_s7 = sld [smem:[#allocation124_spill]] }
 0x4f2   : > { %v6329_v25 = vmov %v6328_v28 }
 0x4f7   : > { %v6356_v8 = vstv %s6340_s7  ;;  %s6373_s7 = sld [smem:[#allocation142_spill]] }
 0x4f8   : > { %v6358_v54 = vmov %v6356_v8 }
 0x528   : > { %v1389_v26 = vpop.permute.xlu0 %1388 }
 0x529   : > { %v1391_v32 = vpop.permute.xlu1 %1390 }
 0x52a   : > { %v1392_v59 = vsel %vm1385_vm12, %v1389_v26, %v1391_v32  ;;  %v1393_v48 = vsel %vm1385_vm12, %v1391_v32, %v1389_v26 }
 0x52b   : > { %v1398_v22 = vsel %vm1394_vm13, %v1393_v48, 0.0  ;;  %v1399_v15 = vsel %vm1395_vm14, %v1392_v59, 0.0 }
 0x52c   : > { %v1478_v34 = vpop.permute.xlu0 %1477  ;;  %v4663_v55 = vmul.f32 %v1405_v17, %v1398_v22  ;;  %v4667_v59 = vmul.f32 %v1405_v17, %v1399_v15  ;;  %v4671_v27 = vmul.f32 %v1415_v41, %v1398_v22  ;;  %v4675_v9 = vmul.f32 %v1415_v41, %v1399_v15 }
 0x52d   : > { %v1480_v16 = vpop.permute.xlu1 %1479  ;;  %v4680_v50 = vmul.f32 %v1425_v43, %v1398_v22  ;;  %v4684_v48 = vmul.f32 %v1425_v43, %v1399_v15  ;;  %v4694_v41 = vmul.f32 %v1435_v37, %v1398_v22  ;;  %v4698_v43 = vmul.f32 %v1435_v37, %v1399_v15 }
 0x52e   : > { %v1481_v17 = vsel %vm1474_vm15, %v1478_v34, %v1480_v16  ;;  %v1482_v42 = vsel %vm1474_vm15, %v1480_v16, %v1478_v34  ;;  %v4707_v34 = vmul.f32 %v1445_v5, %v1398_v22  ;;  %v4711_v24 = vmul.f32 %v1445_v5, %v1399_v15 }
 0x52f   : > { %6309 = vst [vmem:[#allocation167_spill] sm:$0xff] %v4698_v43  ;;  %v1487_v51 = vsel %vm1483_vm0, %v1482_v42, 0.0  ;;  %v1488_v16 = vsel %vm1484_vm1, %v1481_v17, 0.0  ;;  %v4715_v37 = vmul.f32 %v1455_v46, %v1398_v22  ;;  %v4719_v10 = vmul.f32 %v1455_v46, %v1399_v15 }
 0x530   : > { %v1581_v26 = vpop.permute.xlu0 %1580  ;;  %v4723_v17 = vmul.f32 %v1465_v56, %v1398_v22  ;;  %v4727_v32 = vmul.f32 %v1465_v56, %v1399_v15  ;;  %v4731_v5 = vmul.f32 %v1494_v13, %v1487_v51  ;;  %v4735_v63 = vmul.f32 %v1494_v13, %v1488_v16 }
 0x531   : > { %v1583_v42 = vpop.permute.xlu1 %1582  ;;  %v4739_v6 = vmul.f32 %v1506_v53, %v1487_v51  ;;  %v4743_v46 = vmul.f32 %v1506_v53, %v1488_v16  ;;  %v4747_v22 = vmul.f32 %v1518_v44, %v1487_v51  ;;  %v4751_v56 = vmul.f32 %v1518_v44, %v1488_v16 }
 0x532   : > { %v4757_v13 = vmul.f32 %v1530_v30, %v1487_v51  ;;  %v4761_v53 = vmul.f32 %v1530_v30, %v1488_v16  ;;  %v1584_v15 = vsel %vm1577_vm2, %v1581_v26, %v1583_v42  ;;  %v1585_v44 = vsel %vm1577_vm2, %v1583_v42, %v1581_v26 }
 0x533   : > { %v4769_v11 = vmul.f32 %v1542_v0, %v1487_v51  ;;  %v4773_v39 = vmul.f32 %v1542_v0, %v1488_v16  ;;  %v4777_v30 = vsel %vm1586_vm3, %v1585_v44, 0.0  ;;  %v4781_v45 = vsel %vm1587_vm4, %v1584_v15, 0.0 }
 0x534   : > { %6317 = vst [vmem:[#allocation168_spill] sm:$0xff] %v4761_v53  ;;  %6320 = vst [vmem:[#allocation169_spill] sm:$0xff] %v4777_v30  ;;  %v1768_v42 = vpop.permute.xlu0 %1767  ;;  %v4785_v60 = vmul.f32 %v6323_v19, %v1487_v51  ;;  %v4789_v2 = vmul.f32 %v6324_v33, %v1488_v16  ;;  %v6325_v0 = vstv %s6314_s8  ;;  %v4802_v15 = vmul.f32 %v6328_v28, %v4777_v30  ;;  %s6337_s8 = sld [smem:[#allocation123_spill]] }
 0x535   : > { %6322 = vst [vmem:[#allocation170_spill] sm:$0xff] %v4781_v45  ;;  %v1770_v26 = vpop.permute.xlu1 %1769  ;;  %v4793_v20 = vmul.f32 %v6325_v0, %v1487_v51  ;;  %v6326_v47 = vmov %v6325_v0  ;;  %v4807_v4 = vmul.f32 %v6329_v25, %v4781_v45  ;;  %v6330_v19 = vstv %s6316_s21  ;;  %s6341_s21 = sld [smem:[#allocation125_spill]] }
 0x536   : > { %v4797_v44 = vmul.f32 %v6326_v47, %v1488_v16  ;;  %v4812_v33 = vmul.f32 %v6330_v19, %v4777_v30  ;;  %v6331_v51 = vmov %v6330_v19  ;;  %v6333_v47 = vstv %s6318_s27  ;;  %s6342_s27 = sld [smem:[#allocation126_spill]] }
 0x537   : > { %v4817_v0 = vmul.f32 %v6331_v51, %v4781_v45  ;;  %v4822_v16 = vmul.f32 %v6333_v47, %v4777_v30  ;;  %v6334_v28 = vmov %v6333_v47  ;;  %v6335_v25 = vstv %s6319_s10  ;;  %s6351_s10 = sld [smem:[#allocation127_spill]] }
 0x538   : > { %v4827_v40 = vmul.f32 %v6334_v28, %v4781_v45  ;;  %v4832_v31 = vmul.f32 %v6335_v25, %v4777_v30  ;;  %v6336_v19 = vmov %v6335_v25  ;;  %v6338_v51 = vstv %s6321_s2  ;;  %v1871_v3 = vpop.permute.xlu0 %1870  ;;  %s6359_s2 = sld [smem:[#allocation128_spill]] }
 0x539   : > { %v4837_v29 = vmul.f32 %v6336_v19, %v4781_v45  ;;  %v4842_v52 = vmul.f32 %v6338_v51, %v4777_v30  ;;  %v6339_v47 = vmov %v6338_v51  ;;  %v1771_v28 = vsel %vm1764_vm5, %v1768_v42, %v1770_v26  ;;  %v1873_v19 = vpop.permute.xlu1 %1872 }
 0x53a   : > { %v4847_v38 = vmul.f32 %v6339_v47, %v4781_v45  ;;  %v1772_v25 = vsel %vm1764_vm5, %v1770_v26, %v1768_v42  ;;  %v6343_v51 = vstv %s6327_s25  ;;  %v4865_v43 = vsel %vm1773_vm6, %v1771_v28, 0.0  ;;  %s6364_s25 = sld [smem:[#allocation129_spill]] }
 0x53b   : > { %v4856_v1 = vmul.f32 %v6343_v51, %v4777_v30  ;;  %v6344_v47 = vmov %v6343_v51  ;;  %6345 = vst [vmem:[#allocation171_spill] sm:$0xff] %v4865_v43  ;;  %v4869_v26 = vsel %vm1774_vm7, %v1772_v25, 0.0  ;;  %v6347_v42 = vstv %s6332_s18  ;;  %s6369_s18 = sld [smem:[#allocation130_spill]] }
 0x53c   : > { %v4861_v53 = vmul.f32 %v6344_v47, %v4781_v45  ;;  %6346 = vst [vmem:[#allocation172_spill] sm:$0xff] %v4869_v26  ;;  %v4874_v7 = vmul.f32 %v6347_v42, %v4865_v43  ;;  %v6349_v23 = vmov %v6347_v42  ;;  %v1874_v47 = vsel %vm1867_vm8, %v1871_v3, %v1873_v19  ;;  %v1382_v21 = vpop.permute.xlu0 %1381 }
 0x53d   : > { %v4879_v51 = vmul.f32 %v6349_v23, %v4869_v26  ;;  %v1875_v28 = vsel %vm1867_vm8, %v1873_v19, %v1871_v3  ;;  %v6352_v45 = vstv %s6337_s8  ;;  %v4898_v23 = vmul.f32 %v6356_v8, %v4865_v43  ;;  %s6371_s8 = sld [smem:[#allocation131_spill]] }
 0x53e   : > { %6348 = vst [vmem:[#allocation173_spill] sm:$0xff] %v4874_v7  ;;  %v4888_v25 = vmul.f32 %v6352_v45, %v4865_v43  ;;  %v6354_v30 = vmov %v6352_v45  ;;  %v4903_v61 = vmul.f32 %v6358_v54, %v4869_v26  ;;  %v6361_v3 = vstv %s6341_s21  ;;  %s6382_s21 = sld [smem:[#allocation132_spill]] }
 0x53f   : > { %6350 = vst [vmem:[#allocation174_spill] sm:$0xff] %v4879_v51  ;;  %v4893_v42 = vmul.f32 %v6354_v30, %v4869_v26  ;;  %6357 = vst [vmem:[#allocation177_spill] sm:$0xff] %v4898_v23  ;;  %v4908_v19 = vmul.f32 %v6361_v3, %v4865_v43  ;;  %v6363_v45 = vmov %v6361_v3  ;;  %v6366_v30 = vstv %s6342_s27  ;;  %v1384_v23 = vpop.permute.xlu1 %1383  ;;  %s6385_s27 = sld [smem:[#allocation133_spill]] }
 0x540   : > { %6353 = vst [vmem:[#allocation175_spill] sm:$0xff] %v4888_v25  ;;  %6360 = vst [vmem:[#allocation178_spill] sm:$0xff] %v4903_v61  ;;  %v4913_v49 = vmul.f32 %v6363_v45, %v4869_v26  ;;  %v4918_v8 = vmul.f32 %v6366_v30, %v4865_v43  ;;  %v6368_v18 = vmov %v6366_v30  ;;  %v4927_v3 = vsel %vm1876_vm9, %v1874_v47, 0.0  ;;  %v1471_v35 = vpop.permute.xlu0 %1470 }
 0x541   : > { %6355 = vst [vmem:[#allocation176_spill] sm:$0xff] %v4893_v42  ;;  %6362 = vst [vmem:[#allocation179_spill] sm:$0xff] %v4908_v19  ;;  %v4923_v54 = vmul.f32 %v6368_v18, %v4869_v26  ;;  %v4931_v45 = vsel %vm1877_vm10, %v1875_v28, 0.0  ;;  %v1386_v30 = vsel %vm1385_vm12, %v1382_v21, %v1384_v23  ;;  %v1387_v18 = vsel %vm1385_vm12, %v1384_v23, %v1382_v21 }
 0x542   : > { %6365 = vst [vmem:[#allocation180_spill] sm:$0xff] %v4913_v49  ;;  %6367 = vst [vmem:[#allocation181_spill] sm:$0xff] %v4918_v8  ;;  %v6375_v8 = vstv %s6351_s10  ;;  %v1396_v28 = vsel %vm1394_vm13, %v1387_v18, 0.0  ;;  %v1397_v49 = vsel %vm1395_vm14, %v1386_v30, 0.0  ;;  %v6379_v61 = vstv %s6359_s2  ;;  %s6387_s10 = sld [smem:[#allocation134_spill]]  ;;  %s6401_s2 = sld [smem:[#allocation135_spill]] }
 0x543   : > { %6370 = vst [vmem:[#allocation182_spill] sm:$0xff] %v4923_v54  ;;  %6372 = vst [vmem:[#allocation183_spill] sm:$0xff] %v4927_v3  ;;  %v4940_v54 = vmul.f32 %v6375_v8, %v4865_v43  ;;  %v6377_v19 = vmov %v6375_v8  ;;  %v1403_v57 = vmul.f32 %v6379_v61, %v1396_v28  ;;  %v6380_v62 = vmov %v6379_v61  ;;  %v1473_v18 = vpop.permute.xlu1 %1472 }
 0x544   : > { %6374 = vst [vmem:[#allocation184_spill] sm:$0xff] %v4931_v45  ;;  %v4945_v47 = vmul.f32 %v6377_v19, %v4869_v26  ;;  %v1404_v21 = vmul.f32 %v6380_v62, %v1397_v49  ;;  %v6381_v23 = vstv %s6364_s25  ;;  %v6384_v25 = vstv %s6369_s18  ;;  %s6403_s25 = sld [smem:[#allocation136_spill]] }
 0x545   : > { %6376 = vst [vmem:[#allocation185_spill] sm:$0xff] %v4940_v54  ;;  %v1413_v8 = vmul.f32 %v6381_v23, %v1396_v28  ;;  %v6383_v43 = vmov %v6381_v23  ;;  %v1423_v19 = vmul.f32 %v6384_v25, %v1396_v28  ;;  %v6386_v26 = vstv %s6371_s8 }
 0x546   : > { %6378 = vst [vmem:[#allocation186_spill] sm:$0xff] %v4945_v47  ;;  %v1414_v54 = vmul.f32 %v6383_v43, %v1397_v49  ;;  %v1433_v47 = vmul.f32 %v6386_v26, %v1396_v28  ;;  %v6388_v30 = vstv %s6373_s7  ;;  %v4974_v43 = vadd.f32 %v4663_v55, %v1403_v57  ;;  %s6410_s7 = sld [smem:[#allocation139_spill]] }
 0x547   : > { %v4966_v61 = vmul.f32 %v6388_v30, %v4931_v45  ;;  %v6390_v62 = vmov %v6388_v30  ;;  %v4977_v25 = vadd.f32 %v4667_v59, %v1404_v21  ;;  %v6392_v42 = vstv %s6369_s18  ;;  %s6404_s18 = sld [smem:[#allocation137_spill]] }
 0x548   : > { %v4971_v23 = vmul.f32 %v6390_v62, %v4927_v3  ;;  %v1424_v26 = vmul.f32 %v6392_v42, %v1397_v49  ;;  %v6393_v36 = vstv %s6371_s8  ;;  %v4986_v51 = vadd.f32 %v4671_v27, %v1413_v8  ;;  %s6405_s8 = sld [smem:[#allocation138_spill]]  ;;  %v1574_v8 = vpop.permute.xlu0 %1573 }
 0x549   : > { %6389 = vst [vmem:[#allocation187_spill] sm:$0xff] %v4966_v61  ;;  %v4983_v7 = vmul.f32 %v6393_v36, %v1397_v49  ;;  %v4989_v30 = vadd.f32 %v4675_v9, %v1414_v54  ;;  %v4992_v62 = vadd.f32 %v4694_v41, %v1433_v47  ;;  %v6396_v3 = vstv %s6382_s21  ;;  %v1576_v47 = vpop.permute.xlu1 %1575  ;;  %s6412_s21 = sld [smem:[#allocation140_spill]] }
 0x54a   : > { %6391 = vst [vmem:[#allocation188_spill] sm:$0xff] %v4971_v23  ;;  %v1443_v57 = vmul.f32 %v6396_v3, %v1396_v28  ;;  %v6397_v55 = vmov %v6396_v3  ;;  %v6398_v59 = vstv %s6385_s27  ;;  %v6400_v61 = vstv %s6387_s10  ;;  %s6416_s27 = sld [smem:[#allocation141_spill]]  ;;  %s6424_s10 = sld [smem:[#allocation143_spill]] }
 0x54b   : > { %6394 = vst [vmem:[#allocation189_spill] sm:$0xff] %v4983_v7  ;;  %6395 = vst [vmem:[#allocation190_spill] sm:$0xff] %v4992_v62  ;;  %v1444_v45 = vmul.f32 %v6397_v55, %v1397_v49  ;;  %v1453_v21 = vmul.f32 %v6398_v59, %v1396_v28  ;;  %v6399_v23 = vmov %v6398_v59  ;;  %v1463_v36 = vmul.f32 %v6400_v61, %v1396_v28 }
 0x54c   : > { %v1454_v42 = vmul.f32 %v6399_v23, %v1397_v49  ;;  %v5005_v27 = vadd.f32 %v4680_v50, %v1423_v19  ;;  %v6402_v9 = vmov %v6400_v61  ;;  %v1475_v41 = vsel %vm1474_vm15, %v1471_v35, %v1473_v18 }
 0x54d   : > { %v1464_v54 = vmul.f32 %v6402_v9, %v1397_v49  ;;  %v1476_v3 = vsel %vm1474_vm15, %v1473_v18, %v1471_v35  ;;  %v5014_v28 = vadd.f32 %v4684_v48, %v1424_v26  ;;  %v5017_v50 = vadd.f32 %v4707_v34, %v1443_v57  ;;  %v1763_v9 = vpop.permute.xlu1 %1762 }
 0x54e   : > { %v5020_v19 = vadd.f32 %v4711_v24, %v1444_v45  ;;  %v5023_v49 = vadd.f32 %v4715_v37, %v1453_v21  ;;  %v5026_v61 = vadd.f32 %v4719_v10, %v1454_v42  ;;  %v5029_v35 = vadd.f32 %v4723_v17, %v1463_v36 }
 0x54f   : > { %v1485_v48 = vsel %vm1483_vm0, %v1476_v3, 0.0  ;;  %v1486_v34 = vsel %vm1484_vm1, %v1475_v41, 0.0  ;;  %v6407_v18 = vstv %s6401_s2  ;;  %v6409_v37 = vstv %s6403_s25  ;;  %v1761_v41 = vpop.permute.xlu0 %1760  ;;  %s6426_s2 = sld [smem:[#allocation144_spill]]  ;;  %s6429_s25 = sld [smem:[#allocation145_spill]] }
 0x550   : > { %6406 = vst [vmem:[#allocation191_spill] sm:$0xff] %v5029_v35  ;;  %v1492_v24 = vmul.f32 %v6407_v18, %v1485_v48  ;;  %v6408_v45 = vmov %v6407_v18  ;;  %v1504_v26 = vmul.f32 %v6409_v37, %v1485_v48  ;;  %v6411_v10 = vmov %v6409_v37 }
 0x551   : > { %v1493_v23 = vmul.f32 %v6408_v45, %v1486_v34  ;;  %v1505_v57 = vmul.f32 %v6411_v10, %v1486_v34  ;;  %v5044_v17 = vadd.f32 %v4727_v32, %v1464_v54  ;;  %v6414_v55 = vstv %s6404_s18  ;;  %s6433_s18 = sld [smem:[#allocation146_spill]] }
 0x552   : > { %v1516_v59 = vmul.f32 %v6414_v55, %v1485_v48  ;;  %v6415_v21 = vstv %s6405_s8  ;;  %v1578_v36 = vsel %vm1577_vm2, %v1574_v8, %v1576_v47  ;;  %v5053_v3 = vadd.f32 %v4731_v5, %v1492_v24  ;;  %s6434_s8 = sld [smem:[#allocation147_spill]] }
 0x553   : > { %6413 = vst [vmem:[#allocation192_spill] sm:$0xff] %v5044_v17  ;;  %v1528_v42 = vmul.f32 %v6415_v21, %v1485_v48  ;;  %v5056_v18 = vadd.f32 %v4735_v63, %v1493_v23  ;;  %v6417_v32 = vmov %v6414_v55  ;;  %v6418_v45 = vmov %v6415_v21 }
 0x554   : > { %v1517_v54 = vmul.f32 %v6417_v32, %v1486_v34  ;;  %v5062_v37 = vmul.f32 %v6418_v45, %v1486_v34  ;;  %v5065_v10 = vadd.f32 %v4739_v6, %v1504_v26  ;;  %v5068_v55 = vadd.f32 %v4743_v46, %v1505_v57  ;;  %v1866_v57 = vpop.permute.xlu1 %1865 }
 0x555   : > { %v5071_v21 = vadd.f32 %v4757_v13, %v1528_v42  ;;  %v6421_v62 = vstv %s6410_s7  ;;  %v6423_v63 = vstv %s6412_s21  ;;  %v5084_v6 = vadd.f32 %v4747_v22, %v1516_v59  ;;  %v1864_v42 = vpop.permute.xlu0 %1863  ;;  %s6437_s7 = sld [smem:[#allocation148_spill]]  ;;  %s6440_s21 = sld [smem:[#allocation150_spill]] }
 0x556   : > { %6419 = vst [vmem:[#allocation193_spill] sm:$0xff] %v5062_v37  ;;  %v1540_v5 = vmul.f32 %v6421_v62, %v1485_v48  ;;  %v6422_v24 = vmov %v6421_v62  ;;  %v1552_v23 = vmul.f32 %v6423_v63, %v1485_v48  ;;  %v6425_v32 = vmov %v6423_v63 }
 0x557   : > { %6420 = vst [vmem:[#allocation194_spill] sm:$0xff] %v5071_v21  ;;  %v1541_v7 = vmul.f32 %v6422_v24, %v1486_v34  ;;  %v1553_v45 = vmul.f32 %v6425_v32, %v1486_v34  ;;  %v6427_v37 = vstv %s6416_s27  ;;  %v1579_v13 = vsel %vm1577_vm2, %v1576_v47, %v1574_v8  ;;  %s6449_s27 = sld [smem:[#allocation152_spill]] }
 0x558   : > { %v1564_v35 = vmul.f32 %v6427_v37, %v1485_v48  ;;  %v6428_v46 = vmov %v6427_v37  ;;  %v5092_v62 = vsel %vm1587_vm4, %v1578_v36, 0.0  ;;  %v5095_v24 = vadd.f32 %v4751_v56, %v1517_v54 }
 0x559   : > { %v1565_v26 = vmul.f32 %v6428_v46, %v1486_v34  ;;  %6430 = vst [vmem:[#allocation195_spill] sm:$0xff] %v5092_v62  ;;  %v5098_v22 = vadd.f32 %v4769_v11, %v1540_v5  ;;  %v5101_v48 = vadd.f32 %v4773_v39, %v1541_v7  ;;  %v5104_v34 = vadd.f32 %v4785_v60, %v1552_v23 }
 0x55a   : > { %v5107_v47 = vadd.f32 %v4789_v2, %v1553_v45  ;;  %v1588_v8 = vsel %vm1586_vm3, %v1579_v13, 0.0  ;;  %v6431_v59 = vstv %s6424_s10  ;;  %v6432_v36 = vstv %s6426_s2  ;;  %s6451_s10 = sld [smem:[#allocation153_spill]] }
 0x55b   : > { %v1596_v56 = vmul.f32 %v6431_v59, %v5092_v62  ;;  %v1608_v11 = vmul.f32 %v6432_v36, %v5092_v62  ;;  %v5119_v60 = vadd.f32 %v4793_v20, %v1564_v35  ;;  %v6436_v7 = vmov %v6431_v59 }
 0x55c   : > { %v1595_v2 = vmul.f32 %v6436_v7, %v1588_v8  ;;  %v6438_v39 = vmov %v6432_v36  ;;  %v6439_v37 = vstv %s6429_s25  ;;  %vm1979_vm12 = vcmp.lt.s32.totalorder %v4495_v58, 13 }
 0x55d   : > { %6435 = vst [vmem:[#allocation196_spill] sm:$0xff] %v5119_v60  ;;  %v1607_v54 = vmul.f32 %v6438_v39, %v1588_v8  ;;  %v1619_v5 = vmul.f32 %v6439_v37, %v1588_v8  ;;  %vm1980_vm13 = vcmp.lt.s32.totalorder %v4503_v12, 13  ;;  %v5130_v63 = vadd.f32 %v4797_v44, %v1565_v26 }
 0x55e   : > { %v1601_v20 = vadd.f32 %v4807_v4, %v1596_v56  ;;  %v5134_v35 = vadd.f32 %v4817_v0, %v1608_v11  ;;  %v6442_v23 = vmov %v6439_v37  ;;  %v1600_v45 = vadd.f32 %v4802_v15, %v1595_v2  ;;  %v1969_v15 = vpop.permute.xlu1 %1968 }
 0x55f   : > { %6441 = vst [vmem:[#allocation197_spill] sm:$0xff] %v5130_v63  ;;  %v1620_v32 = vmul.f32 %v6442_v23, %v5092_v62  ;;  %v5141_v46 = vadd.f32 %v4812_v33, %v1607_v54  ;;  %v5144_v13 = vadd.f32 %v4822_v16, %v1619_v5  ;;  %v6443_v59 = vstv %s6433_s18  ;;  %v1967_v33 = vpop.permute.xlu0 %1966 }
 0x560   : > { %v5148_v36 = vmul.f32 %v6443_v59, %v1588_v8  ;;  %v6445_v44 = vstv %s6434_s8  ;;  %v6447_v56 = vstv %s6437_s7  ;;  %v6450_v2 = vstv %s6440_s21  ;;  %s6662_s21 = sld [smem:[#allocation18_spill]] }
 0x561   : > { %v1643_v26 = vmul.f32 %v6445_v44, %v1588_v8  ;;  %v6446_v4 = vmov %v6445_v44  ;;  %v1655_v11 = vmul.f32 %v6447_v56, %v1588_v8  ;;  %v6448_v7 = vmov %v6447_v56 }
 0x562   : > { %6444 = vst [vmem:[#allocation198_spill] sm:$0xff] %v5148_v36  ;;  %v1644_v0 = vmul.f32 %v6446_v4, %v5092_v62  ;;  %v1656_v39 = vmul.f32 %v6448_v7, %v5092_v62  ;;  %v1667_v16 = vmul.f32 %v6450_v2, %v1588_v8  ;;  %v6452_v54 = vmov %v6450_v2 }
 0x563   : > { %v1668_v37 = vmul.f32 %v6452_v54, %v5092_v62  ;;  %v1765_v5 = vsel %vm1764_vm5, %v1761_v41, %v1763_v9  ;;  %v1766_v23 = vsel %vm1764_vm5, %v1763_v9, %v1761_v41  ;;  %v5170_v59 = vadd.f32 %v4827_v40, %v1620_v32 }
 0x564   : > { %v5173_v44 = vadd.f32 %v4832_v31, %v1643_v26  ;;  %v5176_v8 = vadd.f32 %v4837_v29, %v1644_v0  ;;  %v5179_v4 = vadd.f32 %v4842_v52, %v1655_v11  ;;  %v5182_v56 = vadd.f32 %v4847_v38, %v1656_v39 }
 0x565   : > { %v5185_v9 = vadd.f32 %v4856_v1, %v1667_v16  ;;  %v5189_v40 = vsel %vm1773_vm6, %v1765_v5, 0.0  ;;  %v5193_v31 = vsel %vm1774_vm7, %v1766_v23, 0.0  ;;  %v5196_v29 = vadd.f32 %v4861_v53, %v1668_v37 }
 0x566   : > { %6454 = vst [vmem:[#allocation200_spill] sm:$0xff] %v5189_v40  ;;  %v6456_v52 = vstv %s6449_s27  ;;  %v6458_v1 = vstv %s6451_s10  ;;  %v6460_v7 = vstv %s6284_s28  ;;  %v6462_v16 = vstv %s6285_s30  ;;  %s6516_s28 = sld [smem:[#allocation165_spill]]  ;;  %s6534_s30 = sld [smem:[#allocation163_spill]] }
 0x567   : > { %6453 = vst [vmem:[#allocation199_spill] sm:$0xff] %v5185_v9  ;;  %6455 = vst [vmem:[#allocation201_spill] sm:$0xff] %v5196_v29  ;;  %v1782_v41 = vmul.f32 %v6456_v52, %v5189_v40  ;;  %v6457_v38 = vmov %v6456_v52  ;;  %v1794_v26 = vmul.f32 %v6458_v1, %v5189_v40  ;;  %v6459_v0 = vmov %v6458_v1  ;;  %p6665_p12 = scmp.ne.s32.totalorder %s6662_s21, 0 }
 0x568   : > { %v1783_v32 = vmul.f32 %v6457_v38, %v5193_v31  ;;  %v1795_v11 = vmul.f32 %v6459_v0, %v5193_v31  ;;  %v5213_v39 = vmul.f32 %v6460_v7, %v5189_v40  ;;  %v6461_v2 = vmov %v6460_v7 }
 0x569   : > { %v5218_v53 = vmul.f32 %v6461_v2, %v5193_v31  ;;  %v5223_v54 = vmul.f32 %v6462_v16, %v5189_v40  ;;  %v6463_v37 = vmov %v6462_v16  ;;  %v6464_v23 = vstv %s4498_s19  ;;  %v1976_v2 = vpop.permute.xlu1 %1975  ;;  %v1974_v16 = vpop.permute.xlu0 %1973  ;;  %s6475_s19 = sld [smem:[#allocation151_spill]] }
 0x56a   : > { %v5228_v5 = vmul.f32 %v6463_v37, %v5193_v31  ;;  %v5233_v52 = vmul.f32 %v6464_v23, %v5189_v40  ;;  %v6466_v38 = vmov %v6464_v23  ;;  %v6467_v0 = vstv %s4500_s24 }
 0x56b   : > { %v5238_v1 = vmul.f32 %v6466_v38, %v5193_v31  ;;  %v5243_v7 = vmul.f32 %v6467_v0, %v5189_v40  ;;  %v1868_v37 = vsel %vm1867_vm8, %v1864_v42, %v1866_v57  ;;  %v1869_v36 = vsel %vm1867_vm8, %v1866_v57, %v1864_v42 }
 0x56c   : > { %6465 = vst [vmem:[#allocation202_spill] sm:$0xff] %v5233_v52  ;;  %v1971_v23 = vsel %vm1970_vm11, %v1967_v33, %v1969_v15  ;;  %v1972_v38 = vsel %vm1970_vm11, %v1969_v15, %v1967_v33  ;;  %v5255_v0 = vsel %vm1876_vm9, %v1868_v37, 0.0  ;;  %v5259_v40 = vsel %vm1877_vm10, %v1869_v36, 0.0  ;;  %v6469_v33 = vld [vmem:[#allocation174_spill] sm:$0xff]  ;;  %v6483_v52 = vld [vmem:[#allocation71_spill] sm:$0xff] }
 0x56d   : > { %6468 = vst [vmem:[#allocation203_spill] sm:$0xff] %v5243_v7  ;;  %v5263_v21 = vsel %vm1979_vm12, %v1971_v23, 0.0  ;;  %v5267_v57 = vsel %vm1980_vm13, %v1972_v38, 0.0  ;;  %v1977_v42 = vsel %vm1970_vm11, %v1974_v16, %v1976_v2  ;;  %v1978_v15 = vsel %vm1970_vm11, %v1976_v2, %v1974_v16 }
 0x56e   : > { %v1500_v36 = vadd.f32 %v5056_v18, %v4977_v25  ;;  %v1788_v37 = vadd.f32 %v6469_v33, %v1783_v32  ;;  %v5278_v23 = vsel %vm1979_vm12, %v1977_v42, 0.0  ;;  %v5282_v38 = vsel %vm1980_vm13, %v1978_v15, 0.0  ;;  %v6473_v32 = vld [vmem:[#allocation173_spill] sm:$0xff]  ;;  %v6474_v42 = vld [vmem:[#allocation187_spill] sm:$0xff] }
 0x56f   : > { %v6470_v62 = vstv %s4508_s15  ;;  %v6471_v7 = vstv %s6287_s23  ;;  %v6472_v25 = vstv %s6290_s5  ;;  %v1499_v58 = vadd.f32 %v5053_v3, %v4974_v43  ;;  %s3052_s15 = smov 48   ;;  %s6637_s5 = sld [smem:[#allocation15_spill]] }
 0x570   : > { %v1886_v9 = vmul.f32 %v6470_v62, %v5259_v40  ;;  %v1989_v14 = vmul.f32 %v6471_v7, %v5267_v57  ;;  %v1603_v2 = vadd.f32 %v1601_v20, %v1500_v36  ;;  %v1992_v18 = vmul.f32 %v6472_v25, %v5282_v38 }
 0x571   : > { %v1787_v16 = vadd.f32 %v6473_v32, %v1782_v41  ;;  %v6476_v15 = vmov %v6470_v62  ;;  %v6477_v33 = vmov %v6471_v7  ;;  %v6478_v20 = vmov %v6472_v25  ;;  %v6479_v25 = vld [vmem:[#allocation62_spill] sm:$0xff]  ;;  %v6480_v41 = vld [vmem:[#allocation188_spill] sm:$0xff] }
 0x572   : > { %v1891_v12 = vadd.f32 %v6474_v42, %v1886_v9  ;;  %v1885_v62 = vmul.f32 %v6476_v15, %v5255_v0  ;;  %v1988_v7 = vmul.f32 %v6477_v33, %v5263_v21  ;;  %v1991_v36 = vmul.f32 %v6478_v20, %v5278_v23  ;;  %v6481_v42 = vld [vmem:[#allocation176_spill] sm:$0xff] }
 0x573   : > { %v1687_v60 = vadd.f32 %v6479_v25, %v1603_v2  ;;  %v1994_v29 = vadd.f32 %v1992_v18, %v1989_v14  ;;  %v1602_v43 = vadd.f32 %v1600_v45, %v1499_v58  ;;  %v1512_v3 = vadd.f32 %v5068_v55, %v4989_v30  ;;  %v6484_v14 = vld [vmem:[#allocation184_spill] sm:$0xff] }
 0x574   : > { %v1890_v9 = vadd.f32 %v6480_v41, %v1885_v62  ;;  %v1993_v32 = vadd.f32 %v1991_v36, %v1988_v7  ;;  %v1800_v63 = vadd.f32 %v6481_v42, %v1795_v11  ;;  %v6482_v15 = vstv %s6288_s17  ;;  %v6488_v7 = vld [vmem:[#allocation175_spill] sm:$0xff]  ;;  %v6489_v36 = vld [vmem:[#allocation75_spill] sm:$0xff]  ;;  %s3053_s17 = smov 32  }
 0x575   : > { %v1898_v17 = vmul.f32 %v6482_v15, %v5259_v40  ;;  %v1790_v33 = vadd.f32 %v1788_v37, %v1687_v60  ;;  %v1686_v20 = vadd.f32 %v6483_v52, %v1602_v43  ;;  %v1615_v2 = vadd.f32 %v5134_v35, %v1512_v3 }
 0x576   : > { %v6485_v45 = vstv %s6475_s19  ;;  %v6486_v30 = vstv %s4532_s9  ;;  %v6487_v58 = vstv %s4534_s22  ;;  %v1511_v62 = vadd.f32 %v5065_v10, %v4986_v51  ;;  %s3058_s19 = smov [#allocation7]  }
 0x577   : > { %v1901_v18 = vmul.f32 %v6485_v45, %v6484_v14  ;;  %v2001_v55 = vmul.f32 %v6486_v30, %v5267_v57  ;;  %v2004_v11 = vmul.f32 %v6487_v58, %v5282_v38  ;;  %v1799_v60 = vadd.f32 %v6488_v7, %v1794_v26 }
 0x578   : > { %v1893_v37 = vadd.f32 %v1891_v12, %v1790_v33  ;;  %v1789_v52 = vadd.f32 %v1787_v16, %v1686_v20  ;;  %v1699_v35 = vadd.f32 %v6489_v36, %v1615_v2  ;;  %v1614_v3 = vadd.f32 %v5141_v46, %v1511_v62  ;;  %v6493_v12 = vld [vmem:[#allocation90_spill] sm:$0xff] }
 0x579   : > { %v1903_v25 = vadd.f32 %v1901_v18, %v1898_v17  ;;  %v2006_v43 = vadd.f32 %v2004_v11, %v2001_v55  ;;  %v6490_v41 = vmov %v6482_v15  ;;  %v6491_v15 = vld [vmem:[#allocation183_spill] sm:$0xff]  ;;  %v6492_v26 = vstv %s4532_s9  ;;  %s6518_s9 = sld [smem:[#allocation162_spill]] }
 0x57a   : > { %v1897_v42 = vmul.f32 %v6490_v41, %v5255_v0  ;;  %v1900_v30 = vmul.f32 %v6485_v45, %v6491_v15  ;;  %v1996_v58 = vadd.f32 %v1994_v29, %v1893_v37  ;;  %v1892_v51 = vadd.f32 %v1890_v9, %v1789_v52 }
 0x57b   : > { %v1802_v10 = vadd.f32 %v1800_v63, %v1699_v35  ;;  %v2000_v16 = vmul.f32 %v6492_v26, %v5263_v21  ;;  %v1698_v17 = vadd.f32 %v6493_v12, %v1614_v3  ;;  %v6494_v46 = vstv %s4534_s22  ;;  %v6495_v63 = vld [vmem:[#allocation178_spill] sm:$0xff]  ;;  %v6500_v3 = vld [vmem:[#allocation91_spill] sm:$0xff]  ;;  %s6581_s22 = sld [smem:[#allocation158_spill]] }
 0x57c   : > { %v1902_v33 = vadd.f32 %v1900_v30, %v1897_v42  ;;  %v2003_v20 = vmul.f32 %v6494_v46, %v5278_v23  ;;  %v1524_v2 = vadd.f32 %v5095_v24, %v5014_v28  ;;  %2071 = vrot.lane.b32.xlu1 %v1996_v58, %s3052_s15  ;;  %v1995_v29 = vadd.f32 %v1993_v32, %v1892_v51  ;;  %v6502_v30 = vld [vmem:[#allocation177_spill] sm:$0xff] }
 0x57d   : > { %v1905_v9 = vadd.f32 %v1903_v25, %v1802_v10  ;;  %v1812_v18 = vadd.f32 %v6495_v63, %v5218_v53  ;;  %v6496_v55 = vstv %s6293_s20  ;;  %v1801_v62 = vadd.f32 %v1799_v60, %v1698_v17  ;;  %v6507_v46 = vld [vmem:[#allocation92_spill] sm:$0xff]  ;;  %v6509_v63 = vld [vmem:[#allocation180_spill] sm:$0xff]  ;;  %s6521_s20 = sld [smem:[#allocation166_spill]] }
 0x57e   : > { %v1910_v11 = vmul.f32 %v6496_v55, %v5259_v40  ;;  %v2005_v7 = vadd.f32 %v2003_v20, %v2000_v16  ;;  %v1627_v37 = vadd.f32 %v5170_v59, %v1524_v2  ;;  %v6497_v52 = vstv %s6289_s29  ;;  %2069 = vrot.lane.b32.xlu0 %v1995_v29, %s3052_s15  ;;  %s3054_s29 = smov 16   ;;  %s2962_s15 = sshll.u32 %s3058_s19, 4  ;;  %s2963_s15 = int_to_ptr.vmem [resolvable:$false] %s2962_s15 }
 0x57f   : > { %v1913_v28 = vmul.f32 %v6497_v52, %v6484_v14  ;;  %v6498_v24 = vstv %s4500_s24  ;;  %v2008_v36 = vadd.f32 %v2006_v43, %v1905_v9  ;;  %v6499_v53 = vstv %s4550_s11  ;;  %s6503_s24 = sld [smem:[#allocation160_spill]]  ;;  %s2700_s11 = sshll.u32 %s6637_s5, 13 }
 0x580   : > { %v5357_v32 = vmul.f32 %v6498_v24, %v5193_v31  ;;  %v2016_v35 = vmul.f32 %v6499_v53, %v5282_v38  ;;  %v1523_v60 = vadd.f32 %v5084_v6, %v5005_v27  ;;  %v1904_v25 = vadd.f32 %v1902_v33, %v1801_v62 }
 0x581   : > { %v1711_v59 = vadd.f32 %v6500_v3, %v1627_v37  ;;  %v1915_v41 = vadd.f32 %v1913_v28, %v1910_v11  ;;  %v6501_v42 = vstv %s4548_s26  ;;  %2082 = vrot.lane.b32.xlu1 %v2008_v36, %s3053_s17  ;;  %v1811_v58 = vadd.f32 %v6502_v30, %v5213_v39 }
 0x582   : > { %v2013_v45 = vmul.f32 %v6501_v42, %v5267_v57  ;;  %v1626_v43 = vadd.f32 %v5144_v13, %v1523_v60  ;;  %v6504_v51 = vmov %v6496_v55  ;;  %v6505_v6 = vmov %v6497_v52 }
 0x583   : > { %v1909_v27 = vmul.f32 %v6504_v51, %v5255_v0  ;;  %v1912_v10 = vmul.f32 %v6505_v6, %v6491_v15  ;;  %v2007_v26 = vadd.f32 %v2005_v7, %v1904_v25  ;;  %v1814_v16 = vadd.f32 %v1812_v18, %v1711_v59  ;;  %v6514_v25 = vld [vmem:[#allocation93_spill] sm:$0xff]  ;;  %v6515_v59 = vld [vmem:[#allocation179_spill] sm:$0xff] }
 0x584   : > { %v2018_v12 = vadd.f32 %v2016_v35, %v2013_v45  ;;  %v6506_v17 = vmov %v6499_v53  ;;  %v1710_v13 = vadd.f32 %v6507_v46, %v1626_v43  ;;  %v6508_v2 = vmov %v6501_v42 }
 0x585   : > { %v2015_v33 = vmul.f32 %v6506_v17, %v5278_v23  ;;  %v1914_v20 = vadd.f32 %v1912_v10, %v1909_v27  ;;  %v2012_v39 = vmul.f32 %v6508_v2, %v5263_v21  ;;  %v1548_v29 = vadd.f32 %v5101_v48, %v5020_v19  ;;  %2080 = vrot.lane.b32.xlu0 %v2007_v26, %s3053_s17  ;;  %v6523_v26 = vld [vmem:[#allocation94_spill] sm:$0xff]  ;;  %s2964_s17 = scalar_lea.vmem %s2963_s15, 16384 }
 0x586   : > { %v1917_v9 = vadd.f32 %v1915_v41, %v1814_v16  ;;  %v1836_v18 = vadd.f32 %v6509_v63, %v5228_v5  ;;  %v6510_v55 = vstv %s4565_s13  ;;  %v6511_v62 = vstv %s6503_s24  ;;  %s3056_s13 = smov 96  }
 0x587   : > { %v1934_v11 = vmul.f32 %v6510_v55, %v5259_v40  ;;  %v1937_v7 = vmul.f32 %v6511_v62, %v6484_v14  ;;  %v1813_v37 = vadd.f32 %v1811_v58, %v1710_v13  ;;  %v2017_v52 = vadd.f32 %v2015_v33, %v2012_v39 }
 0x588   : > { %v1651_v28 = vadd.f32 %v5176_v8, %v1548_v29  ;;  %v6512_v19 = vstv %s4575_s6  ;;  %v2020_v24 = vadd.f32 %v2018_v12, %v1917_v9  ;;  %v6513_v5 = vstv %s4567_s14  ;;  %v6524_v12 = vld [vmem:[#allocation182_spill] sm:$0xff]  ;;  %s3055_s6 = smov 112   ;;  %s6576_s14 = sld [smem:[#allocation157_spill]] }
 0x589   : > { %v2040_v48 = vmul.f32 %v6512_v19, %v5282_v38  ;;  %v1939_v36 = vadd.f32 %v1937_v7, %v1934_v11  ;;  %v2037_v53 = vmul.f32 %v6513_v5, %v5267_v57  ;;  %v1547_v35 = vadd.f32 %v5098_v22, %v5017_v50  ;;  %v6529_v11 = vld [vmem:[#allocation95_spill] sm:$0xff] }
 0x58a   : > { %v1916_v60 = vadd.f32 %v1914_v20, %v1813_v37  ;;  %v1735_v3 = vadd.f32 %v6514_v25, %v1651_v28  ;;  %v1835_v41 = vadd.f32 %v6515_v59, %v5223_v54  ;;  %v6517_v8 = vmov %v6510_v55  ;;  %2093 = vrot.lane.b32.xlu1 %v2020_v24, %s3054_s29  ;;  %v6537_v25 = vld [vmem:[#allocation197_spill] sm:$0xff] }
 0x58b   : > { %v1933_v42 = vmul.f32 %v6517_v8, %v5255_v0  ;;  %v2042_v45 = vadd.f32 %v2040_v48, %v2037_v53  ;;  %v1650_v43 = vadd.f32 %v5173_v44, %v1547_v35  ;;  %v6519_v30 = vmov %v6511_v62  ;;  %v6532_v48 = vld [vmem:[#allocation181_spill] sm:$0xff] }
 0x58c   : > { %v1936_v50 = vmul.f32 %v6519_v30, %v6491_v15  ;;  %v6520_v22 = vmov %v6512_v19  ;;  %v2019_v51 = vadd.f32 %v2017_v52, %v1916_v60  ;;  %v1838_v54 = vadd.f32 %v1836_v18, %v1735_v3  ;;  %v6531_v19 = vld [vmem:[#allocation202_spill] sm:$0xff]  ;;  %v6536_v60 = vld [vmem:[#allocation192_spill] sm:$0xff]  ;;  %v6538_v59 = vld [vmem:[#allocation96_spill] sm:$0xff] }
 0x58d   : > { %v2039_v58 = vmul.f32 %v6520_v22, %v5278_v23  ;;  %v6522_v27 = vmov %v6513_v5  ;;  %v1560_v10 = vadd.f32 %v5107_v47, %v5026_v61  ;;  %v1734_v16 = vadd.f32 %v6523_v26, %v1650_v43  ;;  %v6540_v30 = vld [vmem:[#allocation201_spill] sm:$0xff]  ;;  %v6541_v22 = vld [vmem:[#allocation186_spill] sm:$0xff] }
 0x58e   : > { %v2036_v6 = vmul.f32 %v6522_v27, %v5263_v21  ;;  %v1938_v44 = vadd.f32 %v1936_v50, %v1933_v42  ;;  %v1848_v17 = vadd.f32 %v6524_v12, %v5238_v1  ;;  %v6525_v33 = vstv %s6516_s28  ;;  %2091 = vrot.lane.b32.xlu0 %v2019_v51, %s3054_s29 }
 0x58f   : > { %v1946_v46 = vmul.f32 %v6525_v33, %v5259_v40  ;;  %v1941_v13 = vadd.f32 %v1939_v36, %v1838_v54  ;;  %v1663_v2 = vadd.f32 %v5182_v56, %v1560_v10  ;;  %v6526_v39 = vstv %s6518_s9 }
 0x590   : > { %v2041_v20 = vadd.f32 %v2039_v58, %v2036_v6  ;;  %v1949_v61 = vmul.f32 %v6526_v39, %v6484_v14  ;;  %v1837_v47 = vadd.f32 %v1835_v41, %v1734_v16  ;;  %v6527_v29 = vstv %s6521_s20 }
 0x591   : > { %v2049_v9 = vmul.f32 %v6527_v29, %v5267_v57  ;;  %v6528_v1 = vstv %s4585_s0  ;;  %v1559_v18 = vadd.f32 %v5104_v34, %v5023_v49  ;;  %v2044_v55 = vadd.f32 %v2042_v45, %v1941_v13  ;;  %v6547_v13 = vld [vmem:[#allocation191_spill] sm:$0xff]  ;;  %s6549_s0 = sld [smem:[#allocation118_spill]] }
 0x592   : > { %v2052_v63 = vmul.f32 %v6528_v1, %v5282_v38  ;;  %v1747_v62 = vadd.f32 %v6529_v11, %v1663_v2  ;;  %v1951_v7 = vadd.f32 %v1949_v61, %v1946_v46  ;;  %v6530_v56 = vmov %v6525_v33  ;;  %v6553_v11 = vld [vmem:[#allocation199_spill] sm:$0xff] }
 0x593   : > { %v1945_v37 = vmul.f32 %v6530_v56, %v5255_v0  ;;  %v1940_v52 = vadd.f32 %v1938_v44, %v1837_v47  ;;  %v1662_v28 = vadd.f32 %v5179_v4, %v1559_v18  ;;  %v1847_v24 = vadd.f32 %v6532_v48, %v6531_v19  ;;  %2104 = vrot.lane.b32.xlu1 %v2044_v55, %s3055_s6  ;;  %v6550_v47 = vld [vmem:[#allocation203_spill] sm:$0xff] }
 0x594   : > { %v6533_v36 = vmov %v6526_v39  ;;  %v1850_v49 = vadd.f32 %v1848_v17, %v1747_v62  ;;  %v2054_v34 = vadd.f32 %v2052_v63, %v2049_v9  ;;  %v6535_v53 = vmov %v6528_v1  ;;  %v6545_v17 = vld [vmem:[#allocation97_spill] sm:$0xff] }
 0x595   : > { %v1948_v5 = vmul.f32 %v6533_v36, %v6491_v15  ;;  %v2051_v35 = vmul.f32 %v6535_v53, %v5278_v23  ;;  %v1572_v3 = vadd.f32 %v6537_v25, %v6536_v60  ;;  %v2043_v4 = vadd.f32 %v2041_v20, %v1940_v52  ;;  %v6548_v20 = vld [vmem:[#allocation196_spill] sm:$0xff]  ;;  %v6561_v60 = vld [vmem:[#allocation98_spill] sm:$0xff] }
 0x596   : > { %v1746_v41 = vadd.f32 %v6538_v59, %v1662_v28  ;;  %v6539_v42 = vmov %v6527_v29  ;;  %v1953_v43 = vadd.f32 %v1951_v7, %v1850_v49  ;;  %v1860_v58 = vadd.f32 %v6541_v22, %v5357_v32  ;;  %v6551_v29 = vld [vmem:[#allocation185_spill] sm:$0xff] }
 0x597   : > { %v1950_v8 = vadd.f32 %v1948_v5, %v1945_v37  ;;  %v2048_v45 = vmul.f32 %v6539_v42, %v5263_v21  ;;  %v1675_v50 = vadd.f32 %v6540_v30, %v1572_v3  ;;  %v6542_v51 = vstv %s4591_s3  ;;  %2102 = vrot.lane.b32.xlu0 %v2043_v4, %s3055_s6  ;;  %v6555_v37 = vld [vmem:[#allocation195_spill] sm:$0xff]  ;;  %v6559_v49 = vld [vmem:[#allocation169_spill] sm:$0xff]  ;;  %v6562_v4 = vld [vmem:[#allocation170_spill] sm:$0xff]  ;;  %s6564_s3 = sld [smem:[#allocation164_spill]] }
 0x598   : > { %v1958_v54 = vmul.f32 %v6542_v51, %v5259_v40  ;;  %v1849_v27 = vadd.f32 %v1847_v24, %v1746_v41  ;;  %v6543_v10 = vstv %s6534_s30  ;;  %v6544_v16 = vstv %s4599_s4  ;;  %v6565_v42 = vld [vmem:[#allocation189_spill] sm:$0xff]  ;;  %s3057_s4 = smov 80  }
 0x599   : > { %v2053_v6 = vadd.f32 %v2051_v35, %v2048_v45  ;;  %v1961_v26 = vmul.f32 %v6543_v10, %v6484_v14  ;;  %v2064_v44 = vmul.f32 %v6544_v16, %v5282_v38  ;;  %v2056_v12 = vadd.f32 %v2054_v34, %v1953_v43  ;;  %v6566_v45 = vld [vmem:[#allocation167_spill] sm:$0xff]  ;;  %v6567_v30 = vld [vmem:[#allocation193_spill] sm:$0xff] }
 0x59a   : > { %v1759_v33 = vadd.f32 %v6545_v17, %v1675_v50  ;;  %v6546_v32 = vstv %s4593_s1  ;;  %v1571_v2 = vadd.f32 %v6548_v20, %v6547_v13  ;;  %v1952_v39 = vadd.f32 %v1950_v8, %v1849_v27  ;;  %v6568_v50 = vld [vmem:[#allocation168_spill] sm:$0xff]  ;;  %v6570_v27 = vld [vmem:[#allocation194_spill] sm:$0xff]  ;;  %s6571_s1 = sld [smem:[#allocation154_spill]] }
 0x59b   : > { %v2061_v46 = vmul.f32 %v6546_v32, %v5267_v57  ;;  %v1963_v61 = vadd.f32 %v1961_v26, %v1958_v54  ;;  %v1859_v9 = vadd.f32 %v6551_v29, %v6550_v47  ;;  %v6552_v1 = vmov %v6542_v51  ;;  %2115 = vrot.lane.b32.xlu1 %v2056_v12, %s3056_s13  ;;  %v6569_v54 = vld [vmem:[#allocation190_spill] sm:$0xff]  ;;  %v6573_v12 = vld [vmem:[#allocation200_spill] sm:$0xff] }
 0x59c   : > { %v1957_v63 = vmul.f32 %v6552_v1, %v5255_v0  ;;  %v1862_v18 = vadd.f32 %v1860_v58, %v1759_v33  ;;  %v1674_v62 = vadd.f32 %v6553_v11, %v1571_v2  ;;  %v6554_v7 = vmov %v6543_v10  ;;  %v6572_v10 = vld [vmem:[#allocation198_spill] sm:$0xff]  ;;  %v6577_v2 = vld [vmem:[#allocation171_spill] sm:$0xff]  ;;  %v6579_v47 = vld [vmem:[#allocation172_spill] sm:$0xff] }
 0x59d   : > { %v2066_v55 = vadd.f32 %v2064_v44, %v2061_v46  ;;  %v1960_v56 = vmul.f32 %v6554_v7, %v6491_v15  ;;  %v6556_v52 = vstv %s6433_s18  ;;  %v2055_v19 = vadd.f32 %v2053_v6, %v1952_v39  ;;  %s6658_s18 = sld [smem:[#allocation208_spill]] }
 0x59e   : > { %v1632_v28 = vmul.f32 %v6556_v52, %v6555_v37  ;;  %v6557_v48 = vmov %v6546_v32  ;;  %v6558_v36 = vmov %v6544_v16  ;;  %v6560_v34 = vstv %s6549_s0 }
 0x59f   : > { %v2060_v24 = vmul.f32 %v6557_v48, %v5263_v21  ;;  %v2063_v5 = vmul.f32 %v6558_v36, %v5278_v23  ;;  %v1634_v53 = vmul.f32 %v6560_v34, %v6559_v49  ;;  %v1965_v35 = vadd.f32 %v1963_v61, %v1862_v18  ;;  %2113 = vrot.lane.b32.xlu0 %v2055_v19, %s3056_s13  ;;  %v6586_v19 = vld [vmem:[#allocation100_spill] sm:$0xff] }
 0x5a0   : > { %v1758_v25 = vadd.f32 %v6561_v60, %v1674_v62  ;;  %v1962_v3 = vadd.f32 %v1960_v56, %v1957_v63  ;;  %v6563_v59 = vmov %v6560_v34  ;;  %v1439_v43 = vadd.f32 %v6566_v45, %v6565_v42  ;;  %v6585_v56 = vld [vmem:[#allocation99_spill] sm:$0xff] }
 0x5a1   : > { %v1635_v41 = vmul.f32 %v6563_v59, %v6562_v4  ;;  %v2065_v8 = vadd.f32 %v2063_v5, %v2060_v24  ;;  %v1534_v22 = vadd.f32 %v6568_v50, %v6567_v30  ;;  %v2068_v58 = vadd.f32 %v2066_v55, %v1965_v35 }
 0x5a2   : > { %v1861_v51 = vadd.f32 %v1859_v9, %v1758_v25  ;;  %v1535_v6 = vadd.f32 %v6570_v27, %v6569_v54  ;;  %v1636_v26 = vadd.f32 %v1634_v53, %v6572_v10  ;;  %v6574_v17 = vstv %s4608_s12 }
 0x5a3   : > { %v1536_v16 = vadd.f32 %v1534_v22, %v1439_v43  ;;  %v1637_v44 = vadd.f32 %v1635_v41, %v1632_v28  ;;  %v1818_v33 = vmul.f32 %v6574_v17, %v6573_v12  ;;  %v6575_v32 = vmov %v6574_v17  ;;  %2126 = vrot.lane.b32.xlu1 %v2068_v58, %s3057_s4  ;;  %s6659_s8 = smov %s6658_s18  ;;  %s5741_s7 = scalar_lea.hbm %s6658_s18, %s2700_s11 }
 0x5a4   : > { %v1819_v46 = vmul.f32 %v6575_v32, %v5193_v31  ;;  %v1964_v13 = vadd.f32 %v1962_v3, %v1861_v51  ;;  %v1638_v20 = vadd.f32 %v1636_v26, %v1535_v6  ;;  %v6578_v39 = vstv %s6564_s3  ;;  %v6593_v26 = vld [vmem:[#allocation149_spill] sm:$0xff] }
 0x5a5   : > { %v1821_v61 = vmul.f32 %v6578_v39, %v6577_v2  ;;  %v6580_v29 = vmov %v6578_v39  ;;  %v1639_v1 = vadd.f32 %v1637_v44, %v1536_v16  ;;  %v6582_v63 = vstv %s6299_s16  ;;  %s6595_s16 = sld [smem:[#allocation20_spill]] }
 0x5a6   : > { %v1822_v9 = vmul.f32 %v6580_v29, %v6579_v47  ;;  %v1921_v18 = vmul.f32 %v6582_v63, %v5255_v0  ;;  %v6583_v31 = vmov %v6582_v63  ;;  %v6584_v11 = vstv %s6571_s1 }
 0x5a7   : > { %v1922_v55 = vmul.f32 %v6583_v31, %v5259_v40  ;;  %v1924_v62 = vmul.f32 %v6584_v11, %v6491_v15  ;;  %v2067_v7 = vadd.f32 %v2065_v8, %v1964_v13  ;;  %v1722_v37 = vadd.f32 %v6585_v56, %v1638_v20 }
 0x5a8   : > { %v1823_v52 = vadd.f32 %v1821_v61, %v1818_v33  ;;  %v1824_v28 = vadd.f32 %v1822_v9, %v1819_v46  ;;  %v1723_v48 = vadd.f32 %v6586_v19, %v1639_v1  ;;  %v6587_v24 = vmov %v6584_v11 }
 0x5a9   : > { %v1925_v36 = vmul.f32 %v6587_v24, %v6484_v14  ;;  %v1926_v5 = vadd.f32 %v1924_v62, %v1921_v18  ;;  %v6588_v49 = vstv %s6576_s14  ;;  %2124 = vrot.lane.b32.xlu0 %v2067_v7, %s3057_s4  ;;  %v6590_v15 = vstv %s6581_s22 }
 0x5aa   : > { %v2024_v0 = vmul.f32 %v6588_v49, %v5263_v21  ;;  %v1825_v34 = vadd.f32 %v1823_v52, %v1722_v37  ;;  %v6589_v40 = vmov %v6588_v49  ;;  %v2027_v35 = vmul.f32 %v6590_v15, %v5278_v23  ;;  %v6592_v23 = vld [vmem:[#allocation35_spill] sm:$0xff] }
 0x5ab   : > { %v2025_v53 = vmul.f32 %v6589_v40, %v5267_v57  ;;  %v6591_v60 = vmov %v6590_v15  ;;  %v1826_v3 = vadd.f32 %v1824_v28, %v1723_v48  ;;  %v1927_v4 = vadd.f32 %v1925_v36, %v1922_v55  ;;  %v6594_v40 = vld [vmem:[#allocation39_spill] sm:$0xff]  ;;  %s6604_s12 = sshll.u32 %s6595_s16, 9  ;;  %s2359_s27 = scalar_lea.sflag [#allocation4], %s6595_s16 }
 0x5ac   : > { %v2028_v25 = vmul.f32 %v6591_v60, %v5282_v38  ;;  %v1928_v59 = vadd.f32 %v1926_v5, %v1825_v34  ;;  %v2029_v41 = vadd.f32 %v2027_v35, %v2024_v0  ;;  %vm2095_vm14 = vcmp.lt.s32.totalorder %v6592_v23, 16  ;;  %s5606_s23 = scalar_lea.vmem [#allocation7], %s6604_s12 }
 0x5ad   : > { %v1929_v8 = vadd.f32 %v1927_v4, %v1826_v3  ;;  %vm2084_vm15 = vcmp.lt.s32.totalorder %v6592_v23, 32  ;;  %vm2098_vm0 = vcmp.ge.s32.totalorder %v6592_v23, 16  ;;  %vm2117_vm1 = vcmp.lt.s32.totalorder %v6592_v23, 96  ;;  %s2373_s26 = sshll.u32 %s5606_s23, 4  ;;  %s5751_s26 = int_to_ptr.vmem [resolvable:$true] %s2373_s26 }
 0x5ae   : > { %v2030_v14 = vadd.f32 %v2028_v25, %v2025_v53  ;;  %v2031_v42 = vadd.f32 %v2029_v41, %v1928_v59  ;;  %vm2073_vm2 = vcmp.lt.s32.totalorder %v6592_v23, 48  ;;  %vm2087_vm3 = vcmp.ge.s32.totalorder %v6592_v23, 32  ;;  %s2958_s10 = scalar_lea.vmem %s5751_s26, 8192  ;;  %p2965_p10 = scmp.lt.s32.totalorder %s5751_s26, %s2963_s15 }
 0x5af   : > { %vm2106_vm4 = vcmp.lt.s32.totalorder %v6592_v23, 112  ;;  %vm2121_vm5 = vcmp.lt.s32.totalorder %v6593_v26, 224  ;;  %vm2076_vm6 = vcmp.ge.s32.totalorder %v6592_v23, 48  ;;  %vm2110_vm7 = vcmp.lt.s32.totalorder %v6593_v26, 240  ;;  %p2959_p5 = scmp.ne.s32.totalorder %s5751_s26, %s2958_s10  ;;  %p2966_p1 = scmp.lt.s32.totalorder %s2964_s17, %s2958_s10 }
 0x5b0   : > { %v2032_v45 = vadd.f32 %v2030_v14, %v1929_v8  ;;  %vm2128_vm8 = vcmp.lt.s32.totalorder %v6592_v23, 80  ;;  %vm2132_vm9 = vcmp.lt.s32.totalorder %v6593_v26, 208  ;;  %v2161_v53 = vsub.s32 0, %v6594_v40 }
 0x5b1   : > { %v2185_v15 = vsub.s32 1, %v6594_v40  ;;  %v2210_v35 = vsub.s32 2, %v6594_v40  ;;  %v2235_v60 = vsub.s32 3, %v6594_v40  ;;  %v2260_v3 = vsub.s32 4, %v6594_v40  ;;  %p2960_p8 = pnand %p2959_p5, %p6665_p12  ;;  %p2967_p4 = por %p2966_p1, %p2965_p10 }
 0x5b2   : > { %v2285_v4 = vsub.s32 5, %v6594_v40  ;;  %v2310_v59 = vsub.s32 6, %v6594_v40  ;;  %v2335_v41 = vsub.s32 7, %v6594_v40 }
 0x5b3   : > { %p2961_p9 = pneg %p2960_p8 }
 0x5b5   : > { %p2968_p11 = pnand %p2967_p4, %p2961_p9 }
 0x5ee   : > { %v2072_v21 = vpop.permute.xlu1 %2071 }
 0x5f0   : > { %v2070_v43 = vpop.permute.xlu0 %2069 }
 0x5f1   : > { %v2075_v44 = vsel %vm2073_vm2, %v2072_v21, %v2070_v43  ;;  %v2074_v29 = vsel %vm2073_vm2, %v2070_v43, %v2072_v21 }
 0x5f2   : > { %v2078_v39 = vsel %vm2076_vm6, %v2075_v44, 0.0 }
 0x5f3   : > { %v2083_v30 = vpop.permute.xlu1 %2082 }
 0x5f7   : > { %v2081_v50 = vpop.permute.xlu0 %2080 }
 0x5f8   : > { %v2086_v6 = vsel %vm2084_vm15, %v2083_v30, %v2081_v50  ;;  %v2085_v46 = vsel %vm2084_vm15, %v2081_v50, %v2083_v30 }
 0x5f9   : > { %v2089_v17 = vsel %vm2087_vm3, %v2086_v6, 0.0  ;;  %v2136_v31 = vadd.f32 %v2085_v46, %v2074_v29  ;;  %v6605_v46 = vld [vmem:[#allocation57_spill] sm:$0xff] }
 0x5fa   : > { %v2135_v9 = vadd.f32 %v2089_v17, %v2078_v39  ;;  %v6607_v39 = vld [vmem:[#allocation36_spill] sm:$0xff] }
 0x5fc   : > { %v2094_v22 = vpop.permute.xlu1 %2093 }
 0x600   : > { %v2092_v57 = vpop.permute.xlu0 %2091 }
 0x601   : > { %v2097_v38 = vsel %vm2095_vm14, %v2094_v22, %v2092_v57  ;;  %v2096_v12 = vsel %vm2095_vm14, %v2092_v57, %v2094_v22  ;;  %v6596_v57 = vld [vmem:[#allocation53_spill] sm:$0xff] }
 0x602   : > { %v2100_v10 = vsel %vm2098_vm0, %v2097_v38, 0.0  ;;  %v2138_v61 = vadd.f32 %v2096_v12, %v2032_v45  ;;  %v6598_v38 = vld [vmem:[#allocation73_spill] sm:$0xff]  ;;  %v6602_v12 = vld [vmem:[#allocation74_spill] sm:$0xff] }
 0x603   : > { %v2137_v13 = vadd.f32 %v2100_v10, %v2031_v42  ;;  %v6600_v10 = vld [vmem:[#allocation54_spill] sm:$0xff] }
 0x604   : > { %v2142_v52 = vadd.f32 %v2138_v61, %v2136_v31  ;;  %v6611_v31 = vld [vmem:[#allocation69_spill] sm:$0xff] }
 0x605   : > { %v2105_v58 = vpop.permute.xlu1 %2104  ;;  %v2141_v7 = vadd.f32 %v2137_v13, %v2135_v9  ;;  %v6609_v9 = vld [vmem:[#allocation76_spill] sm:$0xff] }
 0x609   : > { %v2103_v51 = vpop.permute.xlu0 %2102 }
 0x60a   : > { %v2108_v33 = vsel %vm2106_vm4, %v2105_v58, %v2103_v51  ;;  %v2107_v47 = vsel %vm2106_vm4, %v2103_v51, %v2105_v58  ;;  %v6597_v51 = vld [vmem:[#allocation40_spill] sm:$0xff] }
 0x60b   : > { %v2112_v1 = vsel %vm2110_vm7, %v2108_v33, 0.0  ;;  %v6603_v33 = vld [vmem:[#allocation68_spill] sm:$0xff] }
 0x60d   : > { %v2116_v54 = vpop.permute.xlu1 %2115 }
 0x611   : > { %v2114_v27 = vpop.permute.xlu0 %2113 }
 0x612   : > { %v2119_v16 = vsel %vm2117_vm1, %v2116_v54, %v2114_v27  ;;  %v2118_v32 = vsel %vm2117_vm1, %v2114_v27, %v2116_v54  ;;  %v6599_v27 = vld [vmem:[#allocation67_spill] sm:$0xff] }
 0x613   : > { %v2123_v20 = vsel %vm2121_vm5, %v2119_v16, 0.0  ;;  %v2139_v63 = vadd.f32 %v2118_v32, %v2107_v47  ;;  %v6601_v16 = vld [vmem:[#allocation41_spill] sm:$0xff] }
 0x614   : > { %v2140_v55 = vadd.f32 %v2123_v20, %v2112_v1  ;;  %v6606_v20 = vld [vmem:[#allocation58_spill] sm:$0xff]  ;;  %v6608_v47 = vld [vmem:[#allocation37_spill] sm:$0xff] }
 0x615   : > { %v2127_v2 = vpop.permute.xlu1 %2126 }
 0x61b   : > { %v2125_v18 = vpop.permute.xlu0 %2124 }
 0x61c   : > { %v2129_v11 = vsel %vm2128_vm8, %v2125_v18, %v2127_v2  ;;  %v2130_v62 = vsel %vm2128_vm8, %v2127_v2, %v2125_v18 }
 0x61d   : > { %v2134_v56 = vsel %vm2132_vm9, %v2130_v62, 0.0  ;;  %v2143_v37 = vadd.f32 %v2139_v63, %v2129_v11  ;;  %v6610_v63 = vld [vmem:[#allocation77_spill] sm:$0xff]  ;;  %v6612_v11 = vld [vmem:[#allocation70_spill] sm:$0xff] }
 0x61e   : > { %v2144_v28 = vadd.f32 %v2140_v55, %v2134_v56 }
 0x61f   : > { %v2145_v19 = vadd.f32 %v2143_v37, %v2141_v7  ;;  %v6613_v7 = vld [vmem:[#allocation59_spill] sm:$0xff]  ;;  %v6614_v37 = vld [vmem:[#allocation60_spill] sm:$0xff] }
 0x620   : > { %v2146_v48 = vadd.f32 %v2144_v28, %v2142_v52  ;;  %v6615_v28 = vld [vmem:[#allocation42_spill] sm:$0xff] }
 0x621   : > { %v2633_v24 = vmul.f32 -1.442695, %v2145_v19 }
 0x622   : > { %v2634_v36 = vmul.f32 -1.442695, %v2146_v48  ;;  %v6616_v48 = vld [vmem:[#allocation44_spill] sm:$0xff] }
 0x623   : > { %2867 = vpow2.f32 %v2633_v24 }
 0x624   : > { %2869 = vpow2.f32 %v2634_v36  ;;  %v6617_v36 = vld [vmem:[#allocation82_spill] sm:$0xff] }
 0x62d   : > { %v2868_v5 = vpop.eup %2867 }
 0x62e   : > { %v2870_v49 = vpop.eup %2869  ;;  %v2153_v0 = vadd.f32 1.0, %v2868_v5 }
 0x62f   : > { %v2154_v34 = vadd.f32 1.0, %v2870_v49  ;;  %v6618_v49 = vld [vmem:[#allocation83_spill] sm:$0xff] }
 0x630   : > { %2871 = vrcp.f32 %v2153_v0 }
 0x631   : > { %2873 = vrcp.f32 %v2154_v34  ;;  %v6619_v34 = vld [vmem:[#allocation63_spill] sm:$0xff] }
 0x63a   : > { %v5580_v25 = vpop.eup %2871 }
 0x63b   : > { %v5586_v14 = vpop.eup %2873  ;;  %v2162_v8 = vrot.slane %v5580_v25, %v2161_v53  ;;  %v2186_v42 = vrot.slane %v5580_v25, %v2185_v15  ;;  %v2211_v45 = vrot.slane %v5580_v25, %v2210_v35  ;;  %v2236_v21 = vrot.slane %v5580_v25, %v2235_v60 }
 0x63c   : > { %v2166_v43 = vrot.slane %v5586_v14, %v2161_v53  ;;  %v2190_v30 = vrot.slane %v5586_v14, %v2185_v15  ;;  %v2215_v50 = vrot.slane %v5586_v14, %v2210_v35  ;;  %v2240_v22 = vrot.slane %v5586_v14, %v2235_v60  ;;  %v6620_v15 = vld [vmem:[#allocation64_spill] sm:$0xff]  ;;  %v6621_v60 = vld [vmem:[#allocation55_spill] sm:$0xff] }
 0x63d   : > { %v2167_v58 = vmul.f32 %v2162_v8, %v6596_v57  ;;  %v2169_v23 = vmul.f32 %v2162_v8, %v6597_v51  ;;  %v2171_v54 = vmul.f32 %v2162_v8, %v6598_v38  ;;  %v2173_v6 = vmul.f32 %v2162_v8, %v6599_v27 }
 0x63e   : > { %v2168_v26 = vmul.f32 %v2166_v43, %v6600_v10  ;;  %v2170_v44 = vmul.f32 %v2166_v43, %v6601_v16  ;;  %v2172_v17 = vmul.f32 %v2166_v43, %v6602_v12  ;;  %v2174_v32 = vmul.f32 %v2166_v43, %v6603_v33 }
 0x63f   : > { %2175 = vst [vmem:[%s5606_s23] sm:$0xff] %v2167_v58  ;;  %2177 = vst [vmem:[%s5606_s23 + $0x10] sm:$0xff] %v2169_v23  ;;  %v2191_v13 = vmul.f32 %v2186_v42, %v6605_v46  ;;  %v2192_v2 = vmul.f32 %v2190_v30, %v6606_v20  ;;  %v2193_v61 = vmul.f32 %v2186_v42, %v6607_v39  ;;  %v6624_v58 = vld [vmem:[#allocation52_spill] sm:$0xff]  ;;  %v6626_v23 = vld [vmem:[#allocation26_spill] sm:$0xff] }
 0x640   : > { %2179 = vst [vmem:[%s5606_s23 + $0x20] sm:$0xff] %v2171_v54  ;;  %2181 = vst [vmem:[%s5606_s23 + $0x30] sm:$0xff] %v2173_v6  ;;  %v2194_v29 = vmul.f32 %v2190_v30, %v6608_v47  ;;  %v2195_v1 = vmul.f32 %v2186_v42, %v6609_v9  ;;  %v2196_v18 = vmul.f32 %v2190_v30, %v6610_v63  ;;  %v6627_v54 = vld [vmem:[#allocation23_spill] sm:$0xff]  ;;  %v6628_v6 = vld [vmem:[#allocation24_spill] sm:$0xff] }
 0x641   : > { %2176 = vst [vmem:[%s5606_s23 + $0x8] sm:$0xff] %v2168_v26  ;;  %2178 = vst [vmem:[%s5606_s23 + $0x18] sm:$0xff] %v2170_v44  ;;  %v2197_v55 = vmul.f32 %v2186_v42, %v6611_v31  ;;  %v2198_v62 = vmul.f32 %v2190_v30, %v6612_v11  ;;  %v2216_v56 = vmul.f32 %v2211_v45, %v6613_v7  ;;  %v6622_v42 = vld [vmem:[#allocation56_spill] sm:$0xff]  ;;  %v6623_v30 = vld [vmem:[#allocation49_spill] sm:$0xff] }
 0x642   : > { %2180 = vst [vmem:[%s5606_s23 + $0x28] sm:$0xff] %v2172_v17  ;;  %2182 = vst [vmem:[%s5606_s23 + $0x38] sm:$0xff] %v2174_v32  ;;  %v2217_v52 = vmul.f32 %v2215_v50, %v6614_v37  ;;  %v2218_v19 = vmul.f32 %v2211_v45, %v6615_v28  ;;  %v2219_v24 = vmul.f32 %v2215_v50, %v6616_v48  ;;  %v6629_v17 = vld [vmem:[#allocation21_spill] sm:$0xff]  ;;  %v6630_v32 = vld [vmem:[#allocation22_spill] sm:$0xff] }
 0x643   : > { %2635 = vst [vmem:[%s5606_s23 + $0x40] sm:$0xff] %v2191_v13  ;;  %2636 = vst [vmem:[%s5606_s23 + $0x48] sm:$0xff] %v2192_v2  ;;  %v2220_v5 = vmul.f32 %v2211_v45, %v6617_v36  ;;  %v2221_v0 = vmul.f32 %v2215_v50, %v6618_v49  ;;  %v2222_v53 = vmul.f32 %v2211_v45, %v6619_v34  ;;  %v6625_v45 = vld [vmem:[#allocation25_spill] sm:$0xff]  ;;  %v6632_v2 = vld [vmem:[#allocation48_spill] sm:$0xff] }
 0x644   : > { %2637 = vst [vmem:[%s5606_s23 + $0x50] sm:$0xff] %v2193_v61  ;;  %2638 = vst [vmem:[%s5606_s23 + $0x58] sm:$0xff] %v2194_v29  ;;  %v2223_v35 = vmul.f32 %v2215_v50, %v6620_v15  ;;  %v2241_v8 = vmul.f32 %v2236_v21, %v6621_v60  ;;  %v2242_v43 = vmul.f32 %v2240_v22, %v6622_v42  ;;  %v6631_v13 = vld [vmem:[#allocation45_spill] sm:$0xff]  ;;  %v6635_v29 = vld [vmem:[#allocation78_spill] sm:$0xff] }
 0x645   : > { %2639 = vst [vmem:[%s5606_s23 + $0x60] sm:$0xff] %v2195_v1  ;;  %2640 = vst [vmem:[%s5606_s23 + $0x68] sm:$0xff] %v2196_v18  ;;  %v2243_v57 = vmul.f32 %v2236_v21, %v6623_v30  ;;  %v2244_v51 = vmul.f32 %v2240_v22, %v6624_v58  ;;  %v2245_v50 = vmul.f32 %v2236_v21, %v6625_v45  ;;  %v6634_v47 = vld [vmem:[#allocation85_spill] sm:$0xff]  ;;  %v6636_v9 = vld [vmem:[#allocation79_spill] sm:$0xff] }
 0x646   : > { %2641 = vst [vmem:[%s5606_s23 + $0x70] sm:$0xff] %v2197_v55  ;;  %2642 = vst [vmem:[%s5606_s23 + $0x78] sm:$0xff] %v2198_v62  ;;  %v2246_v38 = vmul.f32 %v2240_v22, %v6626_v23  ;;  %v2247_v27 = vmul.f32 %v2236_v21, %v6627_v54  ;;  %v2248_v10 = vmul.f32 %v2240_v22, %v6628_v6  ;;  %v6639_v63 = vld [vmem:[#allocation66_spill] sm:$0xff]  ;;  %v6640_v31 = vld [vmem:[#allocation27_spill] sm:$0xff] }
 0x647   : > { %2643 = vst [vmem:[%s5606_s23 + $0x80] sm:$0xff] %v2216_v56  ;;  %2644 = vst [vmem:[%s5606_s23 + $0x88] sm:$0xff] %v2217_v52  ;;  %v2261_v26 = vrot.slane %v5580_v25, %v2260_v3  ;;  %v2265_v16 = vrot.slane %v5586_v14, %v2260_v3  ;;  %v2286_v44 = vrot.slane %v5580_v25, %v2285_v4  ;;  %v6641_v11 = vld [vmem:[#allocation28_spill] sm:$0xff]  ;;  %v6642_v7 = vld [vmem:[#allocation86_spill] sm:$0xff] }
 0x648   : > { %2645 = vst [vmem:[%s5606_s23 + $0x90] sm:$0xff] %v2218_v19  ;;  %2646 = vst [vmem:[%s5606_s23 + $0x98] sm:$0xff] %v2219_v24  ;;  %v2290_v21 = vrot.slane %v5586_v14, %v2285_v4  ;;  %v2311_v3 = vrot.slane %v5580_v25, %v2310_v59  ;;  %v2315_v22 = vrot.slane %v5586_v14, %v2310_v59  ;;  %v6633_v59 = vld [vmem:[#allocation84_spill] sm:$0xff]  ;;  %v6643_v37 = vld [vmem:[#allocation87_spill] sm:$0xff] }
 0x649   : > { %2647 = vst [vmem:[%s5606_s23 + $0xa0] sm:$0xff] %v2220_v5  ;;  %2648 = vst [vmem:[%s5606_s23 + $0xa8] sm:$0xff] %v2221_v0  ;;  %v2336_v4 = vrot.slane %v5580_v25, %v2335_v41  ;;  %v2340_v12 = vrot.slane %v5586_v14, %v2335_v41  ;;  %v2266_v33 = vmul.f32 %v2261_v26, %v6629_v17  ;;  %v6638_v14 = vld [vmem:[#allocation65_spill] sm:$0xff]  ;;  %v6644_v28 = vld [vmem:[#allocation80_spill] sm:$0xff] }
 0x64a   : > { %2649 = vst [vmem:[%s5606_s23 + $0xb0] sm:$0xff] %v2222_v53  ;;  %2650 = vst [vmem:[%s5606_s23 + $0xb8] sm:$0xff] %v2223_v35  ;;  %v2267_v46 = vmul.f32 %v2265_v16, %v6630_v32  ;;  %v2268_v20 = vmul.f32 %v2261_v26, %v6631_v13  ;;  %v2269_v39 = vmul.f32 %v2265_v16, %v6632_v2  ;;  %v6645_v48 = vld [vmem:[#allocation81_spill] sm:$0xff]  ;;  %v6646_v36 = vld [vmem:[#allocation43_spill] sm:$0xff] }
 0x64b   : > { %2651 = vst [vmem:[%s5606_s23 + $0xc0] sm:$0xff] %v2241_v8  ;;  %2652 = vst [vmem:[%s5606_s23 + $0xc8] sm:$0xff] %v2242_v43  ;;  %v2270_v61 = vmul.f32 %v2261_v26, %v6633_v59  ;;  %v2271_v25 = vmul.f32 %v2265_v16, %v6634_v47  ;;  %v2272_v40 = vmul.f32 %v2261_v26, %v6635_v29  ;;  %v6647_v49 = vld [vmem:[#allocation38_spill] sm:$0xff]  ;;  %v6650_v60 = vld [vmem:[#allocation51_spill] sm:$0xff] }
 0x64c   : > { %2653 = vst [vmem:[%s5606_s23 + $0xd0] sm:$0xff] %v2243_v57  ;;  %2654 = vst [vmem:[%s5606_s23 + $0xd8] sm:$0xff] %v2244_v51  ;;  %v2273_v41 = vmul.f32 %v2265_v16, %v6636_v9  ;;  %v2291_v1 = vmul.f32 %v2286_v44, %v6638_v14  ;;  %v2292_v18 = vmul.f32 %v2290_v21, %v6639_v63  ;;  %v6648_v34 = vld [vmem:[#allocation50_spill] sm:$0xff]  ;;  %v6651_v42 = vld [vmem:[#allocation47_spill] sm:$0xff] }
 0x64d   : > { %2655 = vst [vmem:[%s5606_s23 + $0xe0] sm:$0xff] %v2245_v50  ;;  %2656 = vst [vmem:[%s5606_s23 + $0xe8] sm:$0xff] %v2246_v38  ;;  %v2293_v55 = vmul.f32 %v2286_v44, %v6640_v31  ;;  %v2294_v62 = vmul.f32 %v2290_v21, %v6641_v11  ;;  %v2295_v56 = vmul.f32 %v2286_v44, %v6642_v7  ;;  %v6649_v15 = vld [vmem:[#allocation46_spill] sm:$0xff]  ;;  %v6652_v30 = vld [vmem:[#allocation33_spill] sm:$0xff] }
 0x64e   : > { %2657 = vst [vmem:[%s5606_s23 + $0xf0] sm:$0xff] %v2247_v27  ;;  %2658 = vst [vmem:[%s5606_s23 + $0xf8] sm:$0xff] %v2248_v10  ;;  %v2296_v52 = vmul.f32 %v2290_v21, %v6643_v37  ;;  %v2297_v19 = vmul.f32 %v2286_v44, %v6644_v28  ;;  %v2298_v24 = vmul.f32 %v2290_v21, %v6645_v48  ;;  %v6653_v58 = vld [vmem:[#allocation34_spill] sm:$0xff]  ;;  %v6654_v45 = vld [vmem:[#allocation31_spill] sm:$0xff] }
 0x64f   : > { %2659 = vst [vmem:[%s5606_s23 + $0x100] sm:$0xff] %v2266_v33  ;;  %2660 = vst [vmem:[%s5606_s23 + $0x108] sm:$0xff] %v2267_v46  ;;  %v2316_v5 = vmul.f32 %v2311_v3, %v6646_v36  ;;  %v2317_v0 = vmul.f32 %v2315_v22, %v6647_v49  ;;  %v2318_v53 = vmul.f32 %v2311_v3, %v6648_v34  ;;  %v6655_v23 = vld [vmem:[#allocation32_spill] sm:$0xff]  ;;  %v6656_v54 = vld [vmem:[#allocation29_spill] sm:$0xff] }
 0x650   : > { %2661 = vst [vmem:[%s5606_s23 + $0x110] sm:$0xff] %v2268_v20  ;;  %2662 = vst [vmem:[%s5606_s23 + $0x118] sm:$0xff] %v2269_v39  ;;  %v2319_v35 = vmul.f32 %v2315_v22, %v6649_v15  ;;  %v2320_v8 = vmul.f32 %v2311_v3, %v6650_v60  ;;  %v2321_v43 = vmul.f32 %v2315_v22, %v6651_v42  ;;  %v6657_v6 = vld [vmem:[#allocation30_spill] sm:$0xff]  ;;  %v6660_v26 = vld [vmem:[#allocation88_spill] sm:$0xff] }
 0x651   : > { %2663 = vst [vmem:[%s5606_s23 + $0x120] sm:$0xff] %v2270_v61  ;;  %2664 = vst [vmem:[%s5606_s23 + $0x128] sm:$0xff] %v2271_v25  ;;  %v2322_v57 = vmul.f32 %v2311_v3, %v6652_v30  ;;  %v2323_v51 = vmul.f32 %v2315_v22, %v6653_v58  ;;  %v2341_v50 = vmul.f32 %v2336_v4, %v6654_v45  ;;  %v6661_v44 = vld [vmem:[#allocation89_spill] sm:$0xff]  ;;  %v6663_v3 = vld [vmem:[#allocation72_spill] sm:$0xff] }
 0x652   : > { %2665 = vst [vmem:[%s5606_s23 + $0x130] sm:$0xff] %v2272_v40  ;;  %2666 = vst [vmem:[%s5606_s23 + $0x138] sm:$0xff] %v2273_v41  ;;  %v2342_v38 = vmul.f32 %v2340_v12, %v6655_v23  ;;  %v2343_v27 = vmul.f32 %v2336_v4, %v6656_v54  ;;  %v2344_v10 = vmul.f32 %v2340_v12, %v6657_v6  ;;  %v6664_v17 = vld [vmem:[#allocation61_spill] sm:$0xff] }
 0x653   : > { %2667 = vst [vmem:[%s5606_s23 + $0x140] sm:$0xff] %v2291_v1  ;;  %2668 = vst [vmem:[%s5606_s23 + $0x148] sm:$0xff] %v2292_v18  ;;  %v2345_v16 = vmul.f32 %v2336_v4, %v6660_v26  ;;  %v2346_v21 = vmul.f32 %v2340_v12, %v6661_v44  ;;  %v2347_v22 = vmul.f32 %v2336_v4, %v6663_v3 }
 0x654   : > { %2669 = vst [vmem:[%s5606_s23 + $0x150] sm:$0xff] %v2293_v55  ;;  %2670 = vst [vmem:[%s5606_s23 + $0x158] sm:$0xff] %v2294_v62  ;;  %v2348_v33 = vmul.f32 %v2340_v12, %v6664_v17 }
 0x655   : > { %2671 = vst [vmem:[%s5606_s23 + $0x160] sm:$0xff] %v2295_v56  ;;  %2672 = vst [vmem:[%s5606_s23 + $0x168] sm:$0xff] %v2296_v52 }
 0x656   : > { %2673 = vst [vmem:[%s5606_s23 + $0x170] sm:$0xff] %v2297_v19  ;;  %2674 = vst [vmem:[%s5606_s23 + $0x178] sm:$0xff] %v2298_v24 }
 0x657   : > { %2675 = vst [vmem:[%s5606_s23 + $0x180] sm:$0xff] %v2316_v5  ;;  %2676 = vst [vmem:[%s5606_s23 + $0x188] sm:$0xff] %v2317_v0 }
 0x658   : > { %2677 = vst [vmem:[%s5606_s23 + $0x190] sm:$0xff] %v2318_v53  ;;  %2678 = vst [vmem:[%s5606_s23 + $0x198] sm:$0xff] %v2319_v35 }
 0x659   : > { %2679 = vst [vmem:[%s5606_s23 + $0x1a0] sm:$0xff] %v2320_v8  ;;  %2680 = vst [vmem:[%s5606_s23 + $0x1a8] sm:$0xff] %v2321_v43 }
 0x65a   : > { %2681 = vst [vmem:[%s5606_s23 + $0x1b0] sm:$0xff] %v2322_v57  ;;  %2682 = vst [vmem:[%s5606_s23 + $0x1b8] sm:$0xff] %v2323_v51 }
 0x65b   : > { %2683 = vst [vmem:[%s5606_s23 + $0x1c0] sm:$0xff] %v2341_v50  ;;  %2684 = vst [vmem:[%s5606_s23 + $0x1c8] sm:$0xff] %v2342_v38 }
 0x65c   : > { %2685 = vst [vmem:[%s5606_s23 + $0x1d0] sm:$0xff] %v2343_v27  ;;  %2686 = vst [vmem:[%s5606_s23 + $0x1d8] sm:$0xff] %v2344_v10 }
 0x65d   : > { %2687 = vst [vmem:[%s5606_s23 + $0x1e0] sm:$0xff] %v2345_v16  ;;  %2688 = vst [vmem:[%s5606_s23 + $0x1e8] sm:$0xff] %v2346_v21 }
 0x65e   : > { %2689 = vst [vmem:[%s5606_s23 + $0x1f0] sm:$0xff] %v2347_v22  ;;  %2690 = vst [vmem:[%s5606_s23 + $0x1f8] sm:$0xff] %v2348_v33 }
 0x65f   : > { %2971 = shalt.err (!%p2968_p11)
}
 0x660   : > { %s2972_s24 = scalar_lea.hbm %s5741_s7, 8192  ;;  %s2976_s20 = scalar_lea.hbm %s6659_s8, 16384 }
 0x661   : > { %p2973_p0 = scmp.ne.s32.totalorder %s5741_s7, %s2972_s24  ;;  %p2977_p6 = scmp.lt.u32.totalorder %s5741_s7, %s6659_s8 }
 0x662   : > { %p2978_p3 = scmp.lt.u32.totalorder %s2976_s20, %s2972_s24  ;;  %p2980_p5 = scmp.lt.u32.totalorder %s2972_s24, %s5741_s7 }
 0x663   : > { %p2974_p2 = pnand %p2973_p0, %p6665_p12 }
 0x664   : > { %p2979_p13 = por %p2978_p3, %p2977_p6 }
 0x665   : > { %p2975_p7 = pneg %p2974_p2 }
 0x666   : > { %p2981_p8 = por %p2980_p5, %p2979_p13 }
 0x668   : > { %p2982_p9 = pnand %p2981_p8, %p2975_p7 }
 0x66a   : > { %2985 = shalt.err (!%p2982_p9)
}
 0x66b   : > { %s3059_s0 = smov 256  }
 0x66c   : > { %2742 = dma.vmem_to_hbm [thread:$0]  (%p6665_p12), %s5751_s26, 8192, %s5741_s7, %s2359_s27, %s3059_s0, %s3059_s0, %s3054_s29  }
 0x66d PF: > { %s6666_s13 = sld [smem:[#allocation11_spill]]  ;;  %s6667_s3 = sld [smem:[#allocation19_spill]] }
 0x66e   : > { %s6668_s1 = sld [smem:[#allocation14_spill]] }
 0x673   : > { %s2388_s4 = sand.u32 1, %s6666_s13   ;;  %p6669_p10 = scmp.ne.s32.totalorder %s6667_s3, 0 }
 0x674   : > { %p6670_p1 = scmp.ge.s32.totalorder %s6668_s1, 2  ;;  %s2389_s14 = scalar_lea.sflag [#allocation4], %s2388_s4 }
 0x676   : > { %p2753_p4 = pnand %p6670_p1, %p6669_p10 }
 0x678   : > { %3011 = dma.done.wait (!%p2753_p4), %s2389_s14, 8192  }
 0x679   : > { %3013 = vsyncadd (!%p2753_p4), %s2389_s14, 4294959104  ;;  %s6671_s18 = sld [smem:[#allocation16_spill]]  ;;  %s6672_s15 = sld [smem:[#allocation12_spill]] }
 0x67a   : > { %s6673_s16 = sld [smem:[#allocation13_spill]]  ;;  %s6674_s17 = sld [smem:[#allocation17_spill]] }
 0x67f   : > { %p18_p11 = scmp.ge.s32.totalorder %s6671_s18, 4  }
 0x681   :  { %20 = sbr.rel (!%p18_p11) target bundleno = 12 (0xc), region = 100 }
 0x688   :  { %2394 = vsyncpa [#allocation3], 1 }
 0x689   :  { %2396 = vsyncpa [#allocation3 + $0x1], 1 }
 0x68a   :  { %2397 = vsyncpa [#allocation4], 1 }
 0x68b   :  { %2399 = vsyncpa [#allocation4 + $0x1], 1 }
 0x68c   :  { %2400 = vsyncpa [#allocation5], 1 }
 0x68d   :  { %2402 = vsyncpa [#allocation5 + $0x1], 1 }

</bundles_post_ra>
